<compile_context>
chip_gen: v7x
topology: tpu7x:2x2x1
jax: 0.10.0
libtpu: 0.0.40
codegen_flags: <defaults>
</compile_context>

<pallas_src>
import jax
import jax.numpy as jnp
from jax import lax
from jax.experimental import pallas as pl
from jax.experimental.pallas import tpu as pltpu

# ---------------- model sizes (from the module defaults) ----------------
ALL_VERBS_LEN = 487
EMB_DIM = 64                  # params['embedding_dim']
H = 64                        # lstm_hidden_dim
HP = 128                      # per-gate padded width (gate slices 128-lane aligned)
CS_EMB_DIM = 64               # common_sense_emb_dim
BIGRAM_DIM = 4                # bigramStats_dim
CS_TOTAL = BIGRAM_DIM * CS_EMB_DIM        # 256
OUT_DIM = 4                   # output_dim
OUT_PAD = 128                 # lane-dense kernel output width
FEAT_DIM = 2 * HP + CS_TOTAL  # 512 = padded [h_e0 | h_e1 | cs_emb]
SEQ = 8                       # small example sequence length

# batching: B_TOTAL independent temprel examples, processed in chunks of B_CHUNK rows
# (B_CHUNK = 8 keeps every sublane slice 8-aligned and satisfies the (8,128) rule).
B_TOTAL = 16
B_CHUNK = 8
NUM_CHUNKS = B_TOTAL // B_CHUNK
assert B_TOTAL % B_CHUNK == 0 and B_CHUNK % 8 == 0


def _sigmoid(x):
    # single EUP tanh + VPU fma; avoids exp + full-precision divide on the VALU.
    return 0.5 * jnp.tanh(0.5 * x) + 0.5


# ------------- fused kernel: gather + LSTM + event-select + Linear + ReLU -------------
def fused_siam_kernel(tok_ref, ev_ref, big_ref,            # SMEM scalar prefetch
                      sent_ref,                            # (487, 64)  f32 table
                      cstab_ref,                           # (487, 64)  f32 table
                      wih_ref,                             # (64, 512)  bf16 (padded)
                      whh_ref,                             # (128, 512) bf16 (padded)
                      b_ref,                               # (1, 512)   f32  (padded)
                      h0_ref, c0_ref,                      # (B_CHUNK, 64) f32
                      wout_ref,                            # (512, 128) bf16 (padded)
                      bout_ref,                            # (1, 128)   f32  (padded)
                      out_ref,                             # (B_CHUNK, 128) f32
                      xbuf, xw, csbuf, hhist, selbuf):     # VMEM scratch
    base = pl.program_id(0) * B_CHUNK

    # ---- gather token embeddings for all (b, t) of this chunk; time-major rows ----
    for b in range(B_CHUNK):
        for t in range(SEQ):
            tok = tok_ref[base + b, t]
            xbuf[pl.ds(t * B_CHUNK + b, 1), :] = sent_ref[pl.ds(tok, 1), :]

    # ---- gather common-sense embedding rows: csbuf[k*B + b] = cs_table[big[b, k]] ----
    for b in range(B_CHUNK):
        for k in range(BIGRAM_DIM):
            ix = big_ref[base + b, k]
            csbuf[pl.ds(k * B_CHUNK + b, 1), :] = cstab_ref[pl.ds(ix, 1), :]

    # ---- input projection for ALL (b, t) in one MXU pass; bias folded in ----
    xw[...] = jnp.dot(xbuf[...].astype(jnp.bfloat16), wih_ref[...],
                      preferred_element_type=jnp.float32) + b_ref[...]   # (B*SEQ, 512)

    # ---- cs part of the output projection: independent of the recurrence, so the
    # ---- scheduler can hide it under the first serial steps.
    y_cs = jnp.dot(csbuf[0:B_CHUNK, :].astype(jnp.bfloat16),
                   wout_ref[2 * HP:2 * HP + CS_EMB_DIM, :],
                   preferred_element_type=jnp.float32)                   # (B, 128)
    for k in range(1, BIGRAM_DIM):
        y_cs = y_cs + jnp.dot(
            csbuf[k * B_CHUNK:(k + 1) * B_CHUNK, :].astype(jnp.bfloat16),
            wout_ref[2 * HP + k * CS_EMB_DIM:2 * HP + (k + 1) * CS_EMB_DIM, :],
            preferred_element_type=jnp.float32)

    # ---- padded initial state (lanes H:HP stay exactly 0 through the recurrence) ----
    zpad = jnp.zeros((B_CHUNK, HP - H), jnp.float32)
    h = jnp.concatenate([h0_ref[...], zpad], axis=1)                     # (B, HP)
    c = jnp.concatenate([c0_ref[...], zpad], axis=1)

    # ---- recurrence: fully unrolled (SEQ small & static); only h @ W_hh is serial.
    # ---- W_hh is re-read from VMEM each step (not hoisted) to avoid 32 live vregs.
    for t in range(SEQ):
        gates = xw[t * B_CHUNK:(t + 1) * B_CHUNK, :] + jnp.dot(
            h.astype(jnp.bfloat16), whh_ref[...],
            preferred_element_type=jnp.float32)                          # (B, 512)
        i = _sigmoid(gates[:, 0 * HP:1 * HP])
        f = _sigmoid(gates[:, 1 * HP:2 * HP])
        g = jnp.tanh(gates[:, 2 * HP:3 * HP])
        o = _sigmoid(gates[:, 3 * HP:4 * HP])
        c = f * c + i * g
        h = o * jnp.tanh(c)
        hhist[t * B_CHUNK:(t + 1) * B_CHUNK, :] = h                      # history for select

    # ---- event-row selection: two dynamic row reads per example from the history ----
    for b in range(B_CHUNK):
        e0 = ev_ref[base + b, 0]
        e1 = ev_ref[base + b, 1]
        selbuf[pl.ds(b, 1), :] = hhist[pl.ds(e0 * B_CHUNK + b, 1), :]
        selbuf[pl.ds(B_CHUNK + b, 1), :] = hhist[pl.ds(e1 * B_CHUNK + b, 1), :]

    # ---- remaining output projection (no concat): two partial dots + bias, ReLU ----
    y = (y_cs
         + jnp.dot(selbuf[0:B_CHUNK, :].astype(jnp.bfloat16), wout_ref[0:HP, :],
                   preferred_element_type=jnp.float32)
         + jnp.dot(selbuf[B_CHUNK:2 * B_CHUNK, :].astype(jnp.bfloat16),
                   wout_ref[HP:2 * HP, :], preferred_element_type=jnp.float32)
         + bout_ref[...])
    out_ref[...] = jnp.maximum(y, 0.0)


def fused_forward(token_ids, event_ix, bigram_ix, sent_tab, cs_tab, pp, h0, c0):
    def full(shape):
        return pl.BlockSpec(shape, lambda i, tok, ev, bg: (0, 0))

    def chunk(shape):
        return pl.BlockSpec(shape, lambda i, tok, ev, bg: (i, 0))

    flops = NUM_CHUNKS * (2 * B_CHUNK * SEQ * EMB_DIM * 4 * HP
                          + SEQ * 2 * B_CHUNK * HP * 4 * HP
                          + 2 * B_CHUNK * FEAT_DIM * OUT_PAD)
    transcendentals = NUM_CHUNKS * SEQ * 5 * B_CHUNK * HP
    bytes_accessed = NUM_CHUNKS * (2 * ALL_VERBS_LEN * 64 * 4          # embedding tables
                                   + EMB_DIM * 4 * HP * 2              # W_ih (bf16)
                                   + HP * 4 * HP * 2                   # W_hh (bf16)
                                   + FEAT_DIM * OUT_PAD * 2            # W_out (bf16)
                                   + (4 * HP + OUT_PAD) * 4) \
        + B_TOTAL * (2 * H + OUT_PAD) * 4

    return pl.pallas_call(
        fused_siam_kernel,
        out_shape=jax.ShapeDtypeStruct((B_TOTAL, OUT_PAD), jnp.float32),
        grid_spec=pltpu.PrefetchScalarGridSpec(
            num_scalar_prefetch=3,                 # token_ids, event_ix, bigram_ix -> SMEM
            grid=(NUM_CHUNKS,),                    # batch chunks; "parallel" (2 TCs on v7x)
            in_specs=[
                full((ALL_VERBS_LEN, EMB_DIM)),    # sent_emb table (whole block, VMEM)
                full((ALL_VERBS_LEN, CS_EMB_DIM)), # common_sense_emb table
                full((EMB_DIM, 4 * HP)),           # W_ih (padded, bf16)
                full((HP, 4 * HP)),                # W_hh (padded, bf16)
                full((1, 4 * HP)),                 # bias (padded)
                chunk((B_CHUNK, H)),               # h0 rows of this chunk
                chunk((B_CHUNK, H)),               # c0 rows of this chunk
                full((FEAT_DIM, OUT_PAD)),         # W_out (padded, bf16)
                full((1, OUT_PAD)),                # b_out (padded)
            ],
            out_specs=chunk((B_CHUNK, OUT_PAD)),
            scratch_shapes=[
                pltpu.VMEM((B_CHUNK * SEQ, EMB_DIM), jnp.float32),      # gathered x
                pltpu.VMEM((B_CHUNK * SEQ, 4 * HP), jnp.float32),       # xw = x @ W_ih + b
                pltpu.VMEM((BIGRAM_DIM * B_CHUNK, CS_EMB_DIM), jnp.float32),  # cs rows
                pltpu.VMEM((SEQ * B_CHUNK, HP), jnp.float32),           # h history
                pltpu.VMEM((2 * B_CHUNK, HP), jnp.float32),             # selected event rows
            ],
        ),
        compiler_params=pltpu.CompilerParams(dimension_semantics=("parallel",)),
        cost_estimate=pl.CostEstimate(flops=flops, transcendentals=transcendentals,
                                      bytes_accessed=bytes_accessed),
    )(token_ids, event_ix, bigram_ix, sent_tab, cs_tab,
      pp["w_ih_p"], pp["w_hh_p"], pp["b_p"], h0, c0, pp["w_out_p"], pp["b_out_p"])


# ---------------- one-time weight padding / layout prep (plain JAX) ----------------
def prepare_padded_params(params):
    def pad_gate_cols(w):  # (..., 4H) -> (..., 4*HP): each 64-wide gate block padded to 128
        parts = []
        for g in range(4):
            parts.append(w[:, g * H:(g + 1) * H])
            parts.append(jnp.zeros((w.shape[0], HP - H), w.dtype))
        return jnp.concatenate(parts, axis=1)

    w_ih_p = pad_gate_cols(params["w_ih"]).astype(jnp.bfloat16)           # (64, 512)
    w_hh_p = pad_gate_cols(params["w_hh"])                                # (64, 512)
    w_hh_p = jnp.concatenate(
        [w_hh_p, jnp.zeros((HP - H, 4 * HP), w_hh_p.dtype)], axis=0
    ).astype(jnp.bfloat16)                                                # (128, 512)
    b_p = pad_gate_cols(params["b_gates"])                                # (1, 512) f32

    w = params["w_l2n"]                                                   # (384, 4)
    zrows = jnp.zeros((HP - H, OUT_DIM), w.dtype)
    w_rows = jnp.concatenate([w[0:H], zrows, w[H:2 * H], zrows, w[2 * H:]], axis=0)  # (512, 4)
    w_out_p = jnp.concatenate(
        [w_rows, jnp.zeros((FEAT_DIM, OUT_PAD - OUT_DIM), w.dtype)], axis=1
    ).astype(jnp.bfloat16)                                                # (512, 128)
    b_out_p = jnp.concatenate(
        [params["b_l2n"], jnp.zeros((1, OUT_PAD - OUT_DIM), jnp.float32)], axis=1)   # (1, 128)

    return {"w_ih_p": w_ih_p, "w_hh_p": w_hh_p, "b_p": b_p,
            "w_out_p": w_out_p, "b_out_p": b_out_p}


def check_zero_padding(pp):
    # padded lanes of h/c stay exactly 0 only if all padded weight/bias columns are 0.
    ok = True
    for g in range(4):
        ok &= bool(jnp.all(pp["w_ih_p"][:, g * HP + H:(g + 1) * HP] == 0))
        ok &= bool(jnp.all(pp["w_hh_p"][:, g * HP + H:(g + 1) * HP] == 0))
        ok &= bool(jnp.all(pp["b_p"][:, g * HP + H:(g + 1) * HP] == 0))
    ok &= bool(jnp.all(pp["w_hh_p"][H:HP, :] == 0))
    assert ok, "gate padding must be exactly zero"


# ---------------- forwardSiam (batched over independent temprel examples) ----------------
def forward_siam(params, padded, token_ids, event_ix, bigram_ix, h0, c0):
    out = fused_forward(token_ids.astype(jnp.int32), event_ix.astype(jnp.int32),
                        bigram_ix.astype(jnp.int32),
                        params["sent_emb"], params["common_sense_emb"],
                        padded, h0, c0)
    return out[:, :OUT_DIM]                                               # (B, 4)


forward_siam_jit = jax.jit(forward_siam)


# ---------------- pure-JAX f32 reference (per-example forwardSiam semantics) ----------------
def forward_siam_ref(params, token_ids, event_ix, bigram_ix, h0, c0):
    Bt = token_ids.shape[0]
    cs = params["common_sense_emb"][bigram_ix].reshape(Bt, -1)            # (B, 256)
    emb = params["sent_emb"][token_ids]                                   # (B, SEQ, E)

    def step(carry, x_t):
        h, c = carry
        gates = x_t @ params["w_ih"] + h @ params["w_hh"] + params["b_gates"]
        i = jax.nn.sigmoid(gates[:, 0:H])
        f = jax.nn.sigmoid(gates[:, H:2 * H])
        g = jnp.tanh(gates[:, 2 * H:3 * H])
        o = jax.nn.sigmoid(gates[:, 3 * H:4 * H])
        c = f * c + i * g
        h = o * jnp.tanh(c)
        return (h, c), h

    (_, _), hs = lax.scan(step, (h0, c0), jnp.swapaxes(emb, 0, 1))        # (SEQ, B, H)
    bidx = jnp.arange(Bt)
    sel0 = hs[event_ix[:, 0], bidx]                                       # (B, H)
    sel1 = hs[event_ix[:, 1], bidx]
    feat = jnp.concatenate([sel0, sel1, cs], axis=1)                      # (B, 384)
    y = feat @ params["w_l2n"] + params["b_l2n"]
    return jnp.maximum(y, 0.0)


# ---------------- main ----------------
if __name__ == "__main__":
    key = jax.random.PRNGKey(0)
    ks = jax.random.split(key, 12)

    scale = 0.1
    params = {
        # nn.Embedding(487, 64)  (common sense)
        "common_sense_emb": scale * jax.random.normal(ks[0], (ALL_VERBS_LEN, CS_EMB_DIM), jnp.float32),
        # nn.Embedding(487, embedding_dim)
        "sent_emb": scale * jax.random.normal(ks[1], (ALL_VERBS_LEN, EMB_DIM), jnp.float32),
        # LSTM weights (stored transposed, gate order i,f,g,o; b = b_ih + b_hh)
        "w_ih": scale * jax.random.normal(ks[2], (EMB_DIM, 4 * H), jnp.float32),
        "w_hh": scale * jax.random.normal(ks[3], (H, 4 * H), jnp.float32),
        "b_gates": scale * jax.random.normal(ks[4], (1, 4 * H), jnp.float32),
        # nn.Linear(384, output_dim) stored as (in, out)
        "w_l2n": scale * jax.random.normal(ks[5], (2 * H + CS_TOTAL, OUT_DIM), jnp.float32),
        "b_l2n": scale * jax.random.normal(ks[6], (1, OUT_DIM), jnp.float32),
    }
    # TODO(synk): verb_i_map dict lookup / bigramGetter are host-side string->index maps with
    # no array equivalent; token_ids / bigram_ix below are assumed already mapped (% 487).
    # TODO(synk): h_nn2o (Linear(132, 4)) is never used in forwardSiam, so it is not materialized.

    padded = prepare_padded_params(params)
    check_zero_padding(padded)

    # init_hidden(): torch.randn -> deterministic randn here, one state per example
    h0 = jax.random.normal(ks[7], (B_TOTAL, H), jnp.float32)
    c0 = jax.random.normal(ks[8], (B_TOTAL, H), jnp.float32)

    # synthetic batch of temprel examples: token indices, two event positions, 4 bigram ids
    token_ids = jax.random.randint(ks[9], (B_TOTAL, SEQ), 0, ALL_VERBS_LEN, dtype=jnp.int32)
    event_ix = jax.random.randint(ks[10], (B_TOTAL, 2), 0, SEQ, dtype=jnp.int32)
    bigram_ix = jax.random.randint(ks[11], (B_TOTAL, BIGRAM_DIM), 0, ALL_VERBS_LEN, dtype=jnp.int32)

    out = forward_siam_jit(params, padded, token_ids, event_ix, bigram_ix, h0, c0)
    out = jax.block_until_ready(out)

    ref = forward_siam_ref(params, token_ids, event_ix, bigram_ix, h0, c0)
    assert out.shape == (B_TOTAL, OUT_DIM)
    # bf16 MXU operands (f32 accumulation) vs pure-f32 reference: error ~1e-3..1e-2,
    # far below the ~0.05+ deviations any structural bug would produce.
    assert jnp.allclose(out, ref, rtol=5e-2, atol=2e-2), (out, ref)

    print("KERNEL_OK")
</pallas_src>

<mosaic_0001>
module attributes {stable_mosaic.version = 11 : i64} {
  func.func @fused_siam_kernel(%arg0: i32, %arg1: memref<16x8xi32, #tpu.memory_space<smem>>, %arg2: memref<16x2xi32, #tpu.memory_space<smem>>, %arg3: memref<16x4xi32, #tpu.memory_space<smem>>, %arg4: memref<487x64xf32, #tpu.memory_space<vmem>>, %arg5: memref<487x64xf32, #tpu.memory_space<vmem>>, %arg6: memref<64x512xbf16, #tpu.memory_space<vmem>>, %arg7: memref<128x512xbf16, #tpu.memory_space<vmem>>, %arg8: memref<1x512xf32, #tpu.memory_space<vmem>>, %arg9: memref<8x64xf32, #tpu.memory_space<vmem>>, %arg10: memref<8x64xf32, #tpu.memory_space<vmem>>, %arg11: memref<512x128xbf16, #tpu.memory_space<vmem>>, %arg12: memref<1x128xf32, #tpu.memory_space<vmem>>, %arg13: memref<8x128xf32, #tpu.memory_space<vmem>>, %arg14: memref<64x64xf32, #tpu.memory_space<vmem>>, %arg15: memref<64x512xf32, #tpu.memory_space<vmem>>, %arg16: memref<32x64xf32, #tpu.memory_space<vmem>>, %arg17: memref<64x128xf32, #tpu.memory_space<vmem>>, %arg18: memref<16x128xf32, #tpu.memory_space<vmem>>) attributes {dimension_semantics = [#tpu.dimension_semantics<parallel>], iteration_bounds = array<i64: 2>, scalar_prefetch = 3 : i64, scratch_operands = 5 : i64, tpu.core_type = #tpu.core_type<tc>, window_params = [{pipeline_mode = #tpu.pipeline_mode<synchronous>, transform_indices = @transform_0, window_bounds = array<i64: 487, 64>}, {pipeline_mode = #tpu.pipeline_mode<synchronous>, transform_indices = @transform_1, window_bounds = array<i64: 487, 64>}, {pipeline_mode = #tpu.pipeline_mode<synchronous>, transform_indices = @transform_2, window_bounds = array<i64: 64, 512>}, {pipeline_mode = #tpu.pipeline_mode<synchronous>, transform_indices = @transform_3, window_bounds = array<i64: 128, 512>}, {pipeline_mode = #tpu.pipeline_mode<synchronous>, transform_indices = @transform_4, window_bounds = array<i64: 1, 512>}, {transform_indices = @transform_5, window_bounds = array<i64: 8, 64>}, {transform_indices = @transform_6, window_bounds = array<i64: 8, 64>}, {pipeline_mode = #tpu.pipeline_mode<synchronous>, transform_indices = @transform_7, window_bounds = array<i64: 512, 128>}, {pipeline_mode = #tpu.pipeline_mode<synchronous>, transform_indices = @transform_8, window_bounds = array<i64: 1, 128>}, {transform_indices = @transform_9, window_bounds = array<i64: 8, 128>}]} {
    %c8_i32 = arith.constant 8 : i32
    %0 = arith.muli %arg0, %c8_i32 : i32
    %c0_i32 = arith.constant 0 : i32
    %1 = arith.addi %0, %c0_i32 : i32
    %2 = arith.index_cast %1 : i32 to index
    %c0 = arith.constant 0 : index
    %3 = memref.load %arg1[%2, %c0] : memref<16x8xi32, #tpu.memory_space<smem>>
    %4 = arith.index_cast %3 : i32 to index
    %c0_0 = arith.constant 0 : index
    %5 = vector.load %arg4[%4, %c0_0] : memref<487x64xf32, #tpu.memory_space<vmem>>, vector<1x64xf32>
    %c0_1 = arith.constant 0 : index
    %c0_2 = arith.constant 0 : index
    %6 = vector.load %arg14[%c0_1, %c0_2] : memref<64x64xf32, #tpu.memory_space<vmem>>, vector<1x64xf32>
    tpu.vector_store %arg14[%c0_1, %c0_2], %5 {strides = array<i32>} : memref<64x64xf32, #tpu.memory_space<vmem>>, vector<1x64xf32>,
    %c0_i32_3 = arith.constant 0 : i32
    %7 = arith.addi %0, %c0_i32_3 : i32
    %8 = arith.index_cast %7 : i32 to index
    %c1 = arith.constant 1 : index
    %9 = memref.load %arg1[%8, %c1] : memref<16x8xi32, #tpu.memory_space<smem>>
    %10 = arith.index_cast %9 : i32 to index
    %c0_4 = arith.constant 0 : index
    %11 = vector.load %arg4[%10, %c0_4] : memref<487x64xf32, #tpu.memory_space<vmem>>, vector<1x64xf32>
    %c8 = arith.constant 8 : index
    %c0_5 = arith.constant 0 : index
    %12 = vector.load %arg14[%c8, %c0_5] : memref<64x64xf32, #tpu.memory_space<vmem>>, vector<1x64xf32>
    tpu.vector_store %arg14[%c8, %c0_5], %11 {strides = array<i32>} : memref<64x64xf32, #tpu.memory_space<vmem>>, vector<1x64xf32>,
    %c0_i32_6 = arith.constant 0 : i32
    %13 = arith.addi %0, %c0_i32_6 : i32
    %14 = arith.index_cast %13 : i32 to index
    %c2 = arith.constant 2 : index
    %15 = memref.load %arg1[%14, %c2] : memref<16x8xi32, #tpu.memory_space<smem>>
    %16 = arith.index_cast %15 : i32 to index
    %c0_7 = arith.constant 0 : index
    %17 = vector.load %arg4[%16, %c0_7] : memref<487x64xf32, #tpu.memory_space<vmem>>, vector<1x64xf32>
    %c16 = arith.constant 16 : index
    %c0_8 = arith.constant 0 : index
    %18 = vector.load %arg14[%c16, %c0_8] : memref<64x64xf32, #tpu.memory_space<vmem>>, vector<1x64xf32>
    tpu.vector_store %arg14[%c16, %c0_8], %17 {strides = array<i32>} : memref<64x64xf32, #tpu.memory_space<vmem>>, vector<1x64xf32>,
    %c0_i32_9 = arith.constant 0 : i32
    %19 = arith.addi %0, %c0_i32_9 : i32
    %20 = arith.index_cast %19 : i32 to index
    %c3 = arith.constant 3 : index
    %21 = memref.load %arg1[%20, %c3] : memref<16x8xi32, #tpu.memory_space<smem>>
    %22 = arith.index_cast %21 : i32 to index
    %c0_10 = arith.constant 0 : index
    %23 = vector.load %arg4[%22, %c0_10] : memref<487x64xf32, #tpu.memory_space<vmem>>, vector<1x64xf32>
    %c24 = arith.constant 24 : index
    %c0_11 = arith.constant 0 : index
    %24 = vector.load %arg14[%c24, %c0_11] : memref<64x64xf32, #tpu.memory_space<vmem>>, vector<1x64xf32>
    tpu.vector_store %arg14[%c24, %c0_11], %23 {strides = array<i32>} : memref<64x64xf32, #tpu.memory_space<vmem>>, vector<1x64xf32>,
    %c0_i32_12 = arith.constant 0 : i32
    %25 = arith.addi %0, %c0_i32_12 : i32
    %26 = arith.index_cast %25 : i32 to index
    %c4 = arith.constant 4 : index
    %27 = memref.load %arg1[%26, %c4] : memref<16x8xi32, #tpu.memory_space<smem>>
    %28 = arith.index_cast %27 : i32 to index
    %c0_13 = arith.constant 0 : index
    %29 = vector.load %arg4[%28, %c0_13] : memref<487x64xf32, #tpu.memory_space<vmem>>, vector<1x64xf32>
    %c32 = arith.constant 32 : index
    %c0_14 = arith.constant 0 : index
    %30 = vector.load %arg14[%c32, %c0_14] : memref<64x64xf32, #tpu.memory_space<vmem>>, vector<1x64xf32>
    tpu.vector_store %arg14[%c32, %c0_14], %29 {strides = array<i32>} : memref<64x64xf32, #tpu.memory_space<vmem>>, vector<1x64xf32>,
    %c0_i32_15 = arith.constant 0 : i32
    %31 = arith.addi %0, %c0_i32_15 : i32
    %32 = arith.index_cast %31 : i32 to index
    %c5 = arith.constant 5 : index
    %33 = memref.load %arg1[%32, %c5] : memref<16x8xi32, #tpu.memory_space<smem>>
    %34 = arith.index_cast %33 : i32 to index
    %c0_16 = arith.constant 0 : index
    %35 = vector.load %arg4[%34, %c0_16] : memref<487x64xf32, #tpu.memory_space<vmem>>, vector<1x64xf32>
    %c40 = arith.constant 40 : index
    %c0_17 = arith.constant 0 : index
    %36 = vector.load %arg14[%c40, %c0_17] : memref<64x64xf32, #tpu.memory_space<vmem>>, vector<1x64xf32>
    tpu.vector_store %arg14[%c40, %c0_17], %35 {strides = array<i32>} : memref<64x64xf32, #tpu.memory_space<vmem>>, vector<1x64xf32>,
    %c0_i32_18 = arith.constant 0 : i32
    %37 = arith.addi %0, %c0_i32_18 : i32
    %38 = arith.index_cast %37 : i32 to index
    %c6 = arith.constant 6 : index
    %39 = memref.load %arg1[%38, %c6] : memref<16x8xi32, #tpu.memory_space<smem>>
    %40 = arith.index_cast %39 : i32 to index
    %c0_19 = arith.constant 0 : index
    %41 = vector.load %arg4[%40, %c0_19] : memref<487x64xf32, #tpu.memory_space<vmem>>, vector<1x64xf32>
    %c48 = arith.constant 48 : index
    %c0_20 = arith.constant 0 : index
    %42 = vector.load %arg14[%c48, %c0_20] : memref<64x64xf32, #tpu.memory_space<vmem>>, vector<1x64xf32>
    tpu.vector_store %arg14[%c48, %c0_20], %41 {strides = array<i32>} : memref<64x64xf32, #tpu.memory_space<vmem>>, vector<1x64xf32>,
    %c0_i32_21 = arith.constant 0 : i32
    %43 = arith.addi %0, %c0_i32_21 : i32
    %44 = arith.index_cast %43 : i32 to index
    %c7 = arith.constant 7 : index
    %45 = memref.load %arg1[%44, %c7] : memref<16x8xi32, #tpu.memory_space<smem>>
    %46 = arith.index_cast %45 : i32 to index
    %c0_22 = arith.constant 0 : index
    %47 = vector.load %arg4[%46, %c0_22] : memref<487x64xf32, #tpu.memory_space<vmem>>, vector<1x64xf32>
    %c56 = arith.constant 56 : index
    %c0_23 = arith.constant 0 : index
    %48 = vector.load %arg14[%c56, %c0_23] : memref<64x64xf32, #tpu.memory_space<vmem>>, vector<1x64xf32>
    tpu.vector_store %arg14[%c56, %c0_23], %47 {strides = array<i32>} : memref<64x64xf32, #tpu.memory_space<vmem>>, vector<1x64xf32>,
    %c1_i32 = arith.constant 1 : i32
    %49 = arith.addi %0, %c1_i32 : i32
    %50 = arith.index_cast %49 : i32 to index
    %c0_24 = arith.constant 0 : index
    %51 = memref.load %arg1[%50, %c0_24] : memref<16x8xi32, #tpu.memory_space<smem>>
    %52 = arith.index_cast %51 : i32 to index
    %c0_25 = arith.constant 0 : index
    %53 = vector.load %arg4[%52, %c0_25] : memref<487x64xf32, #tpu.memory_space<vmem>>, vector<1x64xf32>
    %c1_26 = arith.constant 1 : index
    %c0_27 = arith.constant 0 : index
    %54 = vector.load %arg14[%c1_26, %c0_27] : memref<64x64xf32, #tpu.memory_space<vmem>>, vector<1x64xf32>
    tpu.vector_store %arg14[%c1_26, %c0_27], %53 {strides = array<i32>} : memref<64x64xf32, #tpu.memory_space<vmem>>, vector<1x64xf32>,
    %c1_i32_28 = arith.constant 1 : i32
    %55 = arith.addi %0, %c1_i32_28 : i32
    %56 = arith.index_cast %55 : i32 to index
    %c1_29 = arith.constant 1 : index
    %57 = memref.load %arg1[%56, %c1_29] : memref<16x8xi32, #tpu.memory_space<smem>>
    %58 = arith.index_cast %57 : i32 to index
    %c0_30 = arith.constant 0 : index
    %59 = vector.load %arg4[%58, %c0_30] : memref<487x64xf32, #tpu.memory_space<vmem>>, vector<1x64xf32>
    %c9 = arith.constant 9 : index
    %c0_31 = arith.constant 0 : index
    %60 = vector.load %arg14[%c9, %c0_31] : memref<64x64xf32, #tpu.memory_space<vmem>>, vector<1x64xf32>
    tpu.vector_store %arg14[%c9, %c0_31], %59 {strides = array<i32>} : memref<64x64xf32, #tpu.memory_space<vmem>>, vector<1x64xf32>,
    %c1_i32_32 = arith.constant 1 : i32
    %61 = arith.addi %0, %c1_i32_32 : i32
    %62 = arith.index_cast %61 : i32 to index
    %c2_33 = arith.constant 2 : index
    %63 = memref.load %arg1[%62, %c2_33] : memref<16x8xi32, #tpu.memory_space<smem>>
    %64 = arith.index_cast %63 : i32 to index
    %c0_34 = arith.constant 0 : index
    %65 = vector.load %arg4[%64, %c0_34] : memref<487x64xf32, #tpu.memory_space<vmem>>, vector<1x64xf32>
    %c17 = arith.constant 17 : index
    %c0_35 = arith.constant 0 : index
    %66 = vector.load %arg14[%c17, %c0_35] : memref<64x64xf32, #tpu.memory_space<vmem>>, vector<1x64xf32>
    tpu.vector_store %arg14[%c17, %c0_35], %65 {strides = array<i32>} : memref<64x64xf32, #tpu.memory_space<vmem>>, vector<1x64xf32>,
    %c1_i32_36 = arith.constant 1 : i32
    %67 = arith.addi %0, %c1_i32_36 : i32
    %68 = arith.index_cast %67 : i32 to index
    %c3_37 = arith.constant 3 : index
    %69 = memref.load %arg1[%68, %c3_37] : memref<16x8xi32, #tpu.memory_space<smem>>
    %70 = arith.index_cast %69 : i32 to index
    %c0_38 = arith.constant 0 : index
    %71 = vector.load %arg4[%70, %c0_38] : memref<487x64xf32, #tpu.memory_space<vmem>>, vector<1x64xf32>
    %c25 = arith.constant 25 : index
    %c0_39 = arith.constant 0 : index
    %72 = vector.load %arg14[%c25, %c0_39] : memref<64x64xf32, #tpu.memory_space<vmem>>, vector<1x64xf32>
    tpu.vector_store %arg14[%c25, %c0_39], %71 {strides = array<i32>} : memref<64x64xf32, #tpu.memory_space<vmem>>, vector<1x64xf32>,
    %c1_i32_40 = arith.constant 1 : i32
    %73 = arith.addi %0, %c1_i32_40 : i32
    %74 = arith.index_cast %73 : i32 to index
    %c4_41 = arith.constant 4 : index
    %75 = memref.load %arg1[%74, %c4_41] : memref<16x8xi32, #tpu.memory_space<smem>>
    %76 = arith.index_cast %75 : i32 to index
    %c0_42 = arith.constant 0 : index
    %77 = vector.load %arg4[%76, %c0_42] : memref<487x64xf32, #tpu.memory_space<vmem>>, vector<1x64xf32>
    %c33 = arith.constant 33 : index
    %c0_43 = arith.constant 0 : index
    %78 = vector.load %arg14[%c33, %c0_43] : memref<64x64xf32, #tpu.memory_space<vmem>>, vector<1x64xf32>
    tpu.vector_store %arg14[%c33, %c0_43], %77 {strides = array<i32>} : memref<64x64xf32, #tpu.memory_space<vmem>>, vector<1x64xf32>,
    %c1_i32_44 = arith.constant 1 : i32
    %79 = arith.addi %0, %c1_i32_44 : i32
    %80 = arith.index_cast %79 : i32 to index
    %c5_45 = arith.constant 5 : index
    %81 = memref.load %arg1[%80, %c5_45] : memref<16x8xi32, #tpu.memory_space<smem>>
    %82 = arith.index_cast %81 : i32 to index
    %c0_46 = arith.constant 0 : index
    %83 = vector.load %arg4[%82, %c0_46] : memref<487x64xf32, #tpu.memory_space<vmem>>, vector<1x64xf32>
    %c41 = arith.constant 41 : index
    %c0_47 = arith.constant 0 : index
    %84 = vector.load %arg14[%c41, %c0_47] : memref<64x64xf32, #tpu.memory_space<vmem>>, vector<1x64xf32>
    tpu.vector_store %arg14[%c41, %c0_47], %83 {strides = array<i32>} : memref<64x64xf32, #tpu.memory_space<vmem>>, vector<1x64xf32>,
    %c1_i32_48 = arith.constant 1 : i32
    %85 = arith.addi %0, %c1_i32_48 : i32
    %86 = arith.index_cast %85 : i32 to index
    %c6_49 = arith.constant 6 : index
    %87 = memref.load %arg1[%86, %c6_49] : memref<16x8xi32, #tpu.memory_space<smem>>
    %88 = arith.index_cast %87 : i32 to index
    %c0_50 = arith.constant 0 : index
    %89 = vector.load %arg4[%88, %c0_50] : memref<487x64xf32, #tpu.memory_space<vmem>>, vector<1x64xf32>
    %c49 = arith.constant 49 : index
    %c0_51 = arith.constant 0 : index
    %90 = vector.load %arg14[%c49, %c0_51] : memref<64x64xf32, #tpu.memory_space<vmem>>, vector<1x64xf32>
    tpu.vector_store %arg14[%c49, %c0_51], %89 {strides = array<i32>} : memref<64x64xf32, #tpu.memory_space<vmem>>, vector<1x64xf32>,
    %c1_i32_52 = arith.constant 1 : i32
    %91 = arith.addi %0, %c1_i32_52 : i32
    %92 = arith.index_cast %91 : i32 to index
    %c7_53 = arith.constant 7 : index
    %93 = memref.load %arg1[%92, %c7_53] : memref<16x8xi32, #tpu.memory_space<smem>>
    %94 = arith.index_cast %93 : i32 to index
    %c0_54 = arith.constant 0 : index
    %95 = vector.load %arg4[%94, %c0_54] : memref<487x64xf32, #tpu.memory_space<vmem>>, vector<1x64xf32>
    %c57 = arith.constant 57 : index
    %c0_55 = arith.constant 0 : index
    %96 = vector.load %arg14[%c57, %c0_55] : memref<64x64xf32, #tpu.memory_space<vmem>>, vector<1x64xf32>
    tpu.vector_store %arg14[%c57, %c0_55], %95 {strides = array<i32>} : memref<64x64xf32, #tpu.memory_space<vmem>>, vector<1x64xf32>,
    %c2_i32 = arith.constant 2 : i32
    %97 = arith.addi %0, %c2_i32 : i32
    %98 = arith.index_cast %97 : i32 to index
    %c0_56 = arith.constant 0 : index
    %99 = memref.load %arg1[%98, %c0_56] : memref<16x8xi32, #tpu.memory_space<smem>>
    %100 = arith.index_cast %99 : i32 to index
    %c0_57 = arith.constant 0 : index
    %101 = vector.load %arg4[%100, %c0_57] : memref<487x64xf32, #tpu.memory_space<vmem>>, vector<1x64xf32>
    %c2_58 = arith.constant 2 : index
    %c0_59 = arith.constant 0 : index
    %102 = vector.load %arg14[%c2_58, %c0_59] : memref<64x64xf32, #tpu.memory_space<vmem>>, vector<1x64xf32>
    tpu.vector_store %arg14[%c2_58, %c0_59], %101 {strides = array<i32>} : memref<64x64xf32, #tpu.memory_space<vmem>>, vector<1x64xf32>,
    %c2_i32_60 = arith.constant 2 : i32
    %103 = arith.addi %0, %c2_i32_60 : i32
    %104 = arith.index_cast %103 : i32 to index
    %c1_61 = arith.constant 1 : index
    %105 = memref.load %arg1[%104, %c1_61] : memref<16x8xi32, #tpu.memory_space<smem>>
    %106 = arith.index_cast %105 : i32 to index
    %c0_62 = arith.constant 0 : index
    %107 = vector.load %arg4[%106, %c0_62] : memref<487x64xf32, #tpu.memory_space<vmem>>, vector<1x64xf32>
    %c10 = arith.constant 10 : index
    %c0_63 = arith.constant 0 : index
    %108 = vector.load %arg14[%c10, %c0_63] : memref<64x64xf32, #tpu.memory_space<vmem>>, vector<1x64xf32>
    tpu.vector_store %arg14[%c10, %c0_63], %107 {strides = array<i32>} : memref<64x64xf32, #tpu.memory_space<vmem>>, vector<1x64xf32>,
    %c2_i32_64 = arith.constant 2 : i32
    %109 = arith.addi %0, %c2_i32_64 : i32
    %110 = arith.index_cast %109 : i32 to index
    %c2_65 = arith.constant 2 : index
    %111 = memref.load %arg1[%110, %c2_65] : memref<16x8xi32, #tpu.memory_space<smem>>
    %112 = arith.index_cast %111 : i32 to index
    %c0_66 = arith.constant 0 : index
    %113 = vector.load %arg4[%112, %c0_66] : memref<487x64xf32, #tpu.memory_space<vmem>>, vector<1x64xf32>
    %c18 = arith.constant 18 : index
    %c0_67 = arith.constant 0 : index
    %114 = vector.load %arg14[%c18, %c0_67] : memref<64x64xf32, #tpu.memory_space<vmem>>, vector<1x64xf32>
    tpu.vector_store %arg14[%c18, %c0_67], %113 {strides = array<i32>} : memref<64x64xf32, #tpu.memory_space<vmem>>, vector<1x64xf32>,
    %c2_i32_68 = arith.constant 2 : i32
    %115 = arith.addi %0, %c2_i32_68 : i32
    %116 = arith.index_cast %115 : i32 to index
    %c3_69 = arith.constant 3 : index
    %117 = memref.load %arg1[%116, %c3_69] : memref<16x8xi32, #tpu.memory_space<smem>>
    %118 = arith.index_cast %117 : i32 to index
    %c0_70 = arith.constant 0 : index
    %119 = vector.load %arg4[%118, %c0_70] : memref<487x64xf32, #tpu.memory_space<vmem>>, vector<1x64xf32>
    %c26 = arith.constant 26 : index
    %c0_71 = arith.constant 0 : index
    %120 = vector.load %arg14[%c26, %c0_71] : memref<64x64xf32, #tpu.memory_space<vmem>>, vector<1x64xf32>
    tpu.vector_store %arg14[%c26, %c0_71], %119 {strides = array<i32>} : memref<64x64xf32, #tpu.memory_space<vmem>>, vector<1x64xf32>,
    %c2_i32_72 = arith.constant 2 : i32
    %121 = arith.addi %0, %c2_i32_72 : i32
    %122 = arith.index_cast %121 : i32 to index
    %c4_73 = arith.constant 4 : index
    %123 = memref.load %arg1[%122, %c4_73] : memref<16x8xi32, #tpu.memory_space<smem>>
    %124 = arith.index_cast %123 : i32 to index
    %c0_74 = arith.constant 0 : index
    %125 = vector.load %arg4[%124, %c0_74] : memref<487x64xf32, #tpu.memory_space<vmem>>, vector<1x64xf32>
    %c34 = arith.constant 34 : index
    %c0_75 = arith.constant 0 : index
    %126 = vector.load %arg14[%c34, %c0_75] : memref<64x64xf32, #tpu.memory_space<vmem>>, vector<1x64xf32>
    tpu.vector_store %arg14[%c34, %c0_75], %125 {strides = array<i32>} : memref<64x64xf32, #tpu.memory_space<vmem>>, vector<1x64xf32>,
    %c2_i32_76 = arith.constant 2 : i32
    %127 = arith.addi %0, %c2_i32_76 : i32
    %128 = arith.index_cast %127 : i32 to index
    %c5_77 = arith.constant 5 : index
    %129 = memref.load %arg1[%128, %c5_77] : memref<16x8xi32, #tpu.memory_space<smem>>
    %130 = arith.index_cast %129 : i32 to index
    %c0_78 = arith.constant 0 : index
    %131 = vector.load %arg4[%130, %c0_78] : memref<487x64xf32, #tpu.memory_space<vmem>>, vector<1x64xf32>
    %c42 = arith.constant 42 : index
    %c0_79 = arith.constant 0 : index
    %132 = vector.load %arg14[%c42, %c0_79] : memref<64x64xf32, #tpu.memory_space<vmem>>, vector<1x64xf32>
    tpu.vector_store %arg14[%c42, %c0_79], %131 {strides = array<i32>} : memref<64x64xf32, #tpu.memory_space<vmem>>, vector<1x64xf32>,
    %c2_i32_80 = arith.constant 2 : i32
    %133 = arith.addi %0, %c2_i32_80 : i32
    %134 = arith.index_cast %133 : i32 to index
    %c6_81 = arith.constant 6 : index
    %135 = memref.load %arg1[%134, %c6_81] : memref<16x8xi32, #tpu.memory_space<smem>>
    %136 = arith.index_cast %135 : i32 to index
    %c0_82 = arith.constant 0 : index
    %137 = vector.load %arg4[%136, %c0_82] : memref<487x64xf32, #tpu.memory_space<vmem>>, vector<1x64xf32>
    %c50 = arith.constant 50 : index
    %c0_83 = arith.constant 0 : index
    %138 = vector.load %arg14[%c50, %c0_83] : memref<64x64xf32, #tpu.memory_space<vmem>>, vector<1x64xf32>
    tpu.vector_store %arg14[%c50, %c0_83], %137 {strides = array<i32>} : memref<64x64xf32, #tpu.memory_space<vmem>>, vector<1x64xf32>,
    %c2_i32_84 = arith.constant 2 : i32
    %139 = arith.addi %0, %c2_i32_84 : i32
    %140 = arith.index_cast %139 : i32 to index
    %c7_85 = arith.constant 7 : index
    %141 = memref.load %arg1[%140, %c7_85] : memref<16x8xi32, #tpu.memory_space<smem>>
    %142 = arith.index_cast %141 : i32 to index
    %c0_86 = arith.constant 0 : index
    %143 = vector.load %arg4[%142, %c0_86] : memref<487x64xf32, #tpu.memory_space<vmem>>, vector<1x64xf32>
    %c58 = arith.constant 58 : index
    %c0_87 = arith.constant 0 : index
    %144 = vector.load %arg14[%c58, %c0_87] : memref<64x64xf32, #tpu.memory_space<vmem>>, vector<1x64xf32>
    tpu.vector_store %arg14[%c58, %c0_87], %143 {strides = array<i32>} : memref<64x64xf32, #tpu.memory_space<vmem>>, vector<1x64xf32>,
    %c3_i32 = arith.constant 3 : i32
    %145 = arith.addi %0, %c3_i32 : i32
    %146 = arith.index_cast %145 : i32 to index
    %c0_88 = arith.constant 0 : index
    %147 = memref.load %arg1[%146, %c0_88] : memref<16x8xi32, #tpu.memory_space<smem>>
    %148 = arith.index_cast %147 : i32 to index
    %c0_89 = arith.constant 0 : index
    %149 = vector.load %arg4[%148, %c0_89] : memref<487x64xf32, #tpu.memory_space<vmem>>, vector<1x64xf32>
    %c3_90 = arith.constant 3 : index
    %c0_91 = arith.constant 0 : index
    %150 = vector.load %arg14[%c3_90, %c0_91] : memref<64x64xf32, #tpu.memory_space<vmem>>, vector<1x64xf32>
    tpu.vector_store %arg14[%c3_90, %c0_91], %149 {strides = array<i32>} : memref<64x64xf32, #tpu.memory_space<vmem>>, vector<1x64xf32>,
    %c3_i32_92 = arith.constant 3 : i32
    %151 = arith.addi %0, %c3_i32_92 : i32
    %152 = arith.index_cast %151 : i32 to index
    %c1_93 = arith.constant 1 : index
    %153 = memref.load %arg1[%152, %c1_93] : memref<16x8xi32, #tpu.memory_space<smem>>
    %154 = arith.index_cast %153 : i32 to index
    %c0_94 = arith.constant 0 : index
    %155 = vector.load %arg4[%154, %c0_94] : memref<487x64xf32, #tpu.memory_space<vmem>>, vector<1x64xf32>
    %c11 = arith.constant 11 : index
    %c0_95 = arith.constant 0 : index
    %156 = vector.load %arg14[%c11, %c0_95] : memref<64x64xf32, #tpu.memory_space<vmem>>, vector<1x64xf32>
    tpu.vector_store %arg14[%c11, %c0_95], %155 {strides = array<i32>} : memref<64x64xf32, #tpu.memory_space<vmem>>, vector<1x64xf32>,
    %c3_i32_96 = arith.constant 3 : i32
    %157 = arith.addi %0, %c3_i32_96 : i32
    %158 = arith.index_cast %157 : i32 to index
    %c2_97 = arith.constant 2 : index
    %159 = memref.load %arg1[%158, %c2_97] : memref<16x8xi32, #tpu.memory_space<smem>>
    %160 = arith.index_cast %159 : i32 to index
    %c0_98 = arith.constant 0 : index
    %161 = vector.load %arg4[%160, %c0_98] : memref<487x64xf32, #tpu.memory_space<vmem>>, vector<1x64xf32>
    %c19 = arith.constant 19 : index
    %c0_99 = arith.constant 0 : index
    %162 = vector.load %arg14[%c19, %c0_99] : memref<64x64xf32, #tpu.memory_space<vmem>>, vector<1x64xf32>
    tpu.vector_store %arg14[%c19, %c0_99], %161 {strides = array<i32>} : memref<64x64xf32, #tpu.memory_space<vmem>>, vector<1x64xf32>,
    %c3_i32_100 = arith.constant 3 : i32
    %163 = arith.addi %0, %c3_i32_100 : i32
    %164 = arith.index_cast %163 : i32 to index
    %c3_101 = arith.constant 3 : index
    %165 = memref.load %arg1[%164, %c3_101] : memref<16x8xi32, #tpu.memory_space<smem>>
    %166 = arith.index_cast %165 : i32 to index
    %c0_102 = arith.constant 0 : index
    %167 = vector.load %arg4[%166, %c0_102] : memref<487x64xf32, #tpu.memory_space<vmem>>, vector<1x64xf32>
    %c27 = arith.constant 27 : index
    %c0_103 = arith.constant 0 : index
    %168 = vector.load %arg14[%c27, %c0_103] : memref<64x64xf32, #tpu.memory_space<vmem>>, vector<1x64xf32>
    tpu.vector_store %arg14[%c27, %c0_103], %167 {strides = array<i32>} : memref<64x64xf32, #tpu.memory_space<vmem>>, vector<1x64xf32>,
    %c3_i32_104 = arith.constant 3 : i32
    %169 = arith.addi %0, %c3_i32_104 : i32
    %170 = arith.index_cast %169 : i32 to index
    %c4_105 = arith.constant 4 : index
    %171 = memref.load %arg1[%170, %c4_105] : memref<16x8xi32, #tpu.memory_space<smem>>
    %172 = arith.index_cast %171 : i32 to index
    %c0_106 = arith.constant 0 : index
    %173 = vector.load %arg4[%172, %c0_106] : memref<487x64xf32, #tpu.memory_space<vmem>>, vector<1x64xf32>
    %c35 = arith.constant 35 : index
    %c0_107 = arith.constant 0 : index
    %174 = vector.load %arg14[%c35, %c0_107] : memref<64x64xf32, #tpu.memory_space<vmem>>, vector<1x64xf32>
    tpu.vector_store %arg14[%c35, %c0_107], %173 {strides = array<i32>} : memref<64x64xf32, #tpu.memory_space<vmem>>, vector<1x64xf32>,
    %c3_i32_108 = arith.constant 3 : i32
    %175 = arith.addi %0, %c3_i32_108 : i32
    %176 = arith.index_cast %175 : i32 to index
    %c5_109 = arith.constant 5 : index
    %177 = memref.load %arg1[%176, %c5_109] : memref<16x8xi32, #tpu.memory_space<smem>>
    %178 = arith.index_cast %177 : i32 to index
    %c0_110 = arith.constant 0 : index
    %179 = vector.load %arg4[%178, %c0_110] : memref<487x64xf32, #tpu.memory_space<vmem>>, vector<1x64xf32>
    %c43 = arith.constant 43 : index
    %c0_111 = arith.constant 0 : index
    %180 = vector.load %arg14[%c43, %c0_111] : memref<64x64xf32, #tpu.memory_space<vmem>>, vector<1x64xf32>
    tpu.vector_store %arg14[%c43, %c0_111], %179 {strides = array<i32>} : memref<64x64xf32, #tpu.memory_space<vmem>>, vector<1x64xf32>,
    %c3_i32_112 = arith.constant 3 : i32
    %181 = arith.addi %0, %c3_i32_112 : i32
    %182 = arith.index_cast %181 : i32 to index
    %c6_113 = arith.constant 6 : index
    %183 = memref.load %arg1[%182, %c6_113] : memref<16x8xi32, #tpu.memory_space<smem>>
    %184 = arith.index_cast %183 : i32 to index
    %c0_114 = arith.constant 0 : index
    %185 = vector.load %arg4[%184, %c0_114] : memref<487x64xf32, #tpu.memory_space<vmem>>, vector<1x64xf32>
    %c51 = arith.constant 51 : index
    %c0_115 = arith.constant 0 : index
    %186 = vector.load %arg14[%c51, %c0_115] : memref<64x64xf32, #tpu.memory_space<vmem>>, vector<1x64xf32>
    tpu.vector_store %arg14[%c51, %c0_115], %185 {strides = array<i32>} : memref<64x64xf32, #tpu.memory_space<vmem>>, vector<1x64xf32>,
    %c3_i32_116 = arith.constant 3 : i32
    %187 = arith.addi %0, %c3_i32_116 : i32
    %188 = arith.index_cast %187 : i32 to index
    %c7_117 = arith.constant 7 : index
    %189 = memref.load %arg1[%188, %c7_117] : memref<16x8xi32, #tpu.memory_space<smem>>
    %190 = arith.index_cast %189 : i32 to index
    %c0_118 = arith.constant 0 : index
    %191 = vector.load %arg4[%190, %c0_118] : memref<487x64xf32, #tpu.memory_space<vmem>>, vector<1x64xf32>
    %c59 = arith.constant 59 : index
    %c0_119 = arith.constant 0 : index
    %192 = vector.load %arg14[%c59, %c0_119] : memref<64x64xf32, #tpu.memory_space<vmem>>, vector<1x64xf32>
    tpu.vector_store %arg14[%c59, %c0_119], %191 {strides = array<i32>} : memref<64x64xf32, #tpu.memory_space<vmem>>, vector<1x64xf32>,
    %c4_i32 = arith.constant 4 : i32
    %193 = arith.addi %0, %c4_i32 : i32
    %194 = arith.index_cast %193 : i32 to index
    %c0_120 = arith.constant 0 : index
    %195 = memref.load %arg1[%194, %c0_120] : memref<16x8xi32, #tpu.memory_space<smem>>
    %196 = arith.index_cast %195 : i32 to index
    %c0_121 = arith.constant 0 : index
    %197 = vector.load %arg4[%196, %c0_121] : memref<487x64xf32, #tpu.memory_space<vmem>>, vector<1x64xf32>
    %c4_122 = arith.constant 4 : index
    %c0_123 = arith.constant 0 : index
    %198 = vector.load %arg14[%c4_122, %c0_123] : memref<64x64xf32, #tpu.memory_space<vmem>>, vector<1x64xf32>
    tpu.vector_store %arg14[%c4_122, %c0_123], %197 {strides = array<i32>} : memref<64x64xf32, #tpu.memory_space<vmem>>, vector<1x64xf32>,
    %c4_i32_124 = arith.constant 4 : i32
    %199 = arith.addi %0, %c4_i32_124 : i32
    %200 = arith.index_cast %199 : i32 to index
    %c1_125 = arith.constant 1 : index
    %201 = memref.load %arg1[%200, %c1_125] : memref<16x8xi32, #tpu.memory_space<smem>>
    %202 = arith.index_cast %201 : i32 to index
    %c0_126 = arith.constant 0 : index
    %203 = vector.load %arg4[%202, %c0_126] : memref<487x64xf32, #tpu.memory_space<vmem>>, vector<1x64xf32>
    %c12 = arith.constant 12 : index
    %c0_127 = arith.constant 0 : index
    %204 = vector.load %arg14[%c12, %c0_127] : memref<64x64xf32, #tpu.memory_space<vmem>>, vector<1x64xf32>
    tpu.vector_store %arg14[%c12, %c0_127], %203 {strides = array<i32>} : memref<64x64xf32, #tpu.memory_space<vmem>>, vector<1x64xf32>,
    %c4_i32_128 = arith.constant 4 : i32
    %205 = arith.addi %0, %c4_i32_128 : i32
    %206 = arith.index_cast %205 : i32 to index
    %c2_129 = arith.constant 2 : index
    %207 = memref.load %arg1[%206, %c2_129] : memref<16x8xi32, #tpu.memory_space<smem>>
    %208 = arith.index_cast %207 : i32 to index
    %c0_130 = arith.constant 0 : index
    %209 = vector.load %arg4[%208, %c0_130] : memref<487x64xf32, #tpu.memory_space<vmem>>, vector<1x64xf32>
    %c20 = arith.constant 20 : index
    %c0_131 = arith.constant 0 : index
    %210 = vector.load %arg14[%c20, %c0_131] : memref<64x64xf32, #tpu.memory_space<vmem>>, vector<1x64xf32>
    tpu.vector_store %arg14[%c20, %c0_131], %209 {strides = array<i32>} : memref<64x64xf32, #tpu.memory_space<vmem>>, vector<1x64xf32>,
    %c4_i32_132 = arith.constant 4 : i32
    %211 = arith.addi %0, %c4_i32_132 : i32
    %212 = arith.index_cast %211 : i32 to index
    %c3_133 = arith.constant 3 : index
    %213 = memref.load %arg1[%212, %c3_133] : memref<16x8xi32, #tpu.memory_space<smem>>
    %214 = arith.index_cast %213 : i32 to index
    %c0_134 = arith.constant 0 : index
    %215 = vector.load %arg4[%214, %c0_134] : memref<487x64xf32, #tpu.memory_space<vmem>>, vector<1x64xf32>
    %c28 = arith.constant 28 : index
    %c0_135 = arith.constant 0 : index
    %216 = vector.load %arg14[%c28, %c0_135] : memref<64x64xf32, #tpu.memory_space<vmem>>, vector<1x64xf32>
    tpu.vector_store %arg14[%c28, %c0_135], %215 {strides = array<i32>} : memref<64x64xf32, #tpu.memory_space<vmem>>, vector<1x64xf32>,
    %c4_i32_136 = arith.constant 4 : i32
    %217 = arith.addi %0, %c4_i32_136 : i32
    %218 = arith.index_cast %217 : i32 to index
    %c4_137 = arith.constant 4 : index
    %219 = memref.load %arg1[%218, %c4_137] : memref<16x8xi32, #tpu.memory_space<smem>>
    %220 = arith.index_cast %219 : i32 to index
    %c0_138 = arith.constant 0 : index
    %221 = vector.load %arg4[%220, %c0_138] : memref<487x64xf32, #tpu.memory_space<vmem>>, vector<1x64xf32>
    %c36 = arith.constant 36 : index
    %c0_139 = arith.constant 0 : index
    %222 = vector.load %arg14[%c36, %c0_139] : memref<64x64xf32, #tpu.memory_space<vmem>>, vector<1x64xf32>
    tpu.vector_store %arg14[%c36, %c0_139], %221 {strides = array<i32>} : memref<64x64xf32, #tpu.memory_space<vmem>>, vector<1x64xf32>,
    %c4_i32_140 = arith.constant 4 : i32
    %223 = arith.addi %0, %c4_i32_140 : i32
    %224 = arith.index_cast %223 : i32 to index
    %c5_141 = arith.constant 5 : index
    %225 = memref.load %arg1[%224, %c5_141] : memref<16x8xi32, #tpu.memory_space<smem>>
    %226 = arith.index_cast %225 : i32 to index
    %c0_142 = arith.constant 0 : index
    %227 = vector.load %arg4[%226, %c0_142] : memref<487x64xf32, #tpu.memory_space<vmem>>, vector<1x64xf32>
    %c44 = arith.constant 44 : index
    %c0_143 = arith.constant 0 : index
    %228 = vector.load %arg14[%c44, %c0_143] : memref<64x64xf32, #tpu.memory_space<vmem>>, vector<1x64xf32>
    tpu.vector_store %arg14[%c44, %c0_143], %227 {strides = array<i32>} : memref<64x64xf32, #tpu.memory_space<vmem>>, vector<1x64xf32>,
    %c4_i32_144 = arith.constant 4 : i32
    %229 = arith.addi %0, %c4_i32_144 : i32
    %230 = arith.index_cast %229 : i32 to index
    %c6_145 = arith.constant 6 : index
    %231 = memref.load %arg1[%230, %c6_145] : memref<16x8xi32, #tpu.memory_space<smem>>
    %232 = arith.index_cast %231 : i32 to index
    %c0_146 = arith.constant 0 : index
    %233 = vector.load %arg4[%232, %c0_146] : memref<487x64xf32, #tpu.memory_space<vmem>>, vector<1x64xf32>
    %c52 = arith.constant 52 : index
    %c0_147 = arith.constant 0 : index
    %234 = vector.load %arg14[%c52, %c0_147] : memref<64x64xf32, #tpu.memory_space<vmem>>, vector<1x64xf32>
    tpu.vector_store %arg14[%c52, %c0_147], %233 {strides = array<i32>} : memref<64x64xf32, #tpu.memory_space<vmem>>, vector<1x64xf32>,
    %c4_i32_148 = arith.constant 4 : i32
    %235 = arith.addi %0, %c4_i32_148 : i32
    %236 = arith.index_cast %235 : i32 to index
    %c7_149 = arith.constant 7 : index
    %237 = memref.load %arg1[%236, %c7_149] : memref<16x8xi32, #tpu.memory_space<smem>>
    %238 = arith.index_cast %237 : i32 to index
    %c0_150 = arith.constant 0 : index
    %239 = vector.load %arg4[%238, %c0_150] : memref<487x64xf32, #tpu.memory_space<vmem>>, vector<1x64xf32>
    %c60 = arith.constant 60 : index
    %c0_151 = arith.constant 0 : index
    %240 = vector.load %arg14[%c60, %c0_151] : memref<64x64xf32, #tpu.memory_space<vmem>>, vector<1x64xf32>
    tpu.vector_store %arg14[%c60, %c0_151], %239 {strides = array<i32>} : memref<64x64xf32, #tpu.memory_space<vmem>>, vector<1x64xf32>,
    %c5_i32 = arith.constant 5 : i32
    %241 = arith.addi %0, %c5_i32 : i32
    %242 = arith.index_cast %241 : i32 to index
    %c0_152 = arith.constant 0 : index
    %243 = memref.load %arg1[%242, %c0_152] : memref<16x8xi32, #tpu.memory_space<smem>>
    %244 = arith.index_cast %243 : i32 to index
    %c0_153 = arith.constant 0 : index
    %245 = vector.load %arg4[%244, %c0_153] : memref<487x64xf32, #tpu.memory_space<vmem>>, vector<1x64xf32>
    %c5_154 = arith.constant 5 : index
    %c0_155 = arith.constant 0 : index
    %246 = vector.load %arg14[%c5_154, %c0_155] : memref<64x64xf32, #tpu.memory_space<vmem>>, vector<1x64xf32>
    tpu.vector_store %arg14[%c5_154, %c0_155], %245 {strides = array<i32>} : memref<64x64xf32, #tpu.memory_space<vmem>>, vector<1x64xf32>,
    %c5_i32_156 = arith.constant 5 : i32
    %247 = arith.addi %0, %c5_i32_156 : i32
    %248 = arith.index_cast %247 : i32 to index
    %c1_157 = arith.constant 1 : index
    %249 = memref.load %arg1[%248, %c1_157] : memref<16x8xi32, #tpu.memory_space<smem>>
    %250 = arith.index_cast %249 : i32 to index
    %c0_158 = arith.constant 0 : index
    %251 = vector.load %arg4[%250, %c0_158] : memref<487x64xf32, #tpu.memory_space<vmem>>, vector<1x64xf32>
    %c13 = arith.constant 13 : index
    %c0_159 = arith.constant 0 : index
    %252 = vector.load %arg14[%c13, %c0_159] : memref<64x64xf32, #tpu.memory_space<vmem>>, vector<1x64xf32>
    tpu.vector_store %arg14[%c13, %c0_159], %251 {strides = array<i32>} : memref<64x64xf32, #tpu.memory_space<vmem>>, vector<1x64xf32>,
    %c5_i32_160 = arith.constant 5 : i32
    %253 = arith.addi %0, %c5_i32_160 : i32
    %254 = arith.index_cast %253 : i32 to index
    %c2_161 = arith.constant 2 : index
    %255 = memref.load %arg1[%254, %c2_161] : memref<16x8xi32, #tpu.memory_space<smem>>
    %256 = arith.index_cast %255 : i32 to index
    %c0_162 = arith.constant 0 : index
    %257 = vector.load %arg4[%256, %c0_162] : memref<487x64xf32, #tpu.memory_space<vmem>>, vector<1x64xf32>
    %c21 = arith.constant 21 : index
    %c0_163 = arith.constant 0 : index
    %258 = vector.load %arg14[%c21, %c0_163] : memref<64x64xf32, #tpu.memory_space<vmem>>, vector<1x64xf32>
    tpu.vector_store %arg14[%c21, %c0_163], %257 {strides = array<i32>} : memref<64x64xf32, #tpu.memory_space<vmem>>, vector<1x64xf32>,
    %c5_i32_164 = arith.constant 5 : i32
    %259 = arith.addi %0, %c5_i32_164 : i32
    %260 = arith.index_cast %259 : i32 to index
    %c3_165 = arith.constant 3 : index
    %261 = memref.load %arg1[%260, %c3_165] : memref<16x8xi32, #tpu.memory_space<smem>>
    %262 = arith.index_cast %261 : i32 to index
    %c0_166 = arith.constant 0 : index
    %263 = vector.load %arg4[%262, %c0_166] : memref<487x64xf32, #tpu.memory_space<vmem>>, vector<1x64xf32>
    %c29 = arith.constant 29 : index
    %c0_167 = arith.constant 0 : index
    %264 = vector.load %arg14[%c29, %c0_167] : memref<64x64xf32, #tpu.memory_space<vmem>>, vector<1x64xf32>
    tpu.vector_store %arg14[%c29, %c0_167], %263 {strides = array<i32>} : memref<64x64xf32, #tpu.memory_space<vmem>>, vector<1x64xf32>,
    %c5_i32_168 = arith.constant 5 : i32
    %265 = arith.addi %0, %c5_i32_168 : i32
    %266 = arith.index_cast %265 : i32 to index
    %c4_169 = arith.constant 4 : index
    %267 = memref.load %arg1[%266, %c4_169] : memref<16x8xi32, #tpu.memory_space<smem>>
    %268 = arith.index_cast %267 : i32 to index
    %c0_170 = arith.constant 0 : index
    %269 = vector.load %arg4[%268, %c0_170] : memref<487x64xf32, #tpu.memory_space<vmem>>, vector<1x64xf32>
    %c37 = arith.constant 37 : index
    %c0_171 = arith.constant 0 : index
    %270 = vector.load %arg14[%c37, %c0_171] : memref<64x64xf32, #tpu.memory_space<vmem>>, vector<1x64xf32>
    tpu.vector_store %arg14[%c37, %c0_171], %269 {strides = array<i32>} : memref<64x64xf32, #tpu.memory_space<vmem>>, vector<1x64xf32>,
    %c5_i32_172 = arith.constant 5 : i32
    %271 = arith.addi %0, %c5_i32_172 : i32
    %272 = arith.index_cast %271 : i32 to index
    %c5_173 = arith.constant 5 : index
    %273 = memref.load %arg1[%272, %c5_173] : memref<16x8xi32, #tpu.memory_space<smem>>
    %274 = arith.index_cast %273 : i32 to index
    %c0_174 = arith.constant 0 : index
    %275 = vector.load %arg4[%274, %c0_174] : memref<487x64xf32, #tpu.memory_space<vmem>>, vector<1x64xf32>
    %c45 = arith.constant 45 : index
    %c0_175 = arith.constant 0 : index
    %276 = vector.load %arg14[%c45, %c0_175] : memref<64x64xf32, #tpu.memory_space<vmem>>, vector<1x64xf32>
    tpu.vector_store %arg14[%c45, %c0_175], %275 {strides = array<i32>} : memref<64x64xf32, #tpu.memory_space<vmem>>, vector<1x64xf32>,
    %c5_i32_176 = arith.constant 5 : i32
    %277 = arith.addi %0, %c5_i32_176 : i32
    %278 = arith.index_cast %277 : i32 to index
    %c6_177 = arith.constant 6 : index
    %279 = memref.load %arg1[%278, %c6_177] : memref<16x8xi32, #tpu.memory_space<smem>>
    %280 = arith.index_cast %279 : i32 to index
    %c0_178 = arith.constant 0 : index
    %281 = vector.load %arg4[%280, %c0_178] : memref<487x64xf32, #tpu.memory_space<vmem>>, vector<1x64xf32>
    %c53 = arith.constant 53 : index
    %c0_179 = arith.constant 0 : index
    %282 = vector.load %arg14[%c53, %c0_179] : memref<64x64xf32, #tpu.memory_space<vmem>>, vector<1x64xf32>
    tpu.vector_store %arg14[%c53, %c0_179], %281 {strides = array<i32>} : memref<64x64xf32, #tpu.memory_space<vmem>>, vector<1x64xf32>,
    %c5_i32_180 = arith.constant 5 : i32
    %283 = arith.addi %0, %c5_i32_180 : i32
    %284 = arith.index_cast %283 : i32 to index
    %c7_181 = arith.constant 7 : index
    %285 = memref.load %arg1[%284, %c7_181] : memref<16x8xi32, #tpu.memory_space<smem>>
    %286 = arith.index_cast %285 : i32 to index
    %c0_182 = arith.constant 0 : index
    %287 = vector.load %arg4[%286, %c0_182] : memref<487x64xf32, #tpu.memory_space<vmem>>, vector<1x64xf32>
    %c61 = arith.constant 61 : index
    %c0_183 = arith.constant 0 : index
    %288 = vector.load %arg14[%c61, %c0_183] : memref<64x64xf32, #tpu.memory_space<vmem>>, vector<1x64xf32>
    tpu.vector_store %arg14[%c61, %c0_183], %287 {strides = array<i32>} : memref<64x64xf32, #tpu.memory_space<vmem>>, vector<1x64xf32>,
    %c6_i32 = arith.constant 6 : i32
    %289 = arith.addi %0, %c6_i32 : i32
    %290 = arith.index_cast %289 : i32 to index
    %c0_184 = arith.constant 0 : index
    %291 = memref.load %arg1[%290, %c0_184] : memref<16x8xi32, #tpu.memory_space<smem>>
    %292 = arith.index_cast %291 : i32 to index
    %c0_185 = arith.constant 0 : index
    %293 = vector.load %arg4[%292, %c0_185] : memref<487x64xf32, #tpu.memory_space<vmem>>, vector<1x64xf32>
    %c6_186 = arith.constant 6 : index
    %c0_187 = arith.constant 0 : index
    %294 = vector.load %arg14[%c6_186, %c0_187] : memref<64x64xf32, #tpu.memory_space<vmem>>, vector<1x64xf32>
    tpu.vector_store %arg14[%c6_186, %c0_187], %293 {strides = array<i32>} : memref<64x64xf32, #tpu.memory_space<vmem>>, vector<1x64xf32>,
    %c6_i32_188 = arith.constant 6 : i32
    %295 = arith.addi %0, %c6_i32_188 : i32
    %296 = arith.index_cast %295 : i32 to index
    %c1_189 = arith.constant 1 : index
    %297 = memref.load %arg1[%296, %c1_189] : memref<16x8xi32, #tpu.memory_space<smem>>
    %298 = arith.index_cast %297 : i32 to index
    %c0_190 = arith.constant 0 : index
    %299 = vector.load %arg4[%298, %c0_190] : memref<487x64xf32, #tpu.memory_space<vmem>>, vector<1x64xf32>
    %c14 = arith.constant 14 : index
    %c0_191 = arith.constant 0 : index
    %300 = vector.load %arg14[%c14, %c0_191] : memref<64x64xf32, #tpu.memory_space<vmem>>, vector<1x64xf32>
    tpu.vector_store %arg14[%c14, %c0_191], %299 {strides = array<i32>} : memref<64x64xf32, #tpu.memory_space<vmem>>, vector<1x64xf32>,
    %c6_i32_192 = arith.constant 6 : i32
    %301 = arith.addi %0, %c6_i32_192 : i32
    %302 = arith.index_cast %301 : i32 to index
    %c2_193 = arith.constant 2 : index
    %303 = memref.load %arg1[%302, %c2_193] : memref<16x8xi32, #tpu.memory_space<smem>>
    %304 = arith.index_cast %303 : i32 to index
    %c0_194 = arith.constant 0 : index
    %305 = vector.load %arg4[%304, %c0_194] : memref<487x64xf32, #tpu.memory_space<vmem>>, vector<1x64xf32>
    %c22 = arith.constant 22 : index
    %c0_195 = arith.constant 0 : index
    %306 = vector.load %arg14[%c22, %c0_195] : memref<64x64xf32, #tpu.memory_space<vmem>>, vector<1x64xf32>
    tpu.vector_store %arg14[%c22, %c0_195], %305 {strides = array<i32>} : memref<64x64xf32, #tpu.memory_space<vmem>>, vector<1x64xf32>,
    %c6_i32_196 = arith.constant 6 : i32
    %307 = arith.addi %0, %c6_i32_196 : i32
    %308 = arith.index_cast %307 : i32 to index
    %c3_197 = arith.constant 3 : index
    %309 = memref.load %arg1[%308, %c3_197] : memref<16x8xi32, #tpu.memory_space<smem>>
    %310 = arith.index_cast %309 : i32 to index
    %c0_198 = arith.constant 0 : index
    %311 = vector.load %arg4[%310, %c0_198] : memref<487x64xf32, #tpu.memory_space<vmem>>, vector<1x64xf32>
    %c30 = arith.constant 30 : index
    %c0_199 = arith.constant 0 : index
    %312 = vector.load %arg14[%c30, %c0_199] : memref<64x64xf32, #tpu.memory_space<vmem>>, vector<1x64xf32>
    tpu.vector_store %arg14[%c30, %c0_199], %311 {strides = array<i32>} : memref<64x64xf32, #tpu.memory_space<vmem>>, vector<1x64xf32>,
    %c6_i32_200 = arith.constant 6 : i32
    %313 = arith.addi %0, %c6_i32_200 : i32
    %314 = arith.index_cast %313 : i32 to index
    %c4_201 = arith.constant 4 : index
    %315 = memref.load %arg1[%314, %c4_201] : memref<16x8xi32, #tpu.memory_space<smem>>
    %316 = arith.index_cast %315 : i32 to index
    %c0_202 = arith.constant 0 : index
    %317 = vector.load %arg4[%316, %c0_202] : memref<487x64xf32, #tpu.memory_space<vmem>>, vector<1x64xf32>
    %c38 = arith.constant 38 : index
    %c0_203 = arith.constant 0 : index
    %318 = vector.load %arg14[%c38, %c0_203] : memref<64x64xf32, #tpu.memory_space<vmem>>, vector<1x64xf32>
    tpu.vector_store %arg14[%c38, %c0_203], %317 {strides = array<i32>} : memref<64x64xf32, #tpu.memory_space<vmem>>, vector<1x64xf32>,
    %c6_i32_204 = arith.constant 6 : i32
    %319 = arith.addi %0, %c6_i32_204 : i32
    %320 = arith.index_cast %319 : i32 to index
    %c5_205 = arith.constant 5 : index
    %321 = memref.load %arg1[%320, %c5_205] : memref<16x8xi32, #tpu.memory_space<smem>>
    %322 = arith.index_cast %321 : i32 to index
    %c0_206 = arith.constant 0 : index
    %323 = vector.load %arg4[%322, %c0_206] : memref<487x64xf32, #tpu.memory_space<vmem>>, vector<1x64xf32>
    %c46 = arith.constant 46 : index
    %c0_207 = arith.constant 0 : index
    %324 = vector.load %arg14[%c46, %c0_207] : memref<64x64xf32, #tpu.memory_space<vmem>>, vector<1x64xf32>
    tpu.vector_store %arg14[%c46, %c0_207], %323 {strides = array<i32>} : memref<64x64xf32, #tpu.memory_space<vmem>>, vector<1x64xf32>,
    %c6_i32_208 = arith.constant 6 : i32
    %325 = arith.addi %0, %c6_i32_208 : i32
    %326 = arith.index_cast %325 : i32 to index
    %c6_209 = arith.constant 6 : index
    %327 = memref.load %arg1[%326, %c6_209] : memref<16x8xi32, #tpu.memory_space<smem>>
    %328 = arith.index_cast %327 : i32 to index
    %c0_210 = arith.constant 0 : index
    %329 = vector.load %arg4[%328, %c0_210] : memref<487x64xf32, #tpu.memory_space<vmem>>, vector<1x64xf32>
    %c54 = arith.constant 54 : index
    %c0_211 = arith.constant 0 : index
    %330 = vector.load %arg14[%c54, %c0_211] : memref<64x64xf32, #tpu.memory_space<vmem>>, vector<1x64xf32>
    tpu.vector_store %arg14[%c54, %c0_211], %329 {strides = array<i32>} : memref<64x64xf32, #tpu.memory_space<vmem>>, vector<1x64xf32>,
    %c6_i32_212 = arith.constant 6 : i32
    %331 = arith.addi %0, %c6_i32_212 : i32
    %332 = arith.index_cast %331 : i32 to index
    %c7_213 = arith.constant 7 : index
    %333 = memref.load %arg1[%332, %c7_213] : memref<16x8xi32, #tpu.memory_space<smem>>
    %334 = arith.index_cast %333 : i32 to index
    %c0_214 = arith.constant 0 : index
    %335 = vector.load %arg4[%334, %c0_214] : memref<487x64xf32, #tpu.memory_space<vmem>>, vector<1x64xf32>
    %c62 = arith.constant 62 : index
    %c0_215 = arith.constant 0 : index
    %336 = vector.load %arg14[%c62, %c0_215] : memref<64x64xf32, #tpu.memory_space<vmem>>, vector<1x64xf32>
    tpu.vector_store %arg14[%c62, %c0_215], %335 {strides = array<i32>} : memref<64x64xf32, #tpu.memory_space<vmem>>, vector<1x64xf32>,
    %c7_i32 = arith.constant 7 : i32
    %337 = arith.addi %0, %c7_i32 : i32
    %338 = arith.index_cast %337 : i32 to index
    %c0_216 = arith.constant 0 : index
    %339 = memref.load %arg1[%338, %c0_216] : memref<16x8xi32, #tpu.memory_space<smem>>
    %340 = arith.index_cast %339 : i32 to index
    %c0_217 = arith.constant 0 : index
    %341 = vector.load %arg4[%340, %c0_217] : memref<487x64xf32, #tpu.memory_space<vmem>>, vector<1x64xf32>
    %c7_218 = arith.constant 7 : index
    %c0_219 = arith.constant 0 : index
    %342 = vector.load %arg14[%c7_218, %c0_219] : memref<64x64xf32, #tpu.memory_space<vmem>>, vector<1x64xf32>
    tpu.vector_store %arg14[%c7_218, %c0_219], %341 {strides = array<i32>} : memref<64x64xf32, #tpu.memory_space<vmem>>, vector<1x64xf32>,
    %c7_i32_220 = arith.constant 7 : i32
    %343 = arith.addi %0, %c7_i32_220 : i32
    %344 = arith.index_cast %343 : i32 to index
    %c1_221 = arith.constant 1 : index
    %345 = memref.load %arg1[%344, %c1_221] : memref<16x8xi32, #tpu.memory_space<smem>>
    %346 = arith.index_cast %345 : i32 to index
    %c0_222 = arith.constant 0 : index
    %347 = vector.load %arg4[%346, %c0_222] : memref<487x64xf32, #tpu.memory_space<vmem>>, vector<1x64xf32>
    %c15 = arith.constant 15 : index
    %c0_223 = arith.constant 0 : index
    %348 = vector.load %arg14[%c15, %c0_223] : memref<64x64xf32, #tpu.memory_space<vmem>>, vector<1x64xf32>
    tpu.vector_store %arg14[%c15, %c0_223], %347 {strides = array<i32>} : memref<64x64xf32, #tpu.memory_space<vmem>>, vector<1x64xf32>,
    %c7_i32_224 = arith.constant 7 : i32
    %349 = arith.addi %0, %c7_i32_224 : i32
    %350 = arith.index_cast %349 : i32 to index
    %c2_225 = arith.constant 2 : index
    %351 = memref.load %arg1[%350, %c2_225] : memref<16x8xi32, #tpu.memory_space<smem>>
    %352 = arith.index_cast %351 : i32 to index
    %c0_226 = arith.constant 0 : index
    %353 = vector.load %arg4[%352, %c0_226] : memref<487x64xf32, #tpu.memory_space<vmem>>, vector<1x64xf32>
    %c23 = arith.constant 23 : index
    %c0_227 = arith.constant 0 : index
    %354 = vector.load %arg14[%c23, %c0_227] : memref<64x64xf32, #tpu.memory_space<vmem>>, vector<1x64xf32>
    tpu.vector_store %arg14[%c23, %c0_227], %353 {strides = array<i32>} : memref<64x64xf32, #tpu.memory_space<vmem>>, vector<1x64xf32>,
    %c7_i32_228 = arith.constant 7 : i32
    %355 = arith.addi %0, %c7_i32_228 : i32
    %356 = arith.index_cast %355 : i32 to index
    %c3_229 = arith.constant 3 : index
    %357 = memref.load %arg1[%356, %c3_229] : memref<16x8xi32, #tpu.memory_space<smem>>
    %358 = arith.index_cast %357 : i32 to index
    %c0_230 = arith.constant 0 : index
    %359 = vector.load %arg4[%358, %c0_230] : memref<487x64xf32, #tpu.memory_space<vmem>>, vector<1x64xf32>
    %c31 = arith.constant 31 : index
    %c0_231 = arith.constant 0 : index
    %360 = vector.load %arg14[%c31, %c0_231] : memref<64x64xf32, #tpu.memory_space<vmem>>, vector<1x64xf32>
    tpu.vector_store %arg14[%c31, %c0_231], %359 {strides = array<i32>} : memref<64x64xf32, #tpu.memory_space<vmem>>, vector<1x64xf32>,
    %c7_i32_232 = arith.constant 7 : i32
    %361 = arith.addi %0, %c7_i32_232 : i32
    %362 = arith.index_cast %361 : i32 to index
    %c4_233 = arith.constant 4 : index
    %363 = memref.load %arg1[%362, %c4_233] : memref<16x8xi32, #tpu.memory_space<smem>>
    %364 = arith.index_cast %363 : i32 to index
    %c0_234 = arith.constant 0 : index
    %365 = vector.load %arg4[%364, %c0_234] : memref<487x64xf32, #tpu.memory_space<vmem>>, vector<1x64xf32>
    %c39 = arith.constant 39 : index
    %c0_235 = arith.constant 0 : index
    %366 = vector.load %arg14[%c39, %c0_235] : memref<64x64xf32, #tpu.memory_space<vmem>>, vector<1x64xf32>
    tpu.vector_store %arg14[%c39, %c0_235], %365 {strides = array<i32>} : memref<64x64xf32, #tpu.memory_space<vmem>>, vector<1x64xf32>,
    %c7_i32_236 = arith.constant 7 : i32
    %367 = arith.addi %0, %c7_i32_236 : i32
    %368 = arith.index_cast %367 : i32 to index
    %c5_237 = arith.constant 5 : index
    %369 = memref.load %arg1[%368, %c5_237] : memref<16x8xi32, #tpu.memory_space<smem>>
    %370 = arith.index_cast %369 : i32 to index
    %c0_238 = arith.constant 0 : index
    %371 = vector.load %arg4[%370, %c0_238] : memref<487x64xf32, #tpu.memory_space<vmem>>, vector<1x64xf32>
    %c47 = arith.constant 47 : index
    %c0_239 = arith.constant 0 : index
    %372 = vector.load %arg14[%c47, %c0_239] : memref<64x64xf32, #tpu.memory_space<vmem>>, vector<1x64xf32>
    tpu.vector_store %arg14[%c47, %c0_239], %371 {strides = array<i32>} : memref<64x64xf32, #tpu.memory_space<vmem>>, vector<1x64xf32>,
    %c7_i32_240 = arith.constant 7 : i32
    %373 = arith.addi %0, %c7_i32_240 : i32
    %374 = arith.index_cast %373 : i32 to index
    %c6_241 = arith.constant 6 : index
    %375 = memref.load %arg1[%374, %c6_241] : memref<16x8xi32, #tpu.memory_space<smem>>
    %376 = arith.index_cast %375 : i32 to index
    %c0_242 = arith.constant 0 : index
    %377 = vector.load %arg4[%376, %c0_242] : memref<487x64xf32, #tpu.memory_space<vmem>>, vector<1x64xf32>
    %c55 = arith.constant 55 : index
    %c0_243 = arith.constant 0 : index
    %378 = vector.load %arg14[%c55, %c0_243] : memref<64x64xf32, #tpu.memory_space<vmem>>, vector<1x64xf32>
    tpu.vector_store %arg14[%c55, %c0_243], %377 {strides = array<i32>} : memref<64x64xf32, #tpu.memory_space<vmem>>, vector<1x64xf32>,
    %c7_i32_244 = arith.constant 7 : i32
    %379 = arith.addi %0, %c7_i32_244 : i32
    %380 = arith.index_cast %379 : i32 to index
    %c7_245 = arith.constant 7 : index
    %381 = memref.load %arg1[%380, %c7_245] : memref<16x8xi32, #tpu.memory_space<smem>>
    %382 = arith.index_cast %381 : i32 to index
    %c0_246 = arith.constant 0 : index
    %383 = vector.load %arg4[%382, %c0_246] : memref<487x64xf32, #tpu.memory_space<vmem>>, vector<1x64xf32>
    %c63 = arith.constant 63 : index
    %c0_247 = arith.constant 0 : index
    %384 = vector.load %arg14[%c63, %c0_247] : memref<64x64xf32, #tpu.memory_space<vmem>>, vector<1x64xf32>
    tpu.vector_store %arg14[%c63, %c0_247], %383 {strides = array<i32>} : memref<64x64xf32, #tpu.memory_space<vmem>>, vector<1x64xf32>,
    %c0_i32_248 = arith.constant 0 : i32
    %385 = arith.addi %0, %c0_i32_248 : i32
    %386 = arith.index_cast %385 : i32 to index
    %c0_249 = arith.constant 0 : index
    %387 = memref.load %arg3[%386, %c0_249] : memref<16x4xi32, #tpu.memory_space<smem>>
    %388 = arith.index_cast %387 : i32 to index
    %c0_250 = arith.constant 0 : index
    %389 = vector.load %arg5[%388, %c0_250] : memref<487x64xf32, #tpu.memory_space<vmem>>, vector<1x64xf32>
    %c0_251 = arith.constant 0 : index
    %c0_252 = arith.constant 0 : index
    %390 = vector.load %arg16[%c0_251, %c0_252] : memref<32x64xf32, #tpu.memory_space<vmem>>, vector<1x64xf32>
    tpu.vector_store %arg16[%c0_251, %c0_252], %389 {strides = array<i32>} : memref<32x64xf32, #tpu.memory_space<vmem>>, vector<1x64xf32>,
    %c0_i32_253 = arith.constant 0 : i32
    %391 = arith.addi %0, %c0_i32_253 : i32
    %392 = arith.index_cast %391 : i32 to index
    %c1_254 = arith.constant 1 : index
    %393 = memref.load %arg3[%392, %c1_254] : memref<16x4xi32, #tpu.memory_space<smem>>
    %394 = arith.index_cast %393 : i32 to index
    %c0_255 = arith.constant 0 : index
    %395 = vector.load %arg5[%394, %c0_255] : memref<487x64xf32, #tpu.memory_space<vmem>>, vector<1x64xf32>
    %c8_256 = arith.constant 8 : index
    %c0_257 = arith.constant 0 : index
    %396 = vector.load %arg16[%c8_256, %c0_257] : memref<32x64xf32, #tpu.memory_space<vmem>>, vector<1x64xf32>
    tpu.vector_store %arg16[%c8_256, %c0_257], %395 {strides = array<i32>} : memref<32x64xf32, #tpu.memory_space<vmem>>, vector<1x64xf32>,
    %c0_i32_258 = arith.constant 0 : i32
    %397 = arith.addi %0, %c0_i32_258 : i32
    %398 = arith.index_cast %397 : i32 to index
    %c2_259 = arith.constant 2 : index
    %399 = memref.load %arg3[%398, %c2_259] : memref<16x4xi32, #tpu.memory_space<smem>>
    %400 = arith.index_cast %399 : i32 to index
    %c0_260 = arith.constant 0 : index
    %401 = vector.load %arg5[%400, %c0_260] : memref<487x64xf32, #tpu.memory_space<vmem>>, vector<1x64xf32>
    %c16_261 = arith.constant 16 : index
    %c0_262 = arith.constant 0 : index
    %402 = vector.load %arg16[%c16_261, %c0_262] : memref<32x64xf32, #tpu.memory_space<vmem>>, vector<1x64xf32>
    tpu.vector_store %arg16[%c16_261, %c0_262], %401 {strides = array<i32>} : memref<32x64xf32, #tpu.memory_space<vmem>>, vector<1x64xf32>,
    %c0_i32_263 = arith.constant 0 : i32
    %403 = arith.addi %0, %c0_i32_263 : i32
    %404 = arith.index_cast %403 : i32 to index
    %c3_264 = arith.constant 3 : index
    %405 = memref.load %arg3[%404, %c3_264] : memref<16x4xi32, #tpu.memory_space<smem>>
    %406 = arith.index_cast %405 : i32 to index
    %c0_265 = arith.constant 0 : index
    %407 = vector.load %arg5[%406, %c0_265] : memref<487x64xf32, #tpu.memory_space<vmem>>, vector<1x64xf32>
    %c24_266 = arith.constant 24 : index
    %c0_267 = arith.constant 0 : index
    %408 = vector.load %arg16[%c24_266, %c0_267] : memref<32x64xf32, #tpu.memory_space<vmem>>, vector<1x64xf32>
    tpu.vector_store %arg16[%c24_266, %c0_267], %407 {strides = array<i32>} : memref<32x64xf32, #tpu.memory_space<vmem>>, vector<1x64xf32>,
    %c1_i32_268 = arith.constant 1 : i32
    %409 = arith.addi %0, %c1_i32_268 : i32
    %410 = arith.index_cast %409 : i32 to index
    %c0_269 = arith.constant 0 : index
    %411 = memref.load %arg3[%410, %c0_269] : memref<16x4xi32, #tpu.memory_space<smem>>
    %412 = arith.index_cast %411 : i32 to index
    %c0_270 = arith.constant 0 : index
    %413 = vector.load %arg5[%412, %c0_270] : memref<487x64xf32, #tpu.memory_space<vmem>>, vector<1x64xf32>
    %c1_271 = arith.constant 1 : index
    %c0_272 = arith.constant 0 : index
    %414 = vector.load %arg16[%c1_271, %c0_272] : memref<32x64xf32, #tpu.memory_space<vmem>>, vector<1x64xf32>
    tpu.vector_store %arg16[%c1_271, %c0_272], %413 {strides = array<i32>} : memref<32x64xf32, #tpu.memory_space<vmem>>, vector<1x64xf32>,
    %c1_i32_273 = arith.constant 1 : i32
    %415 = arith.addi %0, %c1_i32_273 : i32
    %416 = arith.index_cast %415 : i32 to index
    %c1_274 = arith.constant 1 : index
    %417 = memref.load %arg3[%416, %c1_274] : memref<16x4xi32, #tpu.memory_space<smem>>
    %418 = arith.index_cast %417 : i32 to index
    %c0_275 = arith.constant 0 : index
    %419 = vector.load %arg5[%418, %c0_275] : memref<487x64xf32, #tpu.memory_space<vmem>>, vector<1x64xf32>
    %c9_276 = arith.constant 9 : index
    %c0_277 = arith.constant 0 : index
    %420 = vector.load %arg16[%c9_276, %c0_277] : memref<32x64xf32, #tpu.memory_space<vmem>>, vector<1x64xf32>
    tpu.vector_store %arg16[%c9_276, %c0_277], %419 {strides = array<i32>} : memref<32x64xf32, #tpu.memory_space<vmem>>, vector<1x64xf32>,
    %c1_i32_278 = arith.constant 1 : i32
    %421 = arith.addi %0, %c1_i32_278 : i32
    %422 = arith.index_cast %421 : i32 to index
    %c2_279 = arith.constant 2 : index
    %423 = memref.load %arg3[%422, %c2_279] : memref<16x4xi32, #tpu.memory_space<smem>>
    %424 = arith.index_cast %423 : i32 to index
    %c0_280 = arith.constant 0 : index
    %425 = vector.load %arg5[%424, %c0_280] : memref<487x64xf32, #tpu.memory_space<vmem>>, vector<1x64xf32>
    %c17_281 = arith.constant 17 : index
    %c0_282 = arith.constant 0 : index
    %426 = vector.load %arg16[%c17_281, %c0_282] : memref<32x64xf32, #tpu.memory_space<vmem>>, vector<1x64xf32>
    tpu.vector_store %arg16[%c17_281, %c0_282], %425 {strides = array<i32>} : memref<32x64xf32, #tpu.memory_space<vmem>>, vector<1x64xf32>,
    %c1_i32_283 = arith.constant 1 : i32
    %427 = arith.addi %0, %c1_i32_283 : i32
    %428 = arith.index_cast %427 : i32 to index
    %c3_284 = arith.constant 3 : index
    %429 = memref.load %arg3[%428, %c3_284] : memref<16x4xi32, #tpu.memory_space<smem>>
    %430 = arith.index_cast %429 : i32 to index
    %c0_285 = arith.constant 0 : index
    %431 = vector.load %arg5[%430, %c0_285] : memref<487x64xf32, #tpu.memory_space<vmem>>, vector<1x64xf32>
    %c25_286 = arith.constant 25 : index
    %c0_287 = arith.constant 0 : index
    %432 = vector.load %arg16[%c25_286, %c0_287] : memref<32x64xf32, #tpu.memory_space<vmem>>, vector<1x64xf32>
    tpu.vector_store %arg16[%c25_286, %c0_287], %431 {strides = array<i32>} : memref<32x64xf32, #tpu.memory_space<vmem>>, vector<1x64xf32>,
    %c2_i32_288 = arith.constant 2 : i32
    %433 = arith.addi %0, %c2_i32_288 : i32
    %434 = arith.index_cast %433 : i32 to index
    %c0_289 = arith.constant 0 : index
    %435 = memref.load %arg3[%434, %c0_289] : memref<16x4xi32, #tpu.memory_space<smem>>
    %436 = arith.index_cast %435 : i32 to index
    %c0_290 = arith.constant 0 : index
    %437 = vector.load %arg5[%436, %c0_290] : memref<487x64xf32, #tpu.memory_space<vmem>>, vector<1x64xf32>
    %c2_291 = arith.constant 2 : index
    %c0_292 = arith.constant 0 : index
    %438 = vector.load %arg16[%c2_291, %c0_292] : memref<32x64xf32, #tpu.memory_space<vmem>>, vector<1x64xf32>
    tpu.vector_store %arg16[%c2_291, %c0_292], %437 {strides = array<i32>} : memref<32x64xf32, #tpu.memory_space<vmem>>, vector<1x64xf32>,
    %c2_i32_293 = arith.constant 2 : i32
    %439 = arith.addi %0, %c2_i32_293 : i32
    %440 = arith.index_cast %439 : i32 to index
    %c1_294 = arith.constant 1 : index
    %441 = memref.load %arg3[%440, %c1_294] : memref<16x4xi32, #tpu.memory_space<smem>>
    %442 = arith.index_cast %441 : i32 to index
    %c0_295 = arith.constant 0 : index
    %443 = vector.load %arg5[%442, %c0_295] : memref<487x64xf32, #tpu.memory_space<vmem>>, vector<1x64xf32>
    %c10_296 = arith.constant 10 : index
    %c0_297 = arith.constant 0 : index
    %444 = vector.load %arg16[%c10_296, %c0_297] : memref<32x64xf32, #tpu.memory_space<vmem>>, vector<1x64xf32>
    tpu.vector_store %arg16[%c10_296, %c0_297], %443 {strides = array<i32>} : memref<32x64xf32, #tpu.memory_space<vmem>>, vector<1x64xf32>,
    %c2_i32_298 = arith.constant 2 : i32
    %445 = arith.addi %0, %c2_i32_298 : i32
    %446 = arith.index_cast %445 : i32 to index
    %c2_299 = arith.constant 2 : index
    %447 = memref.load %arg3[%446, %c2_299] : memref<16x4xi32, #tpu.memory_space<smem>>
    %448 = arith.index_cast %447 : i32 to index
    %c0_300 = arith.constant 0 : index
    %449 = vector.load %arg5[%448, %c0_300] : memref<487x64xf32, #tpu.memory_space<vmem>>, vector<1x64xf32>
    %c18_301 = arith.constant 18 : index
    %c0_302 = arith.constant 0 : index
    %450 = vector.load %arg16[%c18_301, %c0_302] : memref<32x64xf32, #tpu.memory_space<vmem>>, vector<1x64xf32>
    tpu.vector_store %arg16[%c18_301, %c0_302], %449 {strides = array<i32>} : memref<32x64xf32, #tpu.memory_space<vmem>>, vector<1x64xf32>,
    %c2_i32_303 = arith.constant 2 : i32
    %451 = arith.addi %0, %c2_i32_303 : i32
    %452 = arith.index_cast %451 : i32 to index
    %c3_304 = arith.constant 3 : index
    %453 = memref.load %arg3[%452, %c3_304] : memref<16x4xi32, #tpu.memory_space<smem>>
    %454 = arith.index_cast %453 : i32 to index
    %c0_305 = arith.constant 0 : index
    %455 = vector.load %arg5[%454, %c0_305] : memref<487x64xf32, #tpu.memory_space<vmem>>, vector<1x64xf32>
    %c26_306 = arith.constant 26 : index
    %c0_307 = arith.constant 0 : index
    %456 = vector.load %arg16[%c26_306, %c0_307] : memref<32x64xf32, #tpu.memory_space<vmem>>, vector<1x64xf32>
    tpu.vector_store %arg16[%c26_306, %c0_307], %455 {strides = array<i32>} : memref<32x64xf32, #tpu.memory_space<vmem>>, vector<1x64xf32>,
    %c3_i32_308 = arith.constant 3 : i32
    %457 = arith.addi %0, %c3_i32_308 : i32
    %458 = arith.index_cast %457 : i32 to index
    %c0_309 = arith.constant 0 : index
    %459 = memref.load %arg3[%458, %c0_309] : memref<16x4xi32, #tpu.memory_space<smem>>
    %460 = arith.index_cast %459 : i32 to index
    %c0_310 = arith.constant 0 : index
    %461 = vector.load %arg5[%460, %c0_310] : memref<487x64xf32, #tpu.memory_space<vmem>>, vector<1x64xf32>
    %c3_311 = arith.constant 3 : index
    %c0_312 = arith.constant 0 : index
    %462 = vector.load %arg16[%c3_311, %c0_312] : memref<32x64xf32, #tpu.memory_space<vmem>>, vector<1x64xf32>
    tpu.vector_store %arg16[%c3_311, %c0_312], %461 {strides = array<i32>} : memref<32x64xf32, #tpu.memory_space<vmem>>, vector<1x64xf32>,
    %c3_i32_313 = arith.constant 3 : i32
    %463 = arith.addi %0, %c3_i32_313 : i32
    %464 = arith.index_cast %463 : i32 to index
    %c1_314 = arith.constant 1 : index
    %465 = memref.load %arg3[%464, %c1_314] : memref<16x4xi32, #tpu.memory_space<smem>>
    %466 = arith.index_cast %465 : i32 to index
    %c0_315 = arith.constant 0 : index
    %467 = vector.load %arg5[%466, %c0_315] : memref<487x64xf32, #tpu.memory_space<vmem>>, vector<1x64xf32>
    %c11_316 = arith.constant 11 : index
    %c0_317 = arith.constant 0 : index
    %468 = vector.load %arg16[%c11_316, %c0_317] : memref<32x64xf32, #tpu.memory_space<vmem>>, vector<1x64xf32>
    tpu.vector_store %arg16[%c11_316, %c0_317], %467 {strides = array<i32>} : memref<32x64xf32, #tpu.memory_space<vmem>>, vector<1x64xf32>,
    %c3_i32_318 = arith.constant 3 : i32
    %469 = arith.addi %0, %c3_i32_318 : i32
    %470 = arith.index_cast %469 : i32 to index
    %c2_319 = arith.constant 2 : index
    %471 = memref.load %arg3[%470, %c2_319] : memref<16x4xi32, #tpu.memory_space<smem>>
    %472 = arith.index_cast %471 : i32 to index
    %c0_320 = arith.constant 0 : index
    %473 = vector.load %arg5[%472, %c0_320] : memref<487x64xf32, #tpu.memory_space<vmem>>, vector<1x64xf32>
    %c19_321 = arith.constant 19 : index
    %c0_322 = arith.constant 0 : index
    %474 = vector.load %arg16[%c19_321, %c0_322] : memref<32x64xf32, #tpu.memory_space<vmem>>, vector<1x64xf32>
    tpu.vector_store %arg16[%c19_321, %c0_322], %473 {strides = array<i32>} : memref<32x64xf32, #tpu.memory_space<vmem>>, vector<1x64xf32>,
    %c3_i32_323 = arith.constant 3 : i32
    %475 = arith.addi %0, %c3_i32_323 : i32
    %476 = arith.index_cast %475 : i32 to index
    %c3_324 = arith.constant 3 : index
    %477 = memref.load %arg3[%476, %c3_324] : memref<16x4xi32, #tpu.memory_space<smem>>
    %478 = arith.index_cast %477 : i32 to index
    %c0_325 = arith.constant 0 : index
    %479 = vector.load %arg5[%478, %c0_325] : memref<487x64xf32, #tpu.memory_space<vmem>>, vector<1x64xf32>
    %c27_326 = arith.constant 27 : index
    %c0_327 = arith.constant 0 : index
    %480 = vector.load %arg16[%c27_326, %c0_327] : memref<32x64xf32, #tpu.memory_space<vmem>>, vector<1x64xf32>
    tpu.vector_store %arg16[%c27_326, %c0_327], %479 {strides = array<i32>} : memref<32x64xf32, #tpu.memory_space<vmem>>, vector<1x64xf32>,
    %c4_i32_328 = arith.constant 4 : i32
    %481 = arith.addi %0, %c4_i32_328 : i32
    %482 = arith.index_cast %481 : i32 to index
    %c0_329 = arith.constant 0 : index
    %483 = memref.load %arg3[%482, %c0_329] : memref<16x4xi32, #tpu.memory_space<smem>>
    %484 = arith.index_cast %483 : i32 to index
    %c0_330 = arith.constant 0 : index
    %485 = vector.load %arg5[%484, %c0_330] : memref<487x64xf32, #tpu.memory_space<vmem>>, vector<1x64xf32>
    %c4_331 = arith.constant 4 : index
    %c0_332 = arith.constant 0 : index
    %486 = vector.load %arg16[%c4_331, %c0_332] : memref<32x64xf32, #tpu.memory_space<vmem>>, vector<1x64xf32>
    tpu.vector_store %arg16[%c4_331, %c0_332], %485 {strides = array<i32>} : memref<32x64xf32, #tpu.memory_space<vmem>>, vector<1x64xf32>,
    %c4_i32_333 = arith.constant 4 : i32
    %487 = arith.addi %0, %c4_i32_333 : i32
    %488 = arith.index_cast %487 : i32 to index
    %c1_334 = arith.constant 1 : index
    %489 = memref.load %arg3[%488, %c1_334] : memref<16x4xi32, #tpu.memory_space<smem>>
    %490 = arith.index_cast %489 : i32 to index
    %c0_335 = arith.constant 0 : index
    %491 = vector.load %arg5[%490, %c0_335] : memref<487x64xf32, #tpu.memory_space<vmem>>, vector<1x64xf32>
    %c12_336 = arith.constant 12 : index
    %c0_337 = arith.constant 0 : index
    %492 = vector.load %arg16[%c12_336, %c0_337] : memref<32x64xf32, #tpu.memory_space<vmem>>, vector<1x64xf32>
    tpu.vector_store %arg16[%c12_336, %c0_337], %491 {strides = array<i32>} : memref<32x64xf32, #tpu.memory_space<vmem>>, vector<1x64xf32>,
    %c4_i32_338 = arith.constant 4 : i32
    %493 = arith.addi %0, %c4_i32_338 : i32
    %494 = arith.index_cast %493 : i32 to index
    %c2_339 = arith.constant 2 : index
    %495 = memref.load %arg3[%494, %c2_339] : memref<16x4xi32, #tpu.memory_space<smem>>
    %496 = arith.index_cast %495 : i32 to index
    %c0_340 = arith.constant 0 : index
    %497 = vector.load %arg5[%496, %c0_340] : memref<487x64xf32, #tpu.memory_space<vmem>>, vector<1x64xf32>
    %c20_341 = arith.constant 20 : index
    %c0_342 = arith.constant 0 : index
    %498 = vector.load %arg16[%c20_341, %c0_342] : memref<32x64xf32, #tpu.memory_space<vmem>>, vector<1x64xf32>
    tpu.vector_store %arg16[%c20_341, %c0_342], %497 {strides = array<i32>} : memref<32x64xf32, #tpu.memory_space<vmem>>, vector<1x64xf32>,
    %c4_i32_343 = arith.constant 4 : i32
    %499 = arith.addi %0, %c4_i32_343 : i32
    %500 = arith.index_cast %499 : i32 to index
    %c3_344 = arith.constant 3 : index
    %501 = memref.load %arg3[%500, %c3_344] : memref<16x4xi32, #tpu.memory_space<smem>>
    %502 = arith.index_cast %501 : i32 to index
    %c0_345 = arith.constant 0 : index
    %503 = vector.load %arg5[%502, %c0_345] : memref<487x64xf32, #tpu.memory_space<vmem>>, vector<1x64xf32>
    %c28_346 = arith.constant 28 : index
    %c0_347 = arith.constant 0 : index
    %504 = vector.load %arg16[%c28_346, %c0_347] : memref<32x64xf32, #tpu.memory_space<vmem>>, vector<1x64xf32>
    tpu.vector_store %arg16[%c28_346, %c0_347], %503 {strides = array<i32>} : memref<32x64xf32, #tpu.memory_space<vmem>>, vector<1x64xf32>,
    %c5_i32_348 = arith.constant 5 : i32
    %505 = arith.addi %0, %c5_i32_348 : i32
    %506 = arith.index_cast %505 : i32 to index
    %c0_349 = arith.constant 0 : index
    %507 = memref.load %arg3[%506, %c0_349] : memref<16x4xi32, #tpu.memory_space<smem>>
    %508 = arith.index_cast %507 : i32 to index
    %c0_350 = arith.constant 0 : index
    %509 = vector.load %arg5[%508, %c0_350] : memref<487x64xf32, #tpu.memory_space<vmem>>, vector<1x64xf32>
    %c5_351 = arith.constant 5 : index
    %c0_352 = arith.constant 0 : index
    %510 = vector.load %arg16[%c5_351, %c0_352] : memref<32x64xf32, #tpu.memory_space<vmem>>, vector<1x64xf32>
    tpu.vector_store %arg16[%c5_351, %c0_352], %509 {strides = array<i32>} : memref<32x64xf32, #tpu.memory_space<vmem>>, vector<1x64xf32>,
    %c5_i32_353 = arith.constant 5 : i32
    %511 = arith.addi %0, %c5_i32_353 : i32
    %512 = arith.index_cast %511 : i32 to index
    %c1_354 = arith.constant 1 : index
    %513 = memref.load %arg3[%512, %c1_354] : memref<16x4xi32, #tpu.memory_space<smem>>
    %514 = arith.index_cast %513 : i32 to index
    %c0_355 = arith.constant 0 : index
    %515 = vector.load %arg5[%514, %c0_355] : memref<487x64xf32, #tpu.memory_space<vmem>>, vector<1x64xf32>
    %c13_356 = arith.constant 13 : index
    %c0_357 = arith.constant 0 : index
    %516 = vector.load %arg16[%c13_356, %c0_357] : memref<32x64xf32, #tpu.memory_space<vmem>>, vector<1x64xf32>
    tpu.vector_store %arg16[%c13_356, %c0_357], %515 {strides = array<i32>} : memref<32x64xf32, #tpu.memory_space<vmem>>, vector<1x64xf32>,
    %c5_i32_358 = arith.constant 5 : i32
    %517 = arith.addi %0, %c5_i32_358 : i32
    %518 = arith.index_cast %517 : i32 to index
    %c2_359 = arith.constant 2 : index
    %519 = memref.load %arg3[%518, %c2_359] : memref<16x4xi32, #tpu.memory_space<smem>>
    %520 = arith.index_cast %519 : i32 to index
    %c0_360 = arith.constant 0 : index
    %521 = vector.load %arg5[%520, %c0_360] : memref<487x64xf32, #tpu.memory_space<vmem>>, vector<1x64xf32>
    %c21_361 = arith.constant 21 : index
    %c0_362 = arith.constant 0 : index
    %522 = vector.load %arg16[%c21_361, %c0_362] : memref<32x64xf32, #tpu.memory_space<vmem>>, vector<1x64xf32>
    tpu.vector_store %arg16[%c21_361, %c0_362], %521 {strides = array<i32>} : memref<32x64xf32, #tpu.memory_space<vmem>>, vector<1x64xf32>,
    %c5_i32_363 = arith.constant 5 : i32
    %523 = arith.addi %0, %c5_i32_363 : i32
    %524 = arith.index_cast %523 : i32 to index
    %c3_364 = arith.constant 3 : index
    %525 = memref.load %arg3[%524, %c3_364] : memref<16x4xi32, #tpu.memory_space<smem>>
    %526 = arith.index_cast %525 : i32 to index
    %c0_365 = arith.constant 0 : index
    %527 = vector.load %arg5[%526, %c0_365] : memref<487x64xf32, #tpu.memory_space<vmem>>, vector<1x64xf32>
    %c29_366 = arith.constant 29 : index
    %c0_367 = arith.constant 0 : index
    %528 = vector.load %arg16[%c29_366, %c0_367] : memref<32x64xf32, #tpu.memory_space<vmem>>, vector<1x64xf32>
    tpu.vector_store %arg16[%c29_366, %c0_367], %527 {strides = array<i32>} : memref<32x64xf32, #tpu.memory_space<vmem>>, vector<1x64xf32>,
    %c6_i32_368 = arith.constant 6 : i32
    %529 = arith.addi %0, %c6_i32_368 : i32
    %530 = arith.index_cast %529 : i32 to index
    %c0_369 = arith.constant 0 : index
    %531 = memref.load %arg3[%530, %c0_369] : memref<16x4xi32, #tpu.memory_space<smem>>
    %532 = arith.index_cast %531 : i32 to index
    %c0_370 = arith.constant 0 : index
    %533 = vector.load %arg5[%532, %c0_370] : memref<487x64xf32, #tpu.memory_space<vmem>>, vector<1x64xf32>
    %c6_371 = arith.constant 6 : index
    %c0_372 = arith.constant 0 : index
    %534 = vector.load %arg16[%c6_371, %c0_372] : memref<32x64xf32, #tpu.memory_space<vmem>>, vector<1x64xf32>
    tpu.vector_store %arg16[%c6_371, %c0_372], %533 {strides = array<i32>} : memref<32x64xf32, #tpu.memory_space<vmem>>, vector<1x64xf32>,
    %c6_i32_373 = arith.constant 6 : i32
    %535 = arith.addi %0, %c6_i32_373 : i32
    %536 = arith.index_cast %535 : i32 to index
    %c1_374 = arith.constant 1 : index
    %537 = memref.load %arg3[%536, %c1_374] : memref<16x4xi32, #tpu.memory_space<smem>>
    %538 = arith.index_cast %537 : i32 to index
    %c0_375 = arith.constant 0 : index
    %539 = vector.load %arg5[%538, %c0_375] : memref<487x64xf32, #tpu.memory_space<vmem>>, vector<1x64xf32>
    %c14_376 = arith.constant 14 : index
    %c0_377 = arith.constant 0 : index
    %540 = vector.load %arg16[%c14_376, %c0_377] : memref<32x64xf32, #tpu.memory_space<vmem>>, vector<1x64xf32>
    tpu.vector_store %arg16[%c14_376, %c0_377], %539 {strides = array<i32>} : memref<32x64xf32, #tpu.memory_space<vmem>>, vector<1x64xf32>,
    %c6_i32_378 = arith.constant 6 : i32
    %541 = arith.addi %0, %c6_i32_378 : i32
    %542 = arith.index_cast %541 : i32 to index
    %c2_379 = arith.constant 2 : index
    %543 = memref.load %arg3[%542, %c2_379] : memref<16x4xi32, #tpu.memory_space<smem>>
    %544 = arith.index_cast %543 : i32 to index
    %c0_380 = arith.constant 0 : index
    %545 = vector.load %arg5[%544, %c0_380] : memref<487x64xf32, #tpu.memory_space<vmem>>, vector<1x64xf32>
    %c22_381 = arith.constant 22 : index
    %c0_382 = arith.constant 0 : index
    %546 = vector.load %arg16[%c22_381, %c0_382] : memref<32x64xf32, #tpu.memory_space<vmem>>, vector<1x64xf32>
    tpu.vector_store %arg16[%c22_381, %c0_382], %545 {strides = array<i32>} : memref<32x64xf32, #tpu.memory_space<vmem>>, vector<1x64xf32>,
    %c6_i32_383 = arith.constant 6 : i32
    %547 = arith.addi %0, %c6_i32_383 : i32
    %548 = arith.index_cast %547 : i32 to index
    %c3_384 = arith.constant 3 : index
    %549 = memref.load %arg3[%548, %c3_384] : memref<16x4xi32, #tpu.memory_space<smem>>
    %550 = arith.index_cast %549 : i32 to index
    %c0_385 = arith.constant 0 : index
    %551 = vector.load %arg5[%550, %c0_385] : memref<487x64xf32, #tpu.memory_space<vmem>>, vector<1x64xf32>
    %c30_386 = arith.constant 30 : index
    %c0_387 = arith.constant 0 : index
    %552 = vector.load %arg16[%c30_386, %c0_387] : memref<32x64xf32, #tpu.memory_space<vmem>>, vector<1x64xf32>
    tpu.vector_store %arg16[%c30_386, %c0_387], %551 {strides = array<i32>} : memref<32x64xf32, #tpu.memory_space<vmem>>, vector<1x64xf32>,
    %c7_i32_388 = arith.constant 7 : i32
    %553 = arith.addi %0, %c7_i32_388 : i32
    %554 = arith.index_cast %553 : i32 to index
    %c0_389 = arith.constant 0 : index
    %555 = memref.load %arg3[%554, %c0_389] : memref<16x4xi32, #tpu.memory_space<smem>>
    %556 = arith.index_cast %555 : i32 to index
    %c0_390 = arith.constant 0 : index
    %557 = vector.load %arg5[%556, %c0_390] : memref<487x64xf32, #tpu.memory_space<vmem>>, vector<1x64xf32>
    %c7_391 = arith.constant 7 : index
    %c0_392 = arith.constant 0 : index
    %558 = vector.load %arg16[%c7_391, %c0_392] : memref<32x64xf32, #tpu.memory_space<vmem>>, vector<1x64xf32>
    tpu.vector_store %arg16[%c7_391, %c0_392], %557 {strides = array<i32>} : memref<32x64xf32, #tpu.memory_space<vmem>>, vector<1x64xf32>,
    %c7_i32_393 = arith.constant 7 : i32
    %559 = arith.addi %0, %c7_i32_393 : i32
    %560 = arith.index_cast %559 : i32 to index
    %c1_394 = arith.constant 1 : index
    %561 = memref.load %arg3[%560, %c1_394] : memref<16x4xi32, #tpu.memory_space<smem>>
    %562 = arith.index_cast %561 : i32 to index
    %c0_395 = arith.constant 0 : index
    %563 = vector.load %arg5[%562, %c0_395] : memref<487x64xf32, #tpu.memory_space<vmem>>, vector<1x64xf32>
    %c15_396 = arith.constant 15 : index
    %c0_397 = arith.constant 0 : index
    %564 = vector.load %arg16[%c15_396, %c0_397] : memref<32x64xf32, #tpu.memory_space<vmem>>, vector<1x64xf32>
    tpu.vector_store %arg16[%c15_396, %c0_397], %563 {strides = array<i32>} : memref<32x64xf32, #tpu.memory_space<vmem>>, vector<1x64xf32>,
    %c7_i32_398 = arith.constant 7 : i32
    %565 = arith.addi %0, %c7_i32_398 : i32
    %566 = arith.index_cast %565 : i32 to index
    %c2_399 = arith.constant 2 : index
    %567 = memref.load %arg3[%566, %c2_399] : memref<16x4xi32, #tpu.memory_space<smem>>
    %568 = arith.index_cast %567 : i32 to index
    %c0_400 = arith.constant 0 : index
    %569 = vector.load %arg5[%568, %c0_400] : memref<487x64xf32, #tpu.memory_space<vmem>>, vector<1x64xf32>
    %c23_401 = arith.constant 23 : index
    %c0_402 = arith.constant 0 : index
    %570 = vector.load %arg16[%c23_401, %c0_402] : memref<32x64xf32, #tpu.memory_space<vmem>>, vector<1x64xf32>
    tpu.vector_store %arg16[%c23_401, %c0_402], %569 {strides = array<i32>} : memref<32x64xf32, #tpu.memory_space<vmem>>, vector<1x64xf32>,
    %c7_i32_403 = arith.constant 7 : i32
    %571 = arith.addi %0, %c7_i32_403 : i32
    %572 = arith.index_cast %571 : i32 to index
    %c3_404 = arith.constant 3 : index
    %573 = memref.load %arg3[%572, %c3_404] : memref<16x4xi32, #tpu.memory_space<smem>>
    %574 = arith.index_cast %573 : i32 to index
    %c0_405 = arith.constant 0 : index
    %575 = vector.load %arg5[%574, %c0_405] : memref<487x64xf32, #tpu.memory_space<vmem>>, vector<1x64xf32>
    %c31_406 = arith.constant 31 : index
    %c0_407 = arith.constant 0 : index
    %576 = vector.load %arg16[%c31_406, %c0_407] : memref<32x64xf32, #tpu.memory_space<vmem>>, vector<1x64xf32>
    tpu.vector_store %arg16[%c31_406, %c0_407], %575 {strides = array<i32>} : memref<32x64xf32, #tpu.memory_space<vmem>>, vector<1x64xf32>,
    %c0_408 = arith.constant 0 : index
    %c0_409 = arith.constant 0 : index
    %577 = vector.load %arg14[%c0_408, %c0_409] : memref<64x64xf32, #tpu.memory_space<vmem>>, vector<64x64xf32>
    %578 = arith.truncf %577 : vector<64x64xf32> to vector<64x64xbf16>
    %c0_410 = arith.constant 0 : index
    %c0_411 = arith.constant 0 : index
    %579 = vector.load %arg6[%c0_410, %c0_411] : memref<64x512xbf16, #tpu.memory_space<vmem>>, vector<64x512xbf16>
    %cst = arith.constant dense<0.000000e+00> : vector<64x512xf32>
    %580 = tpu.matmul %578, %579, %cst {dimension_numbers = #tpu.dot_dimension_numbers<[1], [0], [0], [1], [0, 0, 1, 1], [], []>} : vector<64x64xbf16>, vector<64x512xbf16>, vector<64x512xf32> -> vector<64x512xf32>
    %c0_412 = arith.constant 0 : index
    %c0_413 = arith.constant 0 : index
    %581 = vector.load %arg8[%c0_412, %c0_413] : memref<1x512xf32, #tpu.memory_space<vmem>>, vector<1x512xf32>
    %582 = vector.broadcast %581 : vector<1x512xf32> to vector<64x512xf32>
    %583 = arith.addf %580, %582 : vector<64x512xf32>
    %c0_414 = arith.constant 0 : index
    %c0_415 = arith.constant 0 : index
    %584 = vector.load %arg15[%c0_414, %c0_415] : memref<64x512xf32, #tpu.memory_space<vmem>>, vector<64x512xf32>
    tpu.vector_store %arg15[%c0_414, %c0_415], %583 {strides = array<i32>} : memref<64x512xf32, #tpu.memory_space<vmem>>, vector<64x512xf32>,
    %c0_416 = arith.constant 0 : index
    %c0_417 = arith.constant 0 : index
    %585 = vector.load %arg16[%c0_416, %c0_417] : memref<32x64xf32, #tpu.memory_space<vmem>>, vector<8x64xf32>
    %586 = arith.truncf %585 : vector<8x64xf32> to vector<8x64xbf16>
    %c256 = arith.constant 256 : index
    %c0_418 = arith.constant 0 : index
    %587 = vector.load %arg11[%c256, %c0_418] : memref<512x128xbf16, #tpu.memory_space<vmem>>, vector<64x128xbf16>
    %cst_419 = arith.constant dense<0.000000e+00> : vector<8x128xf32>
    %588 = tpu.matmul %586, %587, %cst_419 {dimension_numbers = #tpu.dot_dimension_numbers<[1], [0], [0], [1], [0, 0, 1, 1], [], []>} : vector<8x64xbf16>, vector<64x128xbf16>, vector<8x128xf32> -> vector<8x128xf32>
    %c8_420 = arith.constant 8 : index
    %c0_421 = arith.constant 0 : index
    %589 = vector.load %arg16[%c8_420, %c0_421] : memref<32x64xf32, #tpu.memory_space<vmem>>, vector<8x64xf32>
    %590 = arith.truncf %589 : vector<8x64xf32> to vector<8x64xbf16>
    %c320 = arith.constant 320 : index
    %c0_422 = arith.constant 0 : index
    %591 = vector.load %arg11[%c320, %c0_422] : memref<512x128xbf16, #tpu.memory_space<vmem>>, vector<64x128xbf16>
    %cst_423 = arith.constant dense<0.000000e+00> : vector<8x128xf32>
    %592 = tpu.matmul %590, %591, %cst_423 {dimension_numbers = #tpu.dot_dimension_numbers<[1], [0], [0], [1], [0, 0, 1, 1], [], []>} : vector<8x64xbf16>, vector<64x128xbf16>, vector<8x128xf32> -> vector<8x128xf32>
    %593 = arith.addf %588, %592 : vector<8x128xf32>
    %c16_424 = arith.constant 16 : index
    %c0_425 = arith.constant 0 : index
    %594 = vector.load %arg16[%c16_424, %c0_425] : memref<32x64xf32, #tpu.memory_space<vmem>>, vector<8x64xf32>
    %595 = arith.truncf %594 : vector<8x64xf32> to vector<8x64xbf16>
    %c384 = arith.constant 384 : index
    %c0_426 = arith.constant 0 : index
    %596 = vector.load %arg11[%c384, %c0_426] : memref<512x128xbf16, #tpu.memory_space<vmem>>, vector<64x128xbf16>
    %cst_427 = arith.constant dense<0.000000e+00> : vector<8x128xf32>
    %597 = tpu.matmul %595, %596, %cst_427 {dimension_numbers = #tpu.dot_dimension_numbers<[1], [0], [0], [1], [0, 0, 1, 1], [], []>} : vector<8x64xbf16>, vector<64x128xbf16>, vector<8x128xf32> -> vector<8x128xf32>
    %598 = arith.addf %593, %597 : vector<8x128xf32>
    %c24_428 = arith.constant 24 : index
    %c0_429 = arith.constant 0 : index
    %599 = vector.load %arg16[%c24_428, %c0_429] : memref<32x64xf32, #tpu.memory_space<vmem>>, vector<8x64xf32>
    %600 = arith.truncf %599 : vector<8x64xf32> to vector<8x64xbf16>
    %c448 = arith.constant 448 : index
    %c0_430 = arith.constant 0 : index
    %601 = vector.load %arg11[%c448, %c0_430] : memref<512x128xbf16, #tpu.memory_space<vmem>>, vector<64x128xbf16>
    %cst_431 = arith.constant dense<0.000000e+00> : vector<8x128xf32>
    %602 = tpu.matmul %600, %601, %cst_431 {dimension_numbers = #tpu.dot_dimension_numbers<[1], [0], [0], [1], [0, 0, 1, 1], [], []>} : vector<8x64xbf16>, vector<64x128xbf16>, vector<8x128xf32> -> vector<8x128xf32>
    %603 = arith.addf %598, %602 : vector<8x128xf32>
    %cst_432 = arith.constant 0.000000e+00 : f32
    %604 = vector.broadcast %cst_432 : f32 to vector<8x64xf32>
    %c0_433 = arith.constant 0 : index
    %c0_434 = arith.constant 0 : index
    %605 = vector.load %arg9[%c0_433, %c0_434] : memref<8x64xf32, #tpu.memory_space<vmem>>, vector<8x64xf32>
    %606 = tpu.concatenate %605, %604 in 1 : vector<8x64xf32>, vector<8x64xf32> -> vector<8x128xf32>
    %c0_435 = arith.constant 0 : index
    %c0_436 = arith.constant 0 : index
    %607 = vector.load %arg10[%c0_435, %c0_436] : memref<8x64xf32, #tpu.memory_space<vmem>>, vector<8x64xf32>
    %608 = tpu.concatenate %607, %604 in 1 : vector<8x64xf32>, vector<8x64xf32> -> vector<8x128xf32>
    %c0_437 = arith.constant 0 : index
    %c0_438 = arith.constant 0 : index
    %609 = vector.load %arg15[%c0_437, %c0_438] : memref<64x512xf32, #tpu.memory_space<vmem>>, vector<8x512xf32>
    %610 = arith.truncf %606 : vector<8x128xf32> to vector<8x128xbf16>
    %c0_439 = arith.constant 0 : index
    %c0_440 = arith.constant 0 : index
    %611 = vector.load %arg7[%c0_439, %c0_440] : memref<128x512xbf16, #tpu.memory_space<vmem>>, vector<128x512xbf16>
    %cst_441 = arith.constant dense<0.000000e+00> : vector<8x512xf32>
    %612 = tpu.matmul %610, %611, %cst_441 {dimension_numbers = #tpu.dot_dimension_numbers<[1], [0], [0], [1], [0, 0, 1, 1], [], []>} : vector<8x128xbf16>, vector<128x512xbf16>, vector<8x512xf32> -> vector<8x512xf32>
    %613 = arith.addf %609, %612 : vector<8x512xf32>
    %614 = vector.extract_strided_slice %613 {offsets = [0, 0], sizes = [8, 128], strides = [1, 1]} : vector<8x512xf32> to vector<8x128xf32>
    %cst_442 = arith.constant 5.000000e-01 : f32
    %615 = vector.broadcast %cst_442 : f32 to vector<8x128xf32>
    %616 = arith.mulf %615, %614 : vector<8x128xf32>
    %617 = math.tanh %616 : vector<8x128xf32>
    %cst_443 = arith.constant 5.000000e-01 : f32
    %618 = vector.broadcast %cst_443 : f32 to vector<8x128xf32>
    %619 = arith.mulf %618, %617 : vector<8x128xf32>
    %cst_444 = arith.constant 5.000000e-01 : f32
    %620 = vector.broadcast %cst_444 : f32 to vector<8x128xf32>
    %621 = arith.addf %619, %620 : vector<8x128xf32>
    %622 = vector.extract_strided_slice %613 {offsets = [0, 128], sizes = [8, 128], strides = [1, 1]} : vector<8x512xf32> to vector<8x128xf32>
    %cst_445 = arith.constant 5.000000e-01 : f32
    %623 = vector.broadcast %cst_445 : f32 to vector<8x128xf32>
    %624 = arith.mulf %623, %622 : vector<8x128xf32>
    %625 = math.tanh %624 : vector<8x128xf32>
    %cst_446 = arith.constant 5.000000e-01 : f32
    %626 = vector.broadcast %cst_446 : f32 to vector<8x128xf32>
    %627 = arith.mulf %626, %625 : vector<8x128xf32>
    %cst_447 = arith.constant 5.000000e-01 : f32
    %628 = vector.broadcast %cst_447 : f32 to vector<8x128xf32>
    %629 = arith.addf %627, %628 : vector<8x128xf32>
    %630 = vector.extract_strided_slice %613 {offsets = [0, 256], sizes = [8, 128], strides = [1, 1]} : vector<8x512xf32> to vector<8x128xf32>
    %631 = math.tanh %630 : vector<8x128xf32>
    %632 = vector.extract_strided_slice %613 {offsets = [0, 384], sizes = [8, 128], strides = [1, 1]} : vector<8x512xf32> to vector<8x128xf32>
    %cst_448 = arith.constant 5.000000e-01 : f32
    %633 = vector.broadcast %cst_448 : f32 to vector<8x128xf32>
    %634 = arith.mulf %633, %632 : vector<8x128xf32>
    %635 = math.tanh %634 : vector<8x128xf32>
    %cst_449 = arith.constant 5.000000e-01 : f32
    %636 = vector.broadcast %cst_449 : f32 to vector<8x128xf32>
    %637 = arith.mulf %636, %635 : vector<8x128xf32>
    %cst_450 = arith.constant 5.000000e-01 : f32
    %638 = vector.broadcast %cst_450 : f32 to vector<8x128xf32>
    %639 = arith.addf %637, %638 : vector<8x128xf32>
    %640 = arith.mulf %629, %608 : vector<8x128xf32>
    %641 = arith.mulf %621, %631 : vector<8x128xf32>
    %642 = arith.addf %640, %641 : vector<8x128xf32>
    %643 = math.tanh %642 : vector<8x128xf32>
    %644 = arith.mulf %639, %643 : vector<8x128xf32>
    %c0_451 = arith.constant 0 : index
    %c0_452 = arith.constant 0 : index
    %645 = vector.load %arg17[%c0_451, %c0_452] : memref<64x128xf32, #tpu.memory_space<vmem>>, vector<8x128xf32>
    tpu.vector_store %arg17[%c0_451, %c0_452], %644 {strides = array<i32>} : memref<64x128xf32, #tpu.memory_space<vmem>>, vector<8x128xf32>,
    %c8_453 = arith.constant 8 : index
    %c0_454 = arith.constant 0 : index
    %646 = vector.load %arg15[%c8_453, %c0_454] : memref<64x512xf32, #tpu.memory_space<vmem>>, vector<8x512xf32>
    %647 = arith.truncf %644 : vector<8x128xf32> to vector<8x128xbf16>
    %c0_455 = arith.constant 0 : index
    %c0_456 = arith.constant 0 : index
    %648 = vector.load %arg7[%c0_455, %c0_456] : memref<128x512xbf16, #tpu.memory_space<vmem>>, vector<128x512xbf16>
    %cst_457 = arith.constant dense<0.000000e+00> : vector<8x512xf32>
    %649 = tpu.matmul %647, %648, %cst_457 {dimension_numbers = #tpu.dot_dimension_numbers<[1], [0], [0], [1], [0, 0, 1, 1], [], []>} : vector<8x128xbf16>, vector<128x512xbf16>, vector<8x512xf32> -> vector<8x512xf32>
    %650 = arith.addf %646, %649 : vector<8x512xf32>
    %651 = vector.extract_strided_slice %650 {offsets = [0, 0], sizes = [8, 128], strides = [1, 1]} : vector<8x512xf32> to vector<8x128xf32>
    %cst_458 = arith.constant 5.000000e-01 : f32
    %652 = vector.broadcast %cst_458 : f32 to vector<8x128xf32>
    %653 = arith.mulf %652, %651 : vector<8x128xf32>
    %654 = math.tanh %653 : vector<8x128xf32>
    %cst_459 = arith.constant 5.000000e-01 : f32
    %655 = vector.broadcast %cst_459 : f32 to vector<8x128xf32>
    %656 = arith.mulf %655, %654 : vector<8x128xf32>
    %cst_460 = arith.constant 5.000000e-01 : f32
    %657 = vector.broadcast %cst_460 : f32 to vector<8x128xf32>
    %658 = arith.addf %656, %657 : vector<8x128xf32>
    %659 = vector.extract_strided_slice %650 {offsets = [0, 128], sizes = [8, 128], strides = [1, 1]} : vector<8x512xf32> to vector<8x128xf32>
    %cst_461 = arith.constant 5.000000e-01 : f32
    %660 = vector.broadcast %cst_461 : f32 to vector<8x128xf32>
    %661 = arith.mulf %660, %659 : vector<8x128xf32>
    %662 = math.tanh %661 : vector<8x128xf32>
    %cst_462 = arith.constant 5.000000e-01 : f32
    %663 = vector.broadcast %cst_462 : f32 to vector<8x128xf32>
    %664 = arith.mulf %663, %662 : vector<8x128xf32>
    %cst_463 = arith.constant 5.000000e-01 : f32
    %665 = vector.broadcast %cst_463 : f32 to vector<8x128xf32>
    %666 = arith.addf %664, %665 : vector<8x128xf32>
    %667 = vector.extract_strided_slice %650 {offsets = [0, 256], sizes = [8, 128], strides = [1, 1]} : vector<8x512xf32> to vector<8x128xf32>
    %668 = math.tanh %667 : vector<8x128xf32>
    %669 = vector.extract_strided_slice %650 {offsets = [0, 384], sizes = [8, 128], strides = [1, 1]} : vector<8x512xf32> to vector<8x128xf32>
    %cst_464 = arith.constant 5.000000e-01 : f32
    %670 = vector.broadcast %cst_464 : f32 to vector<8x128xf32>
    %671 = arith.mulf %670, %669 : vector<8x128xf32>
    %672 = math.tanh %671 : vector<8x128xf32>
    %cst_465 = arith.constant 5.000000e-01 : f32
    %673 = vector.broadcast %cst_465 : f32 to vector<8x128xf32>
    %674 = arith.mulf %673, %672 : vector<8x128xf32>
    %cst_466 = arith.constant 5.000000e-01 : f32
    %675 = vector.broadcast %cst_466 : f32 to vector<8x128xf32>
    %676 = arith.addf %674, %675 : vector<8x128xf32>
    %677 = arith.mulf %666, %642 : vector<8x128xf32>
    %678 = arith.mulf %658, %668 : vector<8x128xf32>
    %679 = arith.addf %677, %678 : vector<8x128xf32>
    %680 = math.tanh %679 : vector<8x128xf32>
    %681 = arith.mulf %676, %680 : vector<8x128xf32>
    %c8_467 = arith.constant 8 : index
    %c0_468 = arith.constant 0 : index
    %682 = vector.load %arg17[%c8_467, %c0_468] : memref<64x128xf32, #tpu.memory_space<vmem>>, vector<8x128xf32>
    tpu.vector_store %arg17[%c8_467, %c0_468], %681 {strides = array<i32>} : memref<64x128xf32, #tpu.memory_space<vmem>>, vector<8x128xf32>,
    %c16_469 = arith.constant 16 : index
    %c0_470 = arith.constant 0 : index
    %683 = vector.load %arg15[%c16_469, %c0_470] : memref<64x512xf32, #tpu.memory_space<vmem>>, vector<8x512xf32>
    %684 = arith.truncf %681 : vector<8x128xf32> to vector<8x128xbf16>
    %c0_471 = arith.constant 0 : index
    %c0_472 = arith.constant 0 : index
    %685 = vector.load %arg7[%c0_471, %c0_472] : memref<128x512xbf16, #tpu.memory_space<vmem>>, vector<128x512xbf16>
    %cst_473 = arith.constant dense<0.000000e+00> : vector<8x512xf32>
    %686 = tpu.matmul %684, %685, %cst_473 {dimension_numbers = #tpu.dot_dimension_numbers<[1], [0], [0], [1], [0, 0, 1, 1], [], []>} : vector<8x128xbf16>, vector<128x512xbf16>, vector<8x512xf32> -> vector<8x512xf32>
    %687 = arith.addf %683, %686 : vector<8x512xf32>
    %688 = vector.extract_strided_slice %687 {offsets = [0, 0], sizes = [8, 128], strides = [1, 1]} : vector<8x512xf32> to vector<8x128xf32>
    %cst_474 = arith.constant 5.000000e-01 : f32
    %689 = vector.broadcast %cst_474 : f32 to vector<8x128xf32>
    %690 = arith.mulf %689, %688 : vector<8x128xf32>
    %691 = math.tanh %690 : vector<8x128xf32>
    %cst_475 = arith.constant 5.000000e-01 : f32
    %692 = vector.broadcast %cst_475 : f32 to vector<8x128xf32>
    %693 = arith.mulf %692, %691 : vector<8x128xf32>
    %cst_476 = arith.constant 5.000000e-01 : f32
    %694 = vector.broadcast %cst_476 : f32 to vector<8x128xf32>
    %695 = arith.addf %693, %694 : vector<8x128xf32>
    %696 = vector.extract_strided_slice %687 {offsets = [0, 128], sizes = [8, 128], strides = [1, 1]} : vector<8x512xf32> to vector<8x128xf32>
    %cst_477 = arith.constant 5.000000e-01 : f32
    %697 = vector.broadcast %cst_477 : f32 to vector<8x128xf32>
    %698 = arith.mulf %697, %696 : vector<8x128xf32>
    %699 = math.tanh %698 : vector<8x128xf32>
    %cst_478 = arith.constant 5.000000e-01 : f32
    %700 = vector.broadcast %cst_478 : f32 to vector<8x128xf32>
    %701 = arith.mulf %700, %699 : vector<8x128xf32>
    %cst_479 = arith.constant 5.000000e-01 : f32
    %702 = vector.broadcast %cst_479 : f32 to vector<8x128xf32>
    %703 = arith.addf %701, %702 : vector<8x128xf32>
    %704 = vector.extract_strided_slice %687 {offsets = [0, 256], sizes = [8, 128], strides = [1, 1]} : vector<8x512xf32> to vector<8x128xf32>
    %705 = math.tanh %704 : vector<8x128xf32>
    %706 = vector.extract_strided_slice %687 {offsets = [0, 384], sizes = [8, 128], strides = [1, 1]} : vector<8x512xf32> to vector<8x128xf32>
    %cst_480 = arith.constant 5.000000e-01 : f32
    %707 = vector.broadcast %cst_480 : f32 to vector<8x128xf32>
    %708 = arith.mulf %707, %706 : vector<8x128xf32>
    %709 = math.tanh %708 : vector<8x128xf32>
    %cst_481 = arith.constant 5.000000e-01 : f32
    %710 = vector.broadcast %cst_481 : f32 to vector<8x128xf32>
    %711 = arith.mulf %710, %709 : vector<8x128xf32>
    %cst_482 = arith.constant 5.000000e-01 : f32
    %712 = vector.broadcast %cst_482 : f32 to vector<8x128xf32>
    %713 = arith.addf %711, %712 : vector<8x128xf32>
    %714 = arith.mulf %703, %679 : vector<8x128xf32>
    %715 = arith.mulf %695, %705 : vector<8x128xf32>
    %716 = arith.addf %714, %715 : vector<8x128xf32>
    %717 = math.tanh %716 : vector<8x128xf32>
    %718 = arith.mulf %713, %717 : vector<8x128xf32>
    %c16_483 = arith.constant 16 : index
    %c0_484 = arith.constant 0 : index
    %719 = vector.load %arg17[%c16_483, %c0_484] : memref<64x128xf32, #tpu.memory_space<vmem>>, vector<8x128xf32>
    tpu.vector_store %arg17[%c16_483, %c0_484], %718 {strides = array<i32>} : memref<64x128xf32, #tpu.memory_space<vmem>>, vector<8x128xf32>,
    %c24_485 = arith.constant 24 : index
    %c0_486 = arith.constant 0 : index
    %720 = vector.load %arg15[%c24_485, %c0_486] : memref<64x512xf32, #tpu.memory_space<vmem>>, vector<8x512xf32>
    %721 = arith.truncf %718 : vector<8x128xf32> to vector<8x128xbf16>
    %c0_487 = arith.constant 0 : index
    %c0_488 = arith.constant 0 : index
    %722 = vector.load %arg7[%c0_487, %c0_488] : memref<128x512xbf16, #tpu.memory_space<vmem>>, vector<128x512xbf16>
    %cst_489 = arith.constant dense<0.000000e+00> : vector<8x512xf32>
    %723 = tpu.matmul %721, %722, %cst_489 {dimension_numbers = #tpu.dot_dimension_numbers<[1], [0], [0], [1], [0, 0, 1, 1], [], []>} : vector<8x128xbf16>, vector<128x512xbf16>, vector<8x512xf32> -> vector<8x512xf32>
    %724 = arith.addf %720, %723 : vector<8x512xf32>
    %725 = vector.extract_strided_slice %724 {offsets = [0, 0], sizes = [8, 128], strides = [1, 1]} : vector<8x512xf32> to vector<8x128xf32>
    %cst_490 = arith.constant 5.000000e-01 : f32
    %726 = vector.broadcast %cst_490 : f32 to vector<8x128xf32>
    %727 = arith.mulf %726, %725 : vector<8x128xf32>
    %728 = math.tanh %727 : vector<8x128xf32>
    %cst_491 = arith.constant 5.000000e-01 : f32
    %729 = vector.broadcast %cst_491 : f32 to vector<8x128xf32>
    %730 = arith.mulf %729, %728 : vector<8x128xf32>
    %cst_492 = arith.constant 5.000000e-01 : f32
    %731 = vector.broadcast %cst_492 : f32 to vector<8x128xf32>
    %732 = arith.addf %730, %731 : vector<8x128xf32>
    %733 = vector.extract_strided_slice %724 {offsets = [0, 128], sizes = [8, 128], strides = [1, 1]} : vector<8x512xf32> to vector<8x128xf32>
    %cst_493 = arith.constant 5.000000e-01 : f32
    %734 = vector.broadcast %cst_493 : f32 to vector<8x128xf32>
    %735 = arith.mulf %734, %733 : vector<8x128xf32>
    %736 = math.tanh %735 : vector<8x128xf32>
    %cst_494 = arith.constant 5.000000e-01 : f32
    %737 = vector.broadcast %cst_494 : f32 to vector<8x128xf32>
    %738 = arith.mulf %737, %736 : vector<8x128xf32>
    %cst_495 = arith.constant 5.000000e-01 : f32
    %739 = vector.broadcast %cst_495 : f32 to vector<8x128xf32>
    %740 = arith.addf %738, %739 : vector<8x128xf32>
    %741 = vector.extract_strided_slice %724 {offsets = [0, 256], sizes = [8, 128], strides = [1, 1]} : vector<8x512xf32> to vector<8x128xf32>
    %742 = math.tanh %741 : vector<8x128xf32>
    %743 = vector.extract_strided_slice %724 {offsets = [0, 384], sizes = [8, 128], strides = [1, 1]} : vector<8x512xf32> to vector<8x128xf32>
    %cst_496 = arith.constant 5.000000e-01 : f32
    %744 = vector.broadcast %cst_496 : f32 to vector<8x128xf32>
    %745 = arith.mulf %744, %743 : vector<8x128xf32>
    %746 = math.tanh %745 : vector<8x128xf32>
    %cst_497 = arith.constant 5.000000e-01 : f32
    %747 = vector.broadcast %cst_497 : f32 to vector<8x128xf32>
    %748 = arith.mulf %747, %746 : vector<8x128xf32>
    %cst_498 = arith.constant 5.000000e-01 : f32
    %749 = vector.broadcast %cst_498 : f32 to vector<8x128xf32>
    %750 = arith.addf %748, %749 : vector<8x128xf32>
    %751 = arith.mulf %740, %716 : vector<8x128xf32>
    %752 = arith.mulf %732, %742 : vector<8x128xf32>
    %753 = arith.addf %751, %752 : vector<8x128xf32>
    %754 = math.tanh %753 : vector<8x128xf32>
    %755 = arith.mulf %750, %754 : vector<8x128xf32>
    %c24_499 = arith.constant 24 : index
    %c0_500 = arith.constant 0 : index
    %756 = vector.load %arg17[%c24_499, %c0_500] : memref<64x128xf32, #tpu.memory_space<vmem>>, vector<8x128xf32>
    tpu.vector_store %arg17[%c24_499, %c0_500], %755 {strides = array<i32>} : memref<64x128xf32, #tpu.memory_space<vmem>>, vector<8x128xf32>,
    %c32_501 = arith.constant 32 : index
    %c0_502 = arith.constant 0 : index
    %757 = vector.load %arg15[%c32_501, %c0_502] : memref<64x512xf32, #tpu.memory_space<vmem>>, vector<8x512xf32>
    %758 = arith.truncf %755 : vector<8x128xf32> to vector<8x128xbf16>
    %c0_503 = arith.constant 0 : index
    %c0_504 = arith.constant 0 : index
    %759 = vector.load %arg7[%c0_503, %c0_504] : memref<128x512xbf16, #tpu.memory_space<vmem>>, vector<128x512xbf16>
    %cst_505 = arith.constant dense<0.000000e+00> : vector<8x512xf32>
    %760 = tpu.matmul %758, %759, %cst_505 {dimension_numbers = #tpu.dot_dimension_numbers<[1], [0], [0], [1], [0, 0, 1, 1], [], []>} : vector<8x128xbf16>, vector<128x512xbf16>, vector<8x512xf32> -> vector<8x512xf32>
    %761 = arith.addf %757, %760 : vector<8x512xf32>
    %762 = vector.extract_strided_slice %761 {offsets = [0, 0], sizes = [8, 128], strides = [1, 1]} : vector<8x512xf32> to vector<8x128xf32>
    %cst_506 = arith.constant 5.000000e-01 : f32
    %763 = vector.broadcast %cst_506 : f32 to vector<8x128xf32>
    %764 = arith.mulf %763, %762 : vector<8x128xf32>
    %765 = math.tanh %764 : vector<8x128xf32>
    %cst_507 = arith.constant 5.000000e-01 : f32
    %766 = vector.broadcast %cst_507 : f32 to vector<8x128xf32>
    %767 = arith.mulf %766, %765 : vector<8x128xf32>
    %cst_508 = arith.constant 5.000000e-01 : f32
    %768 = vector.broadcast %cst_508 : f32 to vector<8x128xf32>
    %769 = arith.addf %767, %768 : vector<8x128xf32>
    %770 = vector.extract_strided_slice %761 {offsets = [0, 128], sizes = [8, 128], strides = [1, 1]} : vector<8x512xf32> to vector<8x128xf32>
    %cst_509 = arith.constant 5.000000e-01 : f32
    %771 = vector.broadcast %cst_509 : f32 to vector<8x128xf32>
    %772 = arith.mulf %771, %770 : vector<8x128xf32>
    %773 = math.tanh %772 : vector<8x128xf32>
    %cst_510 = arith.constant 5.000000e-01 : f32
    %774 = vector.broadcast %cst_510 : f32 to vector<8x128xf32>
    %775 = arith.mulf %774, %773 : vector<8x128xf32>
    %cst_511 = arith.constant 5.000000e-01 : f32
    %776 = vector.broadcast %cst_511 : f32 to vector<8x128xf32>
    %777 = arith.addf %775, %776 : vector<8x128xf32>
    %778 = vector.extract_strided_slice %761 {offsets = [0, 256], sizes = [8, 128], strides = [1, 1]} : vector<8x512xf32> to vector<8x128xf32>
    %779 = math.tanh %778 : vector<8x128xf32>
    %780 = vector.extract_strided_slice %761 {offsets = [0, 384], sizes = [8, 128], strides = [1, 1]} : vector<8x512xf32> to vector<8x128xf32>
    %cst_512 = arith.constant 5.000000e-01 : f32
    %781 = vector.broadcast %cst_512 : f32 to vector<8x128xf32>
    %782 = arith.mulf %781, %780 : vector<8x128xf32>
    %783 = math.tanh %782 : vector<8x128xf32>
    %cst_513 = arith.constant 5.000000e-01 : f32
    %784 = vector.broadcast %cst_513 : f32 to vector<8x128xf32>
    %785 = arith.mulf %784, %783 : vector<8x128xf32>
    %cst_514 = arith.constant 5.000000e-01 : f32
    %786 = vector.broadcast %cst_514 : f32 to vector<8x128xf32>
    %787 = arith.addf %785, %786 : vector<8x128xf32>
    %788 = arith.mulf %777, %753 : vector<8x128xf32>
    %789 = arith.mulf %769, %779 : vector<8x128xf32>
    %790 = arith.addf %788, %789 : vector<8x128xf32>
    %791 = math.tanh %790 : vector<8x128xf32>
    %792 = arith.mulf %787, %791 : vector<8x128xf32>
    %c32_515 = arith.constant 32 : index
    %c0_516 = arith.constant 0 : index
    %793 = vector.load %arg17[%c32_515, %c0_516] : memref<64x128xf32, #tpu.memory_space<vmem>>, vector<8x128xf32>
    tpu.vector_store %arg17[%c32_515, %c0_516], %792 {strides = array<i32>} : memref<64x128xf32, #tpu.memory_space<vmem>>, vector<8x128xf32>,
    %c40_517 = arith.constant 40 : index
    %c0_518 = arith.constant 0 : index
    %794 = vector.load %arg15[%c40_517, %c0_518] : memref<64x512xf32, #tpu.memory_space<vmem>>, vector<8x512xf32>
    %795 = arith.truncf %792 : vector<8x128xf32> to vector<8x128xbf16>
    %c0_519 = arith.constant 0 : index
    %c0_520 = arith.constant 0 : index
    %796 = vector.load %arg7[%c0_519, %c0_520] : memref<128x512xbf16, #tpu.memory_space<vmem>>, vector<128x512xbf16>
    %cst_521 = arith.constant dense<0.000000e+00> : vector<8x512xf32>
    %797 = tpu.matmul %795, %796, %cst_521 {dimension_numbers = #tpu.dot_dimension_numbers<[1], [0], [0], [1], [0, 0, 1, 1], [], []>} : vector<8x128xbf16>, vector<128x512xbf16>, vector<8x512xf32> -> vector<8x512xf32>
    %798 = arith.addf %794, %797 : vector<8x512xf32>
    %799 = vector.extract_strided_slice %798 {offsets = [0, 0], sizes = [8, 128], strides = [1, 1]} : vector<8x512xf32> to vector<8x128xf32>
    %cst_522 = arith.constant 5.000000e-01 : f32
    %800 = vector.broadcast %cst_522 : f32 to vector<8x128xf32>
    %801 = arith.mulf %800, %799 : vector<8x128xf32>
    %802 = math.tanh %801 : vector<8x128xf32>
    %cst_523 = arith.constant 5.000000e-01 : f32
    %803 = vector.broadcast %cst_523 : f32 to vector<8x128xf32>
    %804 = arith.mulf %803, %802 : vector<8x128xf32>
    %cst_524 = arith.constant 5.000000e-01 : f32
    %805 = vector.broadcast %cst_524 : f32 to vector<8x128xf32>
    %806 = arith.addf %804, %805 : vector<8x128xf32>
    %807 = vector.extract_strided_slice %798 {offsets = [0, 128], sizes = [8, 128], strides = [1, 1]} : vector<8x512xf32> to vector<8x128xf32>
    %cst_525 = arith.constant 5.000000e-01 : f32
    %808 = vector.broadcast %cst_525 : f32 to vector<8x128xf32>
    %809 = arith.mulf %808, %807 : vector<8x128xf32>
    %810 = math.tanh %809 : vector<8x128xf32>
    %cst_526 = arith.constant 5.000000e-01 : f32
    %811 = vector.broadcast %cst_526 : f32 to vector<8x128xf32>
    %812 = arith.mulf %811, %810 : vector<8x128xf32>
    %cst_527 = arith.constant 5.000000e-01 : f32
    %813 = vector.broadcast %cst_527 : f32 to vector<8x128xf32>
    %814 = arith.addf %812, %813 : vector<8x128xf32>
    %815 = vector.extract_strided_slice %798 {offsets = [0, 256], sizes = [8, 128], strides = [1, 1]} : vector<8x512xf32> to vector<8x128xf32>
    %816 = math.tanh %815 : vector<8x128xf32>
    %817 = vector.extract_strided_slice %798 {offsets = [0, 384], sizes = [8, 128], strides = [1, 1]} : vector<8x512xf32> to vector<8x128xf32>
    %cst_528 = arith.constant 5.000000e-01 : f32
    %818 = vector.broadcast %cst_528 : f32 to vector<8x128xf32>
    %819 = arith.mulf %818, %817 : vector<8x128xf32>
    %820 = math.tanh %819 : vector<8x128xf32>
    %cst_529 = arith.constant 5.000000e-01 : f32
    %821 = vector.broadcast %cst_529 : f32 to vector<8x128xf32>
    %822 = arith.mulf %821, %820 : vector<8x128xf32>
    %cst_530 = arith.constant 5.000000e-01 : f32
    %823 = vector.broadcast %cst_530 : f32 to vector<8x128xf32>
    %824 = arith.addf %822, %823 : vector<8x128xf32>
    %825 = arith.mulf %814, %790 : vector<8x128xf32>
    %826 = arith.mulf %806, %816 : vector<8x128xf32>
    %827 = arith.addf %825, %826 : vector<8x128xf32>
    %828 = math.tanh %827 : vector<8x128xf32>
    %829 = arith.mulf %824, %828 : vector<8x128xf32>
    %c40_531 = arith.constant 40 : index
    %c0_532 = arith.constant 0 : index
    %830 = vector.load %arg17[%c40_531, %c0_532] : memref<64x128xf32, #tpu.memory_space<vmem>>, vector<8x128xf32>
    tpu.vector_store %arg17[%c40_531, %c0_532], %829 {strides = array<i32>} : memref<64x128xf32, #tpu.memory_space<vmem>>, vector<8x128xf32>,
    %c48_533 = arith.constant 48 : index
    %c0_534 = arith.constant 0 : index
    %831 = vector.load %arg15[%c48_533, %c0_534] : memref<64x512xf32, #tpu.memory_space<vmem>>, vector<8x512xf32>
    %832 = arith.truncf %829 : vector<8x128xf32> to vector<8x128xbf16>
    %c0_535 = arith.constant 0 : index
    %c0_536 = arith.constant 0 : index
    %833 = vector.load %arg7[%c0_535, %c0_536] : memref<128x512xbf16, #tpu.memory_space<vmem>>, vector<128x512xbf16>
    %cst_537 = arith.constant dense<0.000000e+00> : vector<8x512xf32>
    %834 = tpu.matmul %832, %833, %cst_537 {dimension_numbers = #tpu.dot_dimension_numbers<[1], [0], [0], [1], [0, 0, 1, 1], [], []>} : vector<8x128xbf16>, vector<128x512xbf16>, vector<8x512xf32> -> vector<8x512xf32>
    %835 = arith.addf %831, %834 : vector<8x512xf32>
    %836 = vector.extract_strided_slice %835 {offsets = [0, 0], sizes = [8, 128], strides = [1, 1]} : vector<8x512xf32> to vector<8x128xf32>
    %cst_538 = arith.constant 5.000000e-01 : f32
    %837 = vector.broadcast %cst_538 : f32 to vector<8x128xf32>
    %838 = arith.mulf %837, %836 : vector<8x128xf32>
    %839 = math.tanh %838 : vector<8x128xf32>
    %cst_539 = arith.constant 5.000000e-01 : f32
    %840 = vector.broadcast %cst_539 : f32 to vector<8x128xf32>
    %841 = arith.mulf %840, %839 : vector<8x128xf32>
    %cst_540 = arith.constant 5.000000e-01 : f32
    %842 = vector.broadcast %cst_540 : f32 to vector<8x128xf32>
    %843 = arith.addf %841, %842 : vector<8x128xf32>
    %844 = vector.extract_strided_slice %835 {offsets = [0, 128], sizes = [8, 128], strides = [1, 1]} : vector<8x512xf32> to vector<8x128xf32>
    %cst_541 = arith.constant 5.000000e-01 : f32
    %845 = vector.broadcast %cst_541 : f32 to vector<8x128xf32>
    %846 = arith.mulf %845, %844 : vector<8x128xf32>
    %847 = math.tanh %846 : vector<8x128xf32>
    %cst_542 = arith.constant 5.000000e-01 : f32
    %848 = vector.broadcast %cst_542 : f32 to vector<8x128xf32>
    %849 = arith.mulf %848, %847 : vector<8x128xf32>
    %cst_543 = arith.constant 5.000000e-01 : f32
    %850 = vector.broadcast %cst_543 : f32 to vector<8x128xf32>
    %851 = arith.addf %849, %850 : vector<8x128xf32>
    %852 = vector.extract_strided_slice %835 {offsets = [0, 256], sizes = [8, 128], strides = [1, 1]} : vector<8x512xf32> to vector<8x128xf32>
    %853 = math.tanh %852 : vector<8x128xf32>
    %854 = vector.extract_strided_slice %835 {offsets = [0, 384], sizes = [8, 128], strides = [1, 1]} : vector<8x512xf32> to vector<8x128xf32>
    %cst_544 = arith.constant 5.000000e-01 : f32
    %855 = vector.broadcast %cst_544 : f32 to vector<8x128xf32>
    %856 = arith.mulf %855, %854 : vector<8x128xf32>
    %857 = math.tanh %856 : vector<8x128xf32>
    %cst_545 = arith.constant 5.000000e-01 : f32
    %858 = vector.broadcast %cst_545 : f32 to vector<8x128xf32>
    %859 = arith.mulf %858, %857 : vector<8x128xf32>
    %cst_546 = arith.constant 5.000000e-01 : f32
    %860 = vector.broadcast %cst_546 : f32 to vector<8x128xf32>
    %861 = arith.addf %859, %860 : vector<8x128xf32>
    %862 = arith.mulf %851, %827 : vector<8x128xf32>
    %863 = arith.mulf %843, %853 : vector<8x128xf32>
    %864 = arith.addf %862, %863 : vector<8x128xf32>
    %865 = math.tanh %864 : vector<8x128xf32>
    %866 = arith.mulf %861, %865 : vector<8x128xf32>
    %c48_547 = arith.constant 48 : index
    %c0_548 = arith.constant 0 : index
    %867 = vector.load %arg17[%c48_547, %c0_548] : memref<64x128xf32, #tpu.memory_space<vmem>>, vector<8x128xf32>
    tpu.vector_store %arg17[%c48_547, %c0_548], %866 {strides = array<i32>} : memref<64x128xf32, #tpu.memory_space<vmem>>, vector<8x128xf32>,
    %c56_549 = arith.constant 56 : index
    %c0_550 = arith.constant 0 : index
    %868 = vector.load %arg15[%c56_549, %c0_550] : memref<64x512xf32, #tpu.memory_space<vmem>>, vector<8x512xf32>
    %869 = arith.truncf %866 : vector<8x128xf32> to vector<8x128xbf16>
    %c0_551 = arith.constant 0 : index
    %c0_552 = arith.constant 0 : index
    %870 = vector.load %arg7[%c0_551, %c0_552] : memref<128x512xbf16, #tpu.memory_space<vmem>>, vector<128x512xbf16>
    %cst_553 = arith.constant dense<0.000000e+00> : vector<8x512xf32>
    %871 = tpu.matmul %869, %870, %cst_553 {dimension_numbers = #tpu.dot_dimension_numbers<[1], [0], [0], [1], [0, 0, 1, 1], [], []>} : vector<8x128xbf16>, vector<128x512xbf16>, vector<8x512xf32> -> vector<8x512xf32>
    %872 = arith.addf %868, %871 : vector<8x512xf32>
    %873 = vector.extract_strided_slice %872 {offsets = [0, 0], sizes = [8, 128], strides = [1, 1]} : vector<8x512xf32> to vector<8x128xf32>
    %cst_554 = arith.constant 5.000000e-01 : f32
    %874 = vector.broadcast %cst_554 : f32 to vector<8x128xf32>
    %875 = arith.mulf %874, %873 : vector<8x128xf32>
    %876 = math.tanh %875 : vector<8x128xf32>
    %cst_555 = arith.constant 5.000000e-01 : f32
    %877 = vector.broadcast %cst_555 : f32 to vector<8x128xf32>
    %878 = arith.mulf %877, %876 : vector<8x128xf32>
    %cst_556 = arith.constant 5.000000e-01 : f32
    %879 = vector.broadcast %cst_556 : f32 to vector<8x128xf32>
    %880 = arith.addf %878, %879 : vector<8x128xf32>
    %881 = vector.extract_strided_slice %872 {offsets = [0, 128], sizes = [8, 128], strides = [1, 1]} : vector<8x512xf32> to vector<8x128xf32>
    %cst_557 = arith.constant 5.000000e-01 : f32
    %882 = vector.broadcast %cst_557 : f32 to vector<8x128xf32>
    %883 = arith.mulf %882, %881 : vector<8x128xf32>
    %884 = math.tanh %883 : vector<8x128xf32>
    %cst_558 = arith.constant 5.000000e-01 : f32
    %885 = vector.broadcast %cst_558 : f32 to vector<8x128xf32>
    %886 = arith.mulf %885, %884 : vector<8x128xf32>
    %cst_559 = arith.constant 5.000000e-01 : f32
    %887 = vector.broadcast %cst_559 : f32 to vector<8x128xf32>
    %888 = arith.addf %886, %887 : vector<8x128xf32>
    %889 = vector.extract_strided_slice %872 {offsets = [0, 256], sizes = [8, 128], strides = [1, 1]} : vector<8x512xf32> to vector<8x128xf32>
    %890 = math.tanh %889 : vector<8x128xf32>
    %891 = vector.extract_strided_slice %872 {offsets = [0, 384], sizes = [8, 128], strides = [1, 1]} : vector<8x512xf32> to vector<8x128xf32>
    %cst_560 = arith.constant 5.000000e-01 : f32
    %892 = vector.broadcast %cst_560 : f32 to vector<8x128xf32>
    %893 = arith.mulf %892, %891 : vector<8x128xf32>
    %894 = math.tanh %893 : vector<8x128xf32>
    %cst_561 = arith.constant 5.000000e-01 : f32
    %895 = vector.broadcast %cst_561 : f32 to vector<8x128xf32>
    %896 = arith.mulf %895, %894 : vector<8x128xf32>
    %cst_562 = arith.constant 5.000000e-01 : f32
    %897 = vector.broadcast %cst_562 : f32 to vector<8x128xf32>
    %898 = arith.addf %896, %897 : vector<8x128xf32>
    %899 = arith.mulf %888, %864 : vector<8x128xf32>
    %900 = arith.mulf %880, %890 : vector<8x128xf32>
    %901 = arith.addf %899, %900 : vector<8x128xf32>
    %902 = math.tanh %901 : vector<8x128xf32>
    %903 = arith.mulf %898, %902 : vector<8x128xf32>
    %c56_563 = arith.constant 56 : index
    %c0_564 = arith.constant 0 : index
    %904 = vector.load %arg17[%c56_563, %c0_564] : memref<64x128xf32, #tpu.memory_space<vmem>>, vector<8x128xf32>
    tpu.vector_store %arg17[%c56_563, %c0_564], %903 {strides = array<i32>} : memref<64x128xf32, #tpu.memory_space<vmem>>, vector<8x128xf32>,
    %c0_i32_565 = arith.constant 0 : i32
    %905 = arith.addi %0, %c0_i32_565 : i32
    %906 = arith.index_cast %905 : i32 to index
    %c0_566 = arith.constant 0 : index
    %907 = memref.load %arg2[%906, %c0_566] : memref<16x2xi32, #tpu.memory_space<smem>>
    %c0_i32_567 = arith.constant 0 : i32
    %908 = arith.addi %0, %c0_i32_567 : i32
    %909 = arith.index_cast %908 : i32 to index
    %c1_568 = arith.constant 1 : index
    %910 = memref.load %arg2[%909, %c1_568] : memref<16x2xi32, #tpu.memory_space<smem>>
    %c8_i32_569 = arith.constant 8 : i32
    %911 = arith.muli %907, %c8_i32_569 : i32
    %c0_i32_570 = arith.constant 0 : i32
    %912 = arith.addi %911, %c0_i32_570 : i32
    %913 = arith.index_cast %912 : i32 to index
    %c0_571 = arith.constant 0 : index
    %914 = vector.load %arg17[%913, %c0_571] : memref<64x128xf32, #tpu.memory_space<vmem>>, vector<1x128xf32>
    %c0_572 = arith.constant 0 : index
    %c0_573 = arith.constant 0 : index
    %915 = vector.load %arg18[%c0_572, %c0_573] : memref<16x128xf32, #tpu.memory_space<vmem>>, vector<1x128xf32>
    tpu.vector_store %arg18[%c0_572, %c0_573], %914 {strides = array<i32>} : memref<16x128xf32, #tpu.memory_space<vmem>>, vector<1x128xf32>,
    %c8_i32_574 = arith.constant 8 : i32
    %916 = arith.muli %910, %c8_i32_574 : i32
    %c0_i32_575 = arith.constant 0 : i32
    %917 = arith.addi %916, %c0_i32_575 : i32
    %918 = arith.index_cast %917 : i32 to index
    %c0_576 = arith.constant 0 : index
    %919 = vector.load %arg17[%918, %c0_576] : memref<64x128xf32, #tpu.memory_space<vmem>>, vector<1x128xf32>
    %c8_577 = arith.constant 8 : index
    %c0_578 = arith.constant 0 : index
    %920 = vector.load %arg18[%c8_577, %c0_578] : memref<16x128xf32, #tpu.memory_space<vmem>>, vector<1x128xf32>
    tpu.vector_store %arg18[%c8_577, %c0_578], %919 {strides = array<i32>} : memref<16x128xf32, #tpu.memory_space<vmem>>, vector<1x128xf32>,
    %c1_i32_579 = arith.constant 1 : i32
    %921 = arith.addi %0, %c1_i32_579 : i32
    %922 = arith.index_cast %921 : i32 to index
    %c0_580 = arith.constant 0 : index
    %923 = memref.load %arg2[%922, %c0_580] : memref<16x2xi32, #tpu.memory_space<smem>>
    %c1_i32_581 = arith.constant 1 : i32
    %924 = arith.addi %0, %c1_i32_581 : i32
    %925 = arith.index_cast %924 : i32 to index
    %c1_582 = arith.constant 1 : index
    %926 = memref.load %arg2[%925, %c1_582] : memref<16x2xi32, #tpu.memory_space<smem>>
    %c8_i32_583 = arith.constant 8 : i32
    %927 = arith.muli %923, %c8_i32_583 : i32
    %c1_i32_584 = arith.constant 1 : i32
    %928 = arith.addi %927, %c1_i32_584 : i32
    %929 = arith.index_cast %928 : i32 to index
    %c0_585 = arith.constant 0 : index
    %930 = vector.load %arg17[%929, %c0_585] : memref<64x128xf32, #tpu.memory_space<vmem>>, vector<1x128xf32>
    %c1_586 = arith.constant 1 : index
    %c0_587 = arith.constant 0 : index
    %931 = vector.load %arg18[%c1_586, %c0_587] : memref<16x128xf32, #tpu.memory_space<vmem>>, vector<1x128xf32>
    tpu.vector_store %arg18[%c1_586, %c0_587], %930 {strides = array<i32>} : memref<16x128xf32, #tpu.memory_space<vmem>>, vector<1x128xf32>,
    %c8_i32_588 = arith.constant 8 : i32
    %932 = arith.muli %926, %c8_i32_588 : i32
    %c1_i32_589 = arith.constant 1 : i32
    %933 = arith.addi %932, %c1_i32_589 : i32
    %934 = arith.index_cast %933 : i32 to index
    %c0_590 = arith.constant 0 : index
    %935 = vector.load %arg17[%934, %c0_590] : memref<64x128xf32, #tpu.memory_space<vmem>>, vector<1x128xf32>
    %c9_591 = arith.constant 9 : index
    %c0_592 = arith.constant 0 : index
    %936 = vector.load %arg18[%c9_591, %c0_592] : memref<16x128xf32, #tpu.memory_space<vmem>>, vector<1x128xf32>
    tpu.vector_store %arg18[%c9_591, %c0_592], %935 {strides = array<i32>} : memref<16x128xf32, #tpu.memory_space<vmem>>, vector<1x128xf32>,
    %c2_i32_593 = arith.constant 2 : i32
    %937 = arith.addi %0, %c2_i32_593 : i32
    %938 = arith.index_cast %937 : i32 to index
    %c0_594 = arith.constant 0 : index
    %939 = memref.load %arg2[%938, %c0_594] : memref<16x2xi32, #tpu.memory_space<smem>>
    %c2_i32_595 = arith.constant 2 : i32
    %940 = arith.addi %0, %c2_i32_595 : i32
    %941 = arith.index_cast %940 : i32 to index
    %c1_596 = arith.constant 1 : index
    %942 = memref.load %arg2[%941, %c1_596] : memref<16x2xi32, #tpu.memory_space<smem>>
    %c8_i32_597 = arith.constant 8 : i32
    %943 = arith.muli %939, %c8_i32_597 : i32
    %c2_i32_598 = arith.constant 2 : i32
    %944 = arith.addi %943, %c2_i32_598 : i32
    %945 = arith.index_cast %944 : i32 to index
    %c0_599 = arith.constant 0 : index
    %946 = vector.load %arg17[%945, %c0_599] : memref<64x128xf32, #tpu.memory_space<vmem>>, vector<1x128xf32>
    %c2_600 = arith.constant 2 : index
    %c0_601 = arith.constant 0 : index
    %947 = vector.load %arg18[%c2_600, %c0_601] : memref<16x128xf32, #tpu.memory_space<vmem>>, vector<1x128xf32>
    tpu.vector_store %arg18[%c2_600, %c0_601], %946 {strides = array<i32>} : memref<16x128xf32, #tpu.memory_space<vmem>>, vector<1x128xf32>,
    %c8_i32_602 = arith.constant 8 : i32
    %948 = arith.muli %942, %c8_i32_602 : i32
    %c2_i32_603 = arith.constant 2 : i32
    %949 = arith.addi %948, %c2_i32_603 : i32
    %950 = arith.index_cast %949 : i32 to index
    %c0_604 = arith.constant 0 : index
    %951 = vector.load %arg17[%950, %c0_604] : memref<64x128xf32, #tpu.memory_space<vmem>>, vector<1x128xf32>
    %c10_605 = arith.constant 10 : index
    %c0_606 = arith.constant 0 : index
    %952 = vector.load %arg18[%c10_605, %c0_606] : memref<16x128xf32, #tpu.memory_space<vmem>>, vector<1x128xf32>
    tpu.vector_store %arg18[%c10_605, %c0_606], %951 {strides = array<i32>} : memref<16x128xf32, #tpu.memory_space<vmem>>, vector<1x128xf32>,
    %c3_i32_607 = arith.constant 3 : i32
    %953 = arith.addi %0, %c3_i32_607 : i32
    %954 = arith.index_cast %953 : i32 to index
    %c0_608 = arith.constant 0 : index
    %955 = memref.load %arg2[%954, %c0_608] : memref<16x2xi32, #tpu.memory_space<smem>>
    %c3_i32_609 = arith.constant 3 : i32
    %956 = arith.addi %0, %c3_i32_609 : i32
    %957 = arith.index_cast %956 : i32 to index
    %c1_610 = arith.constant 1 : index
    %958 = memref.load %arg2[%957, %c1_610] : memref<16x2xi32, #tpu.memory_space<smem>>
    %c8_i32_611 = arith.constant 8 : i32
    %959 = arith.muli %955, %c8_i32_611 : i32
    %c3_i32_612 = arith.constant 3 : i32
    %960 = arith.addi %959, %c3_i32_612 : i32
    %961 = arith.index_cast %960 : i32 to index
    %c0_613 = arith.constant 0 : index
    %962 = vector.load %arg17[%961, %c0_613] : memref<64x128xf32, #tpu.memory_space<vmem>>, vector<1x128xf32>
    %c3_614 = arith.constant 3 : index
    %c0_615 = arith.constant 0 : index
    %963 = vector.load %arg18[%c3_614, %c0_615] : memref<16x128xf32, #tpu.memory_space<vmem>>, vector<1x128xf32>
    tpu.vector_store %arg18[%c3_614, %c0_615], %962 {strides = array<i32>} : memref<16x128xf32, #tpu.memory_space<vmem>>, vector<1x128xf32>,
    %c8_i32_616 = arith.constant 8 : i32
    %964 = arith.muli %958, %c8_i32_616 : i32
    %c3_i32_617 = arith.constant 3 : i32
    %965 = arith.addi %964, %c3_i32_617 : i32
    %966 = arith.index_cast %965 : i32 to index
    %c0_618 = arith.constant 0 : index
    %967 = vector.load %arg17[%966, %c0_618] : memref<64x128xf32, #tpu.memory_space<vmem>>, vector<1x128xf32>
    %c11_619 = arith.constant 11 : index
    %c0_620 = arith.constant 0 : index
    %968 = vector.load %arg18[%c11_619, %c0_620] : memref<16x128xf32, #tpu.memory_space<vmem>>, vector<1x128xf32>
    tpu.vector_store %arg18[%c11_619, %c0_620], %967 {strides = array<i32>} : memref<16x128xf32, #tpu.memory_space<vmem>>, vector<1x128xf32>,
    %c4_i32_621 = arith.constant 4 : i32
    %969 = arith.addi %0, %c4_i32_621 : i32
    %970 = arith.index_cast %969 : i32 to index
    %c0_622 = arith.constant 0 : index
    %971 = memref.load %arg2[%970, %c0_622] : memref<16x2xi32, #tpu.memory_space<smem>>
    %c4_i32_623 = arith.constant 4 : i32
    %972 = arith.addi %0, %c4_i32_623 : i32
    %973 = arith.index_cast %972 : i32 to index
    %c1_624 = arith.constant 1 : index
    %974 = memref.load %arg2[%973, %c1_624] : memref<16x2xi32, #tpu.memory_space<smem>>
    %c8_i32_625 = arith.constant 8 : i32
    %975 = arith.muli %971, %c8_i32_625 : i32
    %c4_i32_626 = arith.constant 4 : i32
    %976 = arith.addi %975, %c4_i32_626 : i32
    %977 = arith.index_cast %976 : i32 to index
    %c0_627 = arith.constant 0 : index
    %978 = vector.load %arg17[%977, %c0_627] : memref<64x128xf32, #tpu.memory_space<vmem>>, vector<1x128xf32>
    %c4_628 = arith.constant 4 : index
    %c0_629 = arith.constant 0 : index
    %979 = vector.load %arg18[%c4_628, %c0_629] : memref<16x128xf32, #tpu.memory_space<vmem>>, vector<1x128xf32>
    tpu.vector_store %arg18[%c4_628, %c0_629], %978 {strides = array<i32>} : memref<16x128xf32, #tpu.memory_space<vmem>>, vector<1x128xf32>,
    %c8_i32_630 = arith.constant 8 : i32
    %980 = arith.muli %974, %c8_i32_630 : i32
    %c4_i32_631 = arith.constant 4 : i32
    %981 = arith.addi %980, %c4_i32_631 : i32
    %982 = arith.index_cast %981 : i32 to index
    %c0_632 = arith.constant 0 : index
    %983 = vector.load %arg17[%982, %c0_632] : memref<64x128xf32, #tpu.memory_space<vmem>>, vector<1x128xf32>
    %c12_633 = arith.constant 12 : index
    %c0_634 = arith.constant 0 : index
    %984 = vector.load %arg18[%c12_633, %c0_634] : memref<16x128xf32, #tpu.memory_space<vmem>>, vector<1x128xf32>
    tpu.vector_store %arg18[%c12_633, %c0_634], %983 {strides = array<i32>} : memref<16x128xf32, #tpu.memory_space<vmem>>, vector<1x128xf32>,
    %c5_i32_635 = arith.constant 5 : i32
    %985 = arith.addi %0, %c5_i32_635 : i32
    %986 = arith.index_cast %985 : i32 to index
    %c0_636 = arith.constant 0 : index
    %987 = memref.load %arg2[%986, %c0_636] : memref<16x2xi32, #tpu.memory_space<smem>>
    %c5_i32_637 = arith.constant 5 : i32
    %988 = arith.addi %0, %c5_i32_637 : i32
    %989 = arith.index_cast %988 : i32 to index
    %c1_638 = arith.constant 1 : index
    %990 = memref.load %arg2[%989, %c1_638] : memref<16x2xi32, #tpu.memory_space<smem>>
    %c8_i32_639 = arith.constant 8 : i32
    %991 = arith.muli %987, %c8_i32_639 : i32
    %c5_i32_640 = arith.constant 5 : i32
    %992 = arith.addi %991, %c5_i32_640 : i32
    %993 = arith.index_cast %992 : i32 to index
    %c0_641 = arith.constant 0 : index
    %994 = vector.load %arg17[%993, %c0_641] : memref<64x128xf32, #tpu.memory_space<vmem>>, vector<1x128xf32>
    %c5_642 = arith.constant 5 : index
    %c0_643 = arith.constant 0 : index
    %995 = vector.load %arg18[%c5_642, %c0_643] : memref<16x128xf32, #tpu.memory_space<vmem>>, vector<1x128xf32>
    tpu.vector_store %arg18[%c5_642, %c0_643], %994 {strides = array<i32>} : memref<16x128xf32, #tpu.memory_space<vmem>>, vector<1x128xf32>,
    %c8_i32_644 = arith.constant 8 : i32
    %996 = arith.muli %990, %c8_i32_644 : i32
    %c5_i32_645 = arith.constant 5 : i32
    %997 = arith.addi %996, %c5_i32_645 : i32
    %998 = arith.index_cast %997 : i32 to index
    %c0_646 = arith.constant 0 : index
    %999 = vector.load %arg17[%998, %c0_646] : memref<64x128xf32, #tpu.memory_space<vmem>>, vector<1x128xf32>
    %c13_647 = arith.constant 13 : index
    %c0_648 = arith.constant 0 : index
    %1000 = vector.load %arg18[%c13_647, %c0_648] : memref<16x128xf32, #tpu.memory_space<vmem>>, vector<1x128xf32>
    tpu.vector_store %arg18[%c13_647, %c0_648], %999 {strides = array<i32>} : memref<16x128xf32, #tpu.memory_space<vmem>>, vector<1x128xf32>,
    %c6_i32_649 = arith.constant 6 : i32
    %1001 = arith.addi %0, %c6_i32_649 : i32
    %1002 = arith.index_cast %1001 : i32 to index
    %c0_650 = arith.constant 0 : index
    %1003 = memref.load %arg2[%1002, %c0_650] : memref<16x2xi32, #tpu.memory_space<smem>>
    %c6_i32_651 = arith.constant 6 : i32
    %1004 = arith.addi %0, %c6_i32_651 : i32
    %1005 = arith.index_cast %1004 : i32 to index
    %c1_652 = arith.constant 1 : index
    %1006 = memref.load %arg2[%1005, %c1_652] : memref<16x2xi32, #tpu.memory_space<smem>>
    %c8_i32_653 = arith.constant 8 : i32
    %1007 = arith.muli %1003, %c8_i32_653 : i32
    %c6_i32_654 = arith.constant 6 : i32
    %1008 = arith.addi %1007, %c6_i32_654 : i32
    %1009 = arith.index_cast %1008 : i32 to index
    %c0_655 = arith.constant 0 : index
    %1010 = vector.load %arg17[%1009, %c0_655] : memref<64x128xf32, #tpu.memory_space<vmem>>, vector<1x128xf32>
    %c6_656 = arith.constant 6 : index
    %c0_657 = arith.constant 0 : index
    %1011 = vector.load %arg18[%c6_656, %c0_657] : memref<16x128xf32, #tpu.memory_space<vmem>>, vector<1x128xf32>
    tpu.vector_store %arg18[%c6_656, %c0_657], %1010 {strides = array<i32>} : memref<16x128xf32, #tpu.memory_space<vmem>>, vector<1x128xf32>,
    %c8_i32_658 = arith.constant 8 : i32
    %1012 = arith.muli %1006, %c8_i32_658 : i32
    %c6_i32_659 = arith.constant 6 : i32
    %1013 = arith.addi %1012, %c6_i32_659 : i32
    %1014 = arith.index_cast %1013 : i32 to index
    %c0_660 = arith.constant 0 : index
    %1015 = vector.load %arg17[%1014, %c0_660] : memref<64x128xf32, #tpu.memory_space<vmem>>, vector<1x128xf32>
    %c14_661 = arith.constant 14 : index
    %c0_662 = arith.constant 0 : index
    %1016 = vector.load %arg18[%c14_661, %c0_662] : memref<16x128xf32, #tpu.memory_space<vmem>>, vector<1x128xf32>
    tpu.vector_store %arg18[%c14_661, %c0_662], %1015 {strides = array<i32>} : memref<16x128xf32, #tpu.memory_space<vmem>>, vector<1x128xf32>,
    %c7_i32_663 = arith.constant 7 : i32
    %1017 = arith.addi %0, %c7_i32_663 : i32
    %1018 = arith.index_cast %1017 : i32 to index
    %c0_664 = arith.constant 0 : index
    %1019 = memref.load %arg2[%1018, %c0_664] : memref<16x2xi32, #tpu.memory_space<smem>>
    %c7_i32_665 = arith.constant 7 : i32
    %1020 = arith.addi %0, %c7_i32_665 : i32
    %1021 = arith.index_cast %1020 : i32 to index
    %c1_666 = arith.constant 1 : index
    %1022 = memref.load %arg2[%1021, %c1_666] : memref<16x2xi32, #tpu.memory_space<smem>>
    %c8_i32_667 = arith.constant 8 : i32
    %1023 = arith.muli %1019, %c8_i32_667 : i32
    %c7_i32_668 = arith.constant 7 : i32
    %1024 = arith.addi %1023, %c7_i32_668 : i32
    %1025 = arith.index_cast %1024 : i32 to index
    %c0_669 = arith.constant 0 : index
    %1026 = vector.load %arg17[%1025, %c0_669] : memref<64x128xf32, #tpu.memory_space<vmem>>, vector<1x128xf32>
    %c7_670 = arith.constant 7 : index
    %c0_671 = arith.constant 0 : index
    %1027 = vector.load %arg18[%c7_670, %c0_671] : memref<16x128xf32, #tpu.memory_space<vmem>>, vector<1x128xf32>
    tpu.vector_store %arg18[%c7_670, %c0_671], %1026 {strides = array<i32>} : memref<16x128xf32, #tpu.memory_space<vmem>>, vector<1x128xf32>,
    %c8_i32_672 = arith.constant 8 : i32
    %1028 = arith.muli %1022, %c8_i32_672 : i32
    %c7_i32_673 = arith.constant 7 : i32
    %1029 = arith.addi %1028, %c7_i32_673 : i32
    %1030 = arith.index_cast %1029 : i32 to index
    %c0_674 = arith.constant 0 : index
    %1031 = vector.load %arg17[%1030, %c0_674] : memref<64x128xf32, #tpu.memory_space<vmem>>, vector<1x128xf32>
    %c15_675 = arith.constant 15 : index
    %c0_676 = arith.constant 0 : index
    %1032 = vector.load %arg18[%c15_675, %c0_676] : memref<16x128xf32, #tpu.memory_space<vmem>>, vector<1x128xf32>
    tpu.vector_store %arg18[%c15_675, %c0_676], %1031 {strides = array<i32>} : memref<16x128xf32, #tpu.memory_space<vmem>>, vector<1x128xf32>,
    %c0_677 = arith.constant 0 : index
    %c0_678 = arith.constant 0 : index
    %1033 = vector.load %arg18[%c0_677, %c0_678] : memref<16x128xf32, #tpu.memory_space<vmem>>, vector<8x128xf32>
    %1034 = arith.truncf %1033 : vector<8x128xf32> to vector<8x128xbf16>
    %c0_679 = arith.constant 0 : index
    %c0_680 = arith.constant 0 : index
    %1035 = vector.load %arg11[%c0_679, %c0_680] : memref<512x128xbf16, #tpu.memory_space<vmem>>, vector<128x128xbf16>
    %cst_681 = arith.constant dense<0.000000e+00> : vector<8x128xf32>
    %1036 = tpu.matmul %1034, %1035, %cst_681 {dimension_numbers = #tpu.dot_dimension_numbers<[1], [0], [0], [1], [0, 0, 1, 1], [], []>} : vector<8x128xbf16>, vector<128x128xbf16>, vector<8x128xf32> -> vector<8x128xf32>
    %1037 = arith.addf %603, %1036 : vector<8x128xf32>
    %c8_682 = arith.constant 8 : index
    %c0_683 = arith.constant 0 : index
    %1038 = vector.load %arg18[%c8_682, %c0_683] : memref<16x128xf32, #tpu.memory_space<vmem>>, vector<8x128xf32>
    %1039 = arith.truncf %1038 : vector<8x128xf32> to vector<8x128xbf16>
    %c128 = arith.constant 128 : index
    %c0_684 = arith.constant 0 : index
    %1040 = vector.load %arg11[%c128, %c0_684] : memref<512x128xbf16, #tpu.memory_space<vmem>>, vector<128x128xbf16>
    %cst_685 = arith.constant dense<0.000000e+00> : vector<8x128xf32>
    %1041 = tpu.matmul %1039, %1040, %cst_685 {dimension_numbers = #tpu.dot_dimension_numbers<[1], [0], [0], [1], [0, 0, 1, 1], [], []>} : vector<8x128xbf16>, vector<128x128xbf16>, vector<8x128xf32> -> vector<8x128xf32>
    %1042 = arith.addf %1037, %1041 : vector<8x128xf32>
    %c0_686 = arith.constant 0 : index
    %c0_687 = arith.constant 0 : index
    %1043 = vector.load %arg12[%c0_686, %c0_687] : memref<1x128xf32, #tpu.memory_space<vmem>>, vector<1x128xf32>
    %1044 = vector.broadcast %1043 : vector<1x128xf32> to vector<8x128xf32>
    %1045 = arith.addf %1042, %1044 : vector<8x128xf32>
    %cst_688 = arith.constant 0.000000e+00 : f32
    %1046 = vector.broadcast %cst_688 : f32 to vector<8x128xf32>
    %1047 = arith.maximumf %1045, %1046 : vector<8x128xf32>
    %c0_689 = arith.constant 0 : index
    %c0_690 = arith.constant 0 : index
    %1048 = vector.load %arg13[%c0_689, %c0_690] : memref<8x128xf32, #tpu.memory_space<vmem>>, vector<8x128xf32>
    tpu.vector_store %arg13[%c0_689, %c0_690], %1047 {strides = array<i32>} : memref<8x128xf32, #tpu.memory_space<vmem>>, vector<8x128xf32>,
    return
  }
  func.func @transform_0(%arg0: i32, %arg1: memref<16x8xi32, #tpu.memory_space<smem>>, %arg2: memref<16x2xi32, #tpu.memory_space<smem>>, %arg3: memref<16x4xi32, #tpu.memory_space<smem>>) -> (i32, i32) {
    %c0_i32 = arith.constant 0 : i32
    %c0_i32_0 = arith.constant 0 : i32
    %c0_i32_1 = arith.constant 0 : i32
    return %c0_i32, %c0_i32_0 : i32, i32
  }
  func.func @transform_1(%arg0: i32, %arg1: memref<16x8xi32, #tpu.memory_space<smem>>, %arg2: memref<16x2xi32, #tpu.memory_space<smem>>, %arg3: memref<16x4xi32, #tpu.memory_space<smem>>) -> (i32, i32) {
    %c0_i32 = arith.constant 0 : i32
    %c0_i32_0 = arith.constant 0 : i32
    %c0_i32_1 = arith.constant 0 : i32
    return %c0_i32, %c0_i32_0 : i32, i32
  }
  func.func @transform_2(%arg0: i32, %arg1: memref<16x8xi32, #tpu.memory_space<smem>>, %arg2: memref<16x2xi32, #tpu.memory_space<smem>>, %arg3: memref<16x4xi32, #tpu.memory_space<smem>>) -> (i32, i32) {
    %c0_i32 = arith.constant 0 : i32
    %c0_i32_0 = arith.constant 0 : i32
    %c0_i32_1 = arith.constant 0 : i32
    return %c0_i32, %c0_i32_0 : i32, i32
  }
  func.func @transform_3(%arg0: i32, %arg1: memref<16x8xi32, #tpu.memory_space<smem>>, %arg2: memref<16x2xi32, #tpu.memory_space<smem>>, %arg3: memref<16x4xi32, #tpu.memory_space<smem>>) -> (i32, i32) {
    %c0_i32 = arith.constant 0 : i32
    %c0_i32_0 = arith.constant 0 : i32
    %c0_i32_1 = arith.constant 0 : i32
    return %c0_i32, %c0_i32_0 : i32, i32
  }
  func.func @transform_4(%arg0: i32, %arg1: memref<16x8xi32, #tpu.memory_space<smem>>, %arg2: memref<16x2xi32, #tpu.memory_space<smem>>, %arg3: memref<16x4xi32, #tpu.memory_space<smem>>) -> (i32, i32) {
    %c0_i32 = arith.constant 0 : i32
    %c0_i32_0 = arith.constant 0 : i32
    %c0_i32_1 = arith.constant 0 : i32
    return %c0_i32, %c0_i32_0 : i32, i32
  }
  func.func @transform_5(%arg0: i32, %arg1: memref<16x8xi32, #tpu.memory_space<smem>>, %arg2: memref<16x2xi32, #tpu.memory_space<smem>>, %arg3: memref<16x4xi32, #tpu.memory_space<smem>>) -> (i32, i32) {
    %c0_i32 = arith.constant 0 : i32
    %c0_i32_0 = arith.constant 0 : i32
    return %arg0, %c0_i32 : i32, i32
  }
  func.func @transform_6(%arg0: i32, %arg1: memref<16x8xi32, #tpu.memory_space<smem>>, %arg2: memref<16x2xi32, #tpu.memory_space<smem>>, %arg3: memref<16x4xi32, #tpu.memory_space<smem>>) -> (i32, i32) {
    %c0_i32 = arith.constant 0 : i32
    %c0_i32_0 = arith.constant 0 : i32
    return %arg0, %c0_i32 : i32, i32
  }
  func.func @transform_7(%arg0: i32, %arg1: memref<16x8xi32, #tpu.memory_space<smem>>, %arg2: memref<16x2xi32, #tpu.memory_space<smem>>, %arg3: memref<16x4xi32, #tpu.memory_space<smem>>) -> (i32, i32) {
    %c0_i32 = arith.constant 0 : i32
    %c0_i32_0 = arith.constant 0 : i32
    %c0_i32_1 = arith.constant 0 : i32
    return %c0_i32, %c0_i32_0 : i32, i32
  }
  func.func @transform_8(%arg0: i32, %arg1: memref<16x8xi32, #tpu.memory_space<smem>>, %arg2: memref<16x2xi32, #tpu.memory_space<smem>>, %arg3: memref<16x4xi32, #tpu.memory_space<smem>>) -> (i32, i32) {
    %c0_i32 = arith.constant 0 : i32
    %c0_i32_0 = arith.constant 0 : i32
    %c0_i32_1 = arith.constant 0 : i32
    return %c0_i32, %c0_i32_0 : i32, i32
  }
  func.func @transform_9(%arg0: i32, %arg1: memref<16x8xi32, #tpu.memory_space<smem>>, %arg2: memref<16x2xi32, #tpu.memory_space<smem>>, %arg3: memref<16x4xi32, #tpu.memory_space<smem>>) -> (i32, i32) {
    %c0_i32 = arith.constant 0 : i32
    %c0_i32_0 = arith.constant 0 : i32
    return %arg0, %c0_i32 : i32, i32
  }
}

</mosaic_0001>

<bundles_post_ra>
// kernel: forward_siam.1
= control target key start
LH: loop header
LB: loop body
LE: loop exit
PB: predicated region body
PF: predicated region fallthrough
CT: control target
= control target key end

     0   :  { %s7044_s0 = inlined_call_operand.vmem [shape: s32[16,8], index: 0, kind: input, shape index: {}]   ;;  %s7045_s3 = inlined_call_operand.vmem [shape: f32[487,64], index: 3, kind: input, shape index: {}]   ;;  %s7046_s4 = inlined_call_operand.vmem [shape: f32[487,64], index: 4, kind: input, shape index: {}]   ;;  %s7047_s5 = inlined_call_operand.vmem [shape: bf16[64,512], index: 5, kind: input, shape index: {}]   ;;  %s7048_s6 = inlined_call_operand.vmem [shape: bf16[128,512], index: 6, kind: input, shape index: {}]   ;;  %s7049_s7 = inlined_call_operand.vmem [shape: f32[1,512], index: 7, kind: input, shape index: {}]   ;;  %s7050_s8 = inlined_call_operand.vmem [shape: f32[16,64], index: 8, kind: input, shape index: {}]   ;;  %s7051_s9 = inlined_call_operand.vmem [shape: f32[16,64], index: 9, kind: input, shape index: {}]   ;;  %s7052_s10 = inlined_call_operand.vmem [shape: bf16[512,128], index: 10, kind: input, shape index: {}]   ;;  %s7053_s11 = inlined_call_operand.vmem [shape: f32[1,128], index: 11, kind: input, shape index: {}]   ;;  %s7054_s12 = inlined_call_operand.vmem [shape: f32[16,128], index: 12, kind: output, shape index: {}]   ;;  %s7055_s1 = inlined_call_operand.vmem [shape: s32[16,2], index: 1, kind: input, shape index: {}]   ;;  %s7056_s2 = inlined_call_operand.vmem [shape: s32[16,4], index: 2, kind: input, shape index: {}]  }
   0x1   :  { %7101 = sst [smem:[#allocation56_spill]] %s7045_s3  ;;  %s17_s23 = sshll.u32 %s7044_s0, 4  ;;  %s18_s23 = int_to_ptr.vmem [resolvable:$true] %s17_s23 }
   0x2   :  { %7102 = sst [smem:[#allocation57_spill]] %s7047_s5  ;;  %s21_s26 = sshll.u32 %s7055_s1, 4  ;;  %s22_s26 = int_to_ptr.vmem [resolvable:$true] %s21_s26 }
   0x3   :  { %7103 = sst [smem:[#allocation58_spill]] %s7048_s6  ;;  %s5168_s27 = scalar_lea.vmem %s18_s23, 256 }
   0x4   :  { %7104 = sst [smem:[#allocation59_spill]] %s7049_s7  ;;  %p5169_p0 = scmp.ne.s32.totalorder %s18_s23, %s5168_s27 }
   0x5   :  { %7105 = sst [smem:[#allocation60_spill]] %s7050_s8  ;;  %p5173_p1 = scmp.lt.s32.totalorder %s18_s23, %s18_s23 }
   0x6   :  { %7106 = sst [smem:[#allocation61_spill]] %s7051_s9  ;;  %p5174_p2 = scmp.lt.s32.totalorder %s5168_s27, %s5168_s27 }
   0x7   :  { %7107 = sst [smem:[#allocation62_spill]] %s7052_s10 }
   0x8   :  { %7108 = sst [smem:[#allocation63_spill]] %s7053_s11  ;;  %p5175_p3 = por %p5174_p2, %p5173_p1 }
   0x9   :  { %7109 = sst [smem:[#allocation64_spill]] %s7054_s12 }
   0xa   :  { %p5176_p4 = pnand %p5175_p3, %p5169_p0 }
   0xc   :  { %5179 = shalt.err (!%p5176_p4)  }
   0xd   :  { %s5214_s28 = smov [#allocation8]   ;;  %s5180_s29 = scalar_lea.vmem %s22_s26, 256 }
   0xe   :  { %20 = dma.vmem_to_smem %s18_s23, 256, %s5214_s28, [#allocation7] }
   0xf   :  { %p5181_p5 = scmp.ne.s32.totalorder %s22_s26, %s5180_s29  ;;  %p5185_p6 = scmp.lt.s32.totalorder %s22_s26, %s22_s26 }
  0x10   :  { %p5186_p7 = scmp.lt.s32.totalorder %s5180_s29, %s5180_s29 }
  0x12   :  { %p5187_p8 = por %p5186_p7, %p5185_p6 }
  0x14   :  { %p5188_p9 = pnand %p5187_p8, %p5181_p5 }
  0x16   :  { %5191 = shalt.err (!%p5188_p9)  }
  0x17   :  { %s5215_s0 = smov [#allocation9]   ;;  %s25_s13 = sshll.u32 %s7056_s2, 4  ;;  %s26_s13 = int_to_ptr.vmem [resolvable:$true] %s25_s13 }
  0x18   :  { %24 = dma.vmem_to_smem %s22_s26, 256, %s5215_s0, [#allocation7] }
  0x19   :  { %s5192_s14 = scalar_lea.vmem %s26_s13, 256  ;;  %p5197_p11 = scmp.lt.s32.totalorder %s26_s13, %s26_s13 }
  0x1a   :  { %p5193_p10 = scmp.ne.s32.totalorder %s26_s13, %s5192_s14  ;;  %p5198_p12 = scmp.lt.s32.totalorder %s5192_s14, %s5192_s14 }
  0x1c   :  { %p5199_p13 = por %p5198_p12, %p5197_p11 }
  0x1e   :  { %p5200_p0 = pnand %p5199_p13, %p5193_p10 }
  0x20   :  { %5203 = shalt.err (!%p5200_p0)  }
  0x21   :  { %s5216_s15 = smov [#allocation10]  }
  0x22   :  { %28 = dma.vmem_to_smem %s26_s13, 256, %s5216_s15, [#allocation7] }
  0x23   :  { %5208 = dma.done.wait [#allocation7], 768 }
  0x24   :  { %5209 = vsyncadd [#allocation7], 4294966528 }
  0x25   :  { %30 = sfence }
  0x26   :  { %s5294_s16 = smov 0  }
  0x27 LB: > { %7110 = sst [smem:[#allocation12_spill]] %s5212_s16  ;;  %s5300_s2 = sadd.s32 4294967295, %s5212_s16   ;;  %s5212_s16 = sphi %s5294_s16, %s36_s16  }
  0x28   : > { %7111 = sst [smem:[#allocation13_spill]] %s5300_s2  ;;  %p4400_p1 = scmp.ge.s32.totalorder %s5212_s16, 1 }
  0x29   : > { %p312_p2 = scmp.lt.s32.totalorder %s5212_s16, 3 }
  0x2b   : > { %p313_p3 = pnand %p4400_p1, %p312_p2 }
  0x2d   : > { %316 = sbr.rel (%p313_p3) target bundleno = 2529 (0x9e1), region = 56 }
  0x34   : > { %s7112_s5 = sld [smem:[#allocation57_spill]]  ;;  %v7099_v2 = vmov 0   ;;  %s5313_s21 = sshll.u32 %s5300_s2, 10  ;;  %vm368_vm0 = vcmask 516096   ;;  %v7097_v22 = vmov 0.0   ;;  %vm950_vm1 = vcmask 523264  }
  0x35   : > { %995 = vmatprep.mubr.bf16.mxu0 %v7099_v2  ;;  %1068 = vmatprep.mubr.bf16.mxu1 %v7099_v2  ;;  %s5322_s26 = sld [smem:[#allocation8 + %s5313_s21]]  ;;  %s5331_s1 = sadd.s32 1, %s5313_s21  ;;  %vm5219_vm2 = vmmov 0   ;;  %vm4489_vm3 = vmpackc.low %vm950_vm1, %vm950_vm1 }
  0x36   : > { %7113 = sst [smem:[#allocation14_spill]] %s5331_s1  ;;  %s5340_s15 = sadd.s32 128, %s5313_s21 }
  0x37   : > { %s5337_s14 = sld [smem:[#allocation8 + %s5331_s1]]  ;;  %s5349_s20 = sadd.s32 1, %s5340_s15 }
  0x38   : > { %s5346_s19 = sld [smem:[#allocation8 + %s5340_s15]]  ;;  %s5364_s0 = sadd.s32 256, %s5313_s21 }
  0x39   : > { %7114 = sst [smem:[#allocation15_spill]] %s5349_s20  ;;  %s7115_s3 = sld [smem:[#allocation56_spill]] }
  0x3a   : > { %v4930_v0 = vld [vmem:[%s7112_s5 + $0x4] ss:$16 sps:$4 sm:$0xff]   ;;  %v4932_v1 = vld [vmem:[%s7112_s5] ss:$16 sps:$4 sm:$0xff]   ;;  %v4933_v3 = vld [vmem:[%s7112_s5 + $0xc] ss:$16 sps:$4 sm:$0xff]  }
  0x3b   : > { %963 = vmatprep.subr.bf16.mxu0 %v4930_v0  ;;  %v4935_v4 = vld [vmem:[%s7112_s5 + $0x8] ss:$16 sps:$4 sm:$0xff]   ;;  %v4936_v5 = vld [vmem:[%s7112_s5 + $0x24] ss:$16 sps:$4 sm:$0xff]   ;;  %v4938_v6 = vld [vmem:[%s7112_s5 + $0x20] ss:$16 sps:$4 sm:$0xff]   ;;  %1036 = vmatprep.subr.bf16.mxu1 %v4933_v3 }
  0x3c   : > { %964 = vmatpush1.bf16.msra.mxu0 %v4932_v1  ;;  %v4939_v7 = vld [vmem:[%s7112_s5 + $0x2c] ss:$16 sps:$4 sm:$0xff]   ;;  %1037 = vmatpush1.bf16.msra.mxu1 %v4935_v4  ;;  %v4941_v8 = vld [vmem:[%s7112_s5 + $0x28] ss:$16 sps:$4 sm:$0xff]   ;;  %v4942_v9 = vld [vmem:[%s7112_s5 + $0x44] ss:$16 sps:$4 sm:$0xff]  }
  0x3d   : > { %965 = vmatprep.subr.bf16.mxu0 %v4936_v5  ;;  %1038 = vmatprep.subr.bf16.mxu1 %v4939_v7  ;;  %s5355_s24 = sld [smem:[#allocation8 + %s5349_s20]]  ;;  %v4944_v10 = vld [vmem:[%s7112_s5 + $0x40] ss:$16 sps:$4 sm:$0xff]   ;;  %v4945_v11 = vld [vmem:[%s7112_s5 + $0x4c] ss:$16 sps:$4 sm:$0xff]   ;;  %s5380_s28 = sadd.s32 1, %s5364_s0 }
  0x3e   : > { %v4948_v12 = vld [vmem:[%s7112_s5 + $0x64] ss:$16 sps:$4 sm:$0xff]   ;;  %s5374_s23 = sld [smem:[#allocation8 + %s5364_s0]]  ;;  %v4947_v13 = vld [vmem:[%s7112_s5 + $0x48] ss:$16 sps:$4 sm:$0xff]   ;;  %s5383_s29 = sadd.s32 384, %s5313_s21 }
  0x3f   : > { %s366_s22 = scalar_lea.vmem %s7115_s3, %s5322_s26  ;;  %7116 = sst [smem:[#allocation16_spill]] %s5380_s28  ;;  %v4950_v14 = vld [vmem:[%s7112_s5 + $0x60] ss:$16 sps:$4 sm:$0xff]   ;;  %v4951_v15 = vld [vmem:[%s7112_s5 + $0x6c] ss:$16 sps:$4 sm:$0xff]  }
  0x40   : > { %966 = vmatpush1.bf16.msra.mxu0 %v4938_v6  ;;  %1039 = vmatpush1.bf16.msra.mxu1 %v4941_v8  ;;  %7117 = sst [smem:[#allocation17_spill]] %s5383_s29  ;;  %v367_v16 = vld [vmem:[%s366_s22] sm:$0x1]  ;;  %s372_s27 = scalar_lea.vmem %s7115_s3, %s5337_s14  ;;  %v4953_v17 = vld [vmem:[%s7112_s5 + $0x68] ss:$16 sps:$4 sm:$0xff]  }
  0x41   : > { %967 = vmatprep.subr.bf16.mxu0 %v4942_v9  ;;  %1040 = vmatprep.subr.bf16.mxu1 %v4945_v11  ;;  %369 = vst.msk [vmem:[#allocation2] sm:$0x1] %vm368_vm0, %v367_v16  ;;  %v373_v18 = vld [vmem:[%s372_s27] sm:$0x1]  ;;  %s408_s26 = scalar_lea.vmem %s7115_s3, %s5346_s19  ;;  %s453_s22 = sld [smem:[#allocation8 + %s5380_s28]] }
  0x42   : > { %374 = vst.msk [vmem:[#allocation2 + $0x8] sm:$0x1] %vm368_vm0, %v373_v18  ;;  %v409_v19 = vld [vmem:[%s408_s26] sm:$0x1]  ;;  %s489_s25 = sld [smem:[#allocation8 + %s5383_s29]]  ;;  %s5412_s12 = sadd.s32 1, %s5383_s29 }
  0x43   : > { %s413_s18 = scalar_lea.vmem %s7115_s3, %s5355_s24  ;;  %410 = vst.msk [vmem:[#allocation2 + $0x1] sm:$0x1] %vm368_vm0, %v409_v19  ;;  %7118 = sst [smem:[#allocation18_spill]] %s5412_s12 }
  0x44   : > { %968 = vmatpush1.bf16.msra.mxu0 %v4944_v10  ;;  %1041 = vmatpush1.bf16.msra.mxu1 %v4947_v13  ;;  %v414_v20 = vld [vmem:[%s413_s18] sm:$0x1]  ;;  %s5415_s16 = sadd.s32 512, %s5313_s21  ;;  %s449_s24 = scalar_lea.vmem %s7115_s3, %s5374_s23 }
  0x45   : > { %969 = vmatprep.subr.bf16.mxu0 %v4948_v12  ;;  %7119 = sst [smem:[#allocation19_spill]] %s5415_s16  ;;  %1042 = vmatprep.subr.bf16.mxu1 %v4951_v15  ;;  %415 = vst.msk [vmem:[#allocation2 + $0x9] sm:$0x1] %vm368_vm0, %v414_v20  ;;  %v450_v21 = vld [vmem:[%s449_s24] sm:$0x1]  ;;  %s5425_s26 = sadd.s32 1, %s5415_s16 }
  0x46   : > { %s494_s30 = sld [smem:[#allocation8 + %s5412_s12]]  ;;  %451 = vst.msk [vmem:[#allocation2 + $0x2] sm:$0x1] %vm368_vm0, %v450_v21  ;;  %s5431_s17 = sadd.s32 640, %s5313_s21 }
  0x47   : > { %s530_s13 = sld [smem:[#allocation8 + %s5415_s16]]  ;;  %s454_s19 = scalar_lea.vmem %s7115_s3, %s453_s22 }
  0x48   : > { %970 = vmatpush1.bf16.msra.mxu0 %v4950_v14  ;;  %7120 = sst [smem:[#allocation20_spill]] %s5425_s26  ;;  %1043 = vmatpush1.bf16.msra.mxu1 %v4953_v17  ;;  %v455_v23 = vld [vmem:[%s454_s19] sm:$0x1]  ;;  %s490_s11 = scalar_lea.vmem %s7115_s3, %s489_s25 }
  0x49   : > { %4828 = vmatprep.subr.bf16.mxu0 %v7097_v22  ;;  %s535_s14 = sld [smem:[#allocation8 + %s5425_s26]]  ;;  %s5441_s9 = sadd.s32 1, %s5431_s17  ;;  %4840 = vmatprep.subr.bf16.mxu1 %v7097_v22  ;;  %456 = vst.msk [vmem:[#allocation2 + $0xa] sm:$0x1] %vm368_vm0, %v455_v23  ;;  %v491_v24 = vld [vmem:[%s490_s11] sm:$0x1] }
  0x4a   : > { %7121 = sst [smem:[#allocation21_spill]] %s5431_s17  ;;  %s5447_s8 = sadd.s32 768, %s5313_s21  ;;  %492 = vst.msk [vmem:[#allocation2 + $0x3] sm:$0x1] %vm368_vm0, %v491_v24 }
  0x4b   : > { %s571_s27 = sld [smem:[#allocation8 + %s5431_s17]]  ;;  %s5458_s2 = sadd.s32 1, %s5447_s8 }
  0x4c   : > { %7122 = sst [smem:[#allocation22_spill]] %s5441_s9  ;;  %s495_s5 = scalar_lea.vmem %s7115_s3, %s494_s30 }
  0x4d   : > { %s576_s7 = sld [smem:[#allocation8 + %s5441_s9]]  ;;  %v496_v25 = vld [vmem:[%s495_s5] sm:$0x1]  ;;  %s531_s24 = scalar_lea.vmem %s7115_s3, %s530_s13 }
  0x4e   : > { %7123 = sst [smem:[#allocation23_spill]] %s5447_s8  ;;  %497 = vst.msk [vmem:[#allocation2 + $0xb] sm:$0x1] %vm368_vm0, %v496_v25  ;;  %v532_v26 = vld [vmem:[%s531_s24] sm:$0x1]  ;;  %s5470_s23 = sadd.s32 896, %s5313_s21 }
  0x4f   : > { %s612_s25 = sld [smem:[#allocation8 + %s5447_s8]]  ;;  %s536_s17 = scalar_lea.vmem %s7115_s3, %s535_s14  ;;  %533 = vst.msk [vmem:[#allocation2 + $0x4] sm:$0x1] %vm368_vm0, %v532_v26 }
  0x50   : > { %7124 = sst [smem:[#allocation24_spill]] %s5458_s2  ;;  %v537_v27 = vld [vmem:[%s536_s17] sm:$0x1]  ;;  %s5475_s14 = sadd.s32 1, %s5470_s23 }
  0x51   : > { %s617_s16 = sld [smem:[#allocation8 + %s5458_s2]]  ;;  %s572_s13 = scalar_lea.vmem %s7115_s3, %s571_s27  ;;  %538 = vst.msk [vmem:[#allocation2 + $0xc] sm:$0x1] %vm368_vm0, %v537_v27 }
  0x52   : > { %7125 = sst [smem:[#allocation25_spill]] %s5470_s23  ;;  %v573_v28 = vld [vmem:[%s572_s13] sm:$0x1]  ;;  %s7127_s10 = sld [smem:[#allocation62_spill]] }
  0x53   : > { %s653_s6 = sld [smem:[#allocation8 + %s5470_s23]]  ;;  %574 = vst.msk [vmem:[#allocation2 + $0x5] sm:$0x1] %vm368_vm0, %v573_v28  ;;  %s577_s27 = scalar_lea.vmem %s7115_s3, %s576_s7 }
  0x54   : > { %7126 = sst [smem:[#allocation26_spill]] %s5475_s14  ;;  %v578_v29 = vld [vmem:[%s577_s27] sm:$0x1] }
  0x55   : > { %s658_s18 = sld [smem:[#allocation8 + %s5475_s14]]  ;;  %s613_s11 = scalar_lea.vmem %s7115_s3, %s612_s25  ;;  %579 = vst.msk [vmem:[#allocation2 + $0xd] sm:$0x1] %vm368_vm0, %v578_v29 }
  0x56   : > { %s696_s30 = sld [smem:[#allocation10 + %s5331_s1]]  ;;  %v614_v30 = vld [vmem:[%s613_s11] sm:$0x1]  ;;  %s7082_s11 = sadd.s32 2, %s5313_s21 }
  0x57   : > { %s712_s22 = sld [smem:[#allocation10 + %s5349_s20]]  ;;  %615 = vst.msk [vmem:[#allocation2 + $0x6] sm:$0x1] %vm368_vm0, %v614_v30  ;;  %s618_s7 = scalar_lea.vmem %s7115_s3, %s617_s16 }
  0x58   : > { %s728_s13 = sld [smem:[#allocation10 + %s5380_s28]]  ;;  %v619_v31 = vld [vmem:[%s618_s7] sm:$0x1]  ;;  %v4956_v47 = vld [vmem:[%s7127_s10 + $0xa8] sm:$0xff]   ;;  %v4958_v49 = vld [vmem:[%s7127_s10 + $0xb0] sm:$0xff]   ;;  %s7139_s25 = sadd.s32 2, %s5364_s0 }
  0x59   : > { %s744_s17 = sld [smem:[#allocation10 + %s5412_s12]]  ;;  %620 = vst.msk [vmem:[#allocation2 + $0xe] sm:$0x1] %vm368_vm0, %v619_v31  ;;  %s654_s24 = scalar_lea.vmem %s7115_s3, %s653_s6  ;;  %v4954_v44 = vld [vmem:[%s7127_s10 + $0xa0] sm:$0xff]   ;;  %v4957_v48 = vld [vmem:[%s7127_s10 + $0x88] sm:$0xff]   ;;  %v4959_v50 = vld [vmem:[%s7127_s10 + $0x90] sm:$0xff]  }
  0x5a   : > { %s760_s5 = sld [smem:[#allocation10 + %s5425_s26]]  ;;  %v655_v32 = vld [vmem:[%s654_s24] sm:$0x1]  ;;  %v4960_v51 = vld [vmem:[%s7127_s10 + $0xb8] sm:$0xff]  }
  0x5b   : > { %s776_s27 = sld [smem:[#allocation10 + %s5441_s9]]  ;;  %s659_s20 = scalar_lea.vmem %s7115_s3, %s658_s18  ;;  %656 = vst.msk [vmem:[#allocation2 + $0x7] sm:$0x1] %vm368_vm0, %v655_v32  ;;  %v4955_v46 = vld [vmem:[%s7127_s10 + $0x80] sm:$0xff]   ;;  %v4961_v52 = vld [vmem:[%s7127_s10 + $0x98] sm:$0xff]  }
  0x5c   : > { %s792_s1 = sld [smem:[#allocation10 + %s5458_s2]]  ;;  %v660_v33 = vld [vmem:[%s659_s20] sm:$0x1]  ;;  %s697_s23 = scalar_lea.vmem %s7046_s4, %s696_s30 }
  0x5d   : > { %s808_s29 = sld [smem:[#allocation10 + %s5475_s14]]  ;;  %661 = vst.msk [vmem:[#allocation2 + $0xf] sm:$0x1] %vm368_vm0, %v660_v33  ;;  %v698_v34 = vld [vmem:[%s697_s23] sm:$0x1]  ;;  %s713_s6 = scalar_lea.vmem %s7046_s4, %s712_s22 }
  0x5e   : > { %s729_s28 = scalar_lea.vmem %s7046_s4, %s728_s13  ;;  %v714_v35 = vld [vmem:[%s713_s6] sm:$0x1]  ;;  %699 = vst.msk [vmem:[#allocation4 + $0x8] sm:$0x1] %vm368_vm0, %v698_v34  ;;  %s376_s8 = sld [smem:[#allocation8 + %s7082_s11]] }
  0x5f   : > { %v730_v36 = vld [vmem:[%s729_s28] sm:$0x1]  ;;  %s745_s20 = scalar_lea.vmem %s7046_s4, %s744_s17  ;;  %715 = vst.msk [vmem:[#allocation4 + $0x9] sm:$0x1] %vm368_vm0, %v714_v35  ;;  %s7128_s7 = sld [smem:[#allocation17_spill]] }
  0x60   : > { %v746_v37 = vld [vmem:[%s745_s20] sm:$0x1]  ;;  %s761_s16 = scalar_lea.vmem %s7046_s4, %s760_s5  ;;  %731 = vst.msk [vmem:[#allocation4 + $0xa] sm:$0x1] %vm368_vm0, %v730_v36  ;;  %s7079_s13 = sadd.s32 2, %s5340_s15 }
  0x61   : > { %s777_s22 = scalar_lea.vmem %s7046_s4, %s776_s27  ;;  %v762_v38 = vld [vmem:[%s761_s16] sm:$0x1]  ;;  %747 = vst.msk [vmem:[#allocation4 + $0xb] sm:$0x1] %vm368_vm0, %v746_v37  ;;  %s417_s19 = sld [smem:[#allocation8 + %s7079_s13]] }
  0x62   : > { %v778_v39 = vld [vmem:[%s777_s22] sm:$0x1]  ;;  %s793_s17 = scalar_lea.vmem %s7046_s4, %s792_s1  ;;  %763 = vst.msk [vmem:[#allocation4 + $0xc] sm:$0x1] %vm368_vm0, %v762_v38  ;;  %s7081_s22 = sadd.s32 3, %s5313_s21 }
  0x63   : > { %v794_v40 = vld [vmem:[%s793_s17] sm:$0x1]  ;;  %s809_s5 = scalar_lea.vmem %s7046_s4, %s808_s29  ;;  %779 = vst.msk [vmem:[#allocation4 + $0xd] sm:$0x1] %vm368_vm0, %v778_v39  ;;  %s381_s6 = sld [smem:[#allocation8 + %s7081_s22]] }
  0x64   : > { %v810_v41 = vld [vmem:[%s809_s5] sm:$0x1]  ;;  %795 = vst.msk [vmem:[#allocation4 + $0xe] sm:$0x1] %vm368_vm0, %v794_v40  ;;  %v821_v43 = vld [vmem:[#allocation2 + $0x8] sm:$0xff]  ;;  %s7075_s5 = sadd.s32 3, %s5340_s15 }
  0x65   : > { %v820_v42 = vld [vmem:[#allocation2] sm:$0xff]  ;;  %811 = vst.msk [vmem:[#allocation4 + $0xf] sm:$0x1] %vm368_vm0, %v810_v41  ;;  %s7074_s1 = sadd.s32 2, %s5364_s0  ;;  %s5578_s27 = sld [smem:[#allocation8 + %s7075_s5]] }
  0x66   : > { %v828_v45 = vpack.c.bf16 %v821_v43, %v820_v42  ;;  %s5582_s29 = sld [smem:[#allocation8 + %s7074_s1]]  ;;  %s7076_s18 = sadd.s32 3, %s5364_s0 }
  0x67   : > { %s7077_s20 = sadd.s32 2, %s7128_s7  ;;  %s7129_s23 = sld [smem:[#allocation19_spill]] }
  0x68   : > { %4429 = vmatmul.mubr.msk.bf16.vlgmr.msra.gmra.mrb[0].mxu0 %vm950_vm1, %v828_v45  ;;  %4433 = vmatmul.mubr.msk.bf16.vlgmr.msra.gmra.mrb[0].mxu1 %vm950_vm1, %v828_v45  ;;  %s377_s1 = scalar_lea.vmem %s7115_s3, %s376_s8  ;;  %s5598_s5 = sld [smem:[#allocation8 + %s7076_s18]] }
  0x69   : > { %4829 = vmatpush3.bf16.msra.mxu0 %v4954_v44  ;;  %1005 = vmatprep.mubr.bf16.mxu0 %v7099_v2  ;;  %v378_v53 = vld [vmem:[%s377_s1] sm:$0x1]  ;;  %s5602_s24 = sld [smem:[#allocation8 + %s7077_s20]]  ;;  %s7078_s28 = sadd.s32 3, %s7128_s7 }
  0x6a   : > { %1078 = vmatprep.mubr.bf16.mxu1 %v7099_v2  ;;  %4830 = vmatprep.subr.bf16.mxu0 %v7097_v22  ;;  %379 = vst.msk [vmem:[#allocation2 + $0x10] sm:$0x1] %vm368_vm0, %v378_v53  ;;  %s382_s8 = scalar_lea.vmem %s7115_s3, %s381_s6  ;;  %s418_s18 = scalar_lea.vmem %s7115_s3, %s417_s19 }
  0x6b   : > { %4841 = vmatpush3.bf16.msra.mxu1 %v4955_v46  ;;  %v383_v54 = vld [vmem:[%s382_s8] sm:$0x1]  ;;  %s504_s1 = sld [smem:[#allocation8 + %s7078_s28]]  ;;  %s423_s19 = scalar_lea.vmem %s7115_s3, %s5578_s27 }
  0x6c   : > { %4842 = vmatprep.subr.bf16.mxu1 %v7097_v22  ;;  %v419_v55 = vld [vmem:[%s418_s18] sm:$0x1]  ;;  %384 = vst.msk [vmem:[#allocation2 + $0x18] sm:$0x1] %vm368_vm0, %v383_v54  ;;  %s7130_s6 = sld [smem:[#allocation21_spill]]  ;;  %s459_s18 = scalar_lea.vmem %s7115_s3, %s5582_s29 }
  0x6d   : > { %4831 = vmatpush3.bf16.msra.mxu0 %v4956_v47  ;;  %s7080_s20 = sadd.s32 2, %s7129_s23  ;;  %420 = vst.msk [vmem:[#allocation2 + $0x11] sm:$0x1] %vm368_vm0, %v419_v55  ;;  %v424_v56 = vld [vmem:[%s423_s19] sm:$0x1]  ;;  %s7084_s28 = sadd.s32 3, %s7129_s23 }
  0x6e   : > { %4832 = vmatprep.subr.bf16.mxu0 %v7097_v22  ;;  %v460_v57 = vld [vmem:[%s459_s18] sm:$0x1]  ;;  %s540_s17 = sld [smem:[#allocation8 + %s7080_s20]]  ;;  %425 = vst.msk [vmem:[#allocation2 + $0x19] sm:$0x1] %vm368_vm0, %v424_v56  ;;  %s464_s29 = scalar_lea.vmem %s7115_s3, %s5598_s5 }
  0x6f   : > { %4843 = vmatpush3.bf16.msra.mxu1 %v4957_v48  ;;  %s7131_s13 = sld [smem:[#allocation23_spill]]  ;;  %461 = vst.msk [vmem:[#allocation2 + $0x12] sm:$0x1] %vm368_vm0, %v460_v57  ;;  %v465_v58 = vld [vmem:[%s464_s29] sm:$0x1]  ;;  %s500_s8 = scalar_lea.vmem %s7115_s3, %s5602_s24 }
  0x70   : > { %4844 = vmatprep.subr.bf16.mxu1 %v7097_v22  ;;  %s545_s16 = sld [smem:[#allocation8 + %s7084_s28]]  ;;  %466 = vst.msk [vmem:[#allocation2 + $0x1a] sm:$0x1] %vm368_vm0, %v465_v58  ;;  %v501_v59 = vld [vmem:[%s500_s8] sm:$0x1] }
  0x71   : > { %4833 = vmatpush3.bf16.msra.mxu0 %v4958_v49  ;;  %s7132_s22 = sld [smem:[#allocation25_spill]]  ;;  %502 = vst.msk [vmem:[#allocation2 + $0x13] sm:$0x1] %vm368_vm0, %v501_v59  ;;  %s505_s30 = scalar_lea.vmem %s7115_s3, %s504_s1 }
  0x72   : > { %4834 = vmatprep.subr.bf16.mxu0 %v7097_v22  ;;  %s7083_s18 = sadd.s32 2, %s7130_s6  ;;  %s7086_s11 = sadd.s32 3, %s7130_s6  ;;  %v506_v60 = vld [vmem:[%s505_s30] sm:$0x1] }
  0x73   : > { %4845 = vmatpush3.bf16.msra.mxu1 %v4959_v50  ;;  %s581_s20 = sld [smem:[#allocation8 + %s7083_s18]]  ;;  %507 = vst.msk [vmem:[#allocation2 + $0x1b] sm:$0x1] %vm368_vm0, %v506_v60 }
  0x74   : > { %4846 = vmatprep.subr.bf16.mxu1 %v7097_v22  ;;  %s586_s29 = sld [smem:[#allocation8 + %s7086_s11]]  ;;  %s541_s18 = scalar_lea.vmem %s7115_s3, %s540_s17 }
  0x75   : > { %4835 = vmatpush3.bf16.msra.mxu0 %v4960_v51  ;;  %s7088_s24 = sadd.s32 2, %s7131_s13  ;;  %s7087_s19 = sadd.s32 3, %s7131_s13  ;;  %v542_v61 = vld [vmem:[%s541_s18] sm:$0x1] }
  0x76   : > { %4852 = vmatprep.subr.bf16.mxu0 %v7097_v22  ;;  %s622_s28 = sld [smem:[#allocation8 + %s7088_s24]]  ;;  %s546_s1 = scalar_lea.vmem %s7115_s3, %s545_s16  ;;  %543 = vst.msk [vmem:[#allocation2 + $0x14] sm:$0x1] %vm368_vm0, %v542_v61 }
  0x77   : > { %4847 = vmatpush3.bf16.msra.mxu1 %v4961_v52  ;;  %s627_s27 = sld [smem:[#allocation8 + %s7087_s19]]  ;;  %v547_v62 = vld [vmem:[%s546_s1] sm:$0x1]  ;;  %s7090_s30 = sadd.s32 2, %s7132_s22 }
  0x78   : > { %4864 = vmatprep.subr.bf16.mxu1 %v7097_v22  ;;  %s7089_s11 = sadd.s32 3, %s7132_s22  ;;  %548 = vst.msk [vmem:[#allocation2 + $0x1c] sm:$0x1] %vm368_vm0, %v547_v62  ;;  %s663_s8 = sld [smem:[#allocation8 + %s7090_s30]] }
  0x79   : > { %s582_s18 = scalar_lea.vmem %s7115_s3, %s581_s20  ;;  %s668_s1 = sld [smem:[#allocation8 + %s7089_s11]] }
  0x7a   : > { %v583_v63 = vld [vmem:[%s582_s18] sm:$0x1]  ;;  %s587_s5 = scalar_lea.vmem %s7115_s3, %s586_s29  ;;  %s7133_s19 = sadd.s32 2, %s5313_s21 }
  0x7b   : > { %584 = vst.msk [vmem:[#allocation2 + $0x15] sm:$0x1] %vm368_vm0, %v583_v63  ;;  %v588_v0 = vld [vmem:[%s587_s5] sm:$0x1]  ;;  %s5684_s24 = sld [smem:[#allocation10 + %s7133_s19]]  ;;  %s7134_s17 = sadd.s32 3, %s5313_s21 }
  0x7c   : > { %s5688_s20 = sld [smem:[#allocation10 + %s7134_s17]]  ;;  %589 = vst.msk [vmem:[#allocation2 + $0x1d] sm:$0x1] %vm368_vm0, %v588_v0  ;;  %s623_s14 = scalar_lea.vmem %s7115_s3, %s622_s28 }
  0x7d   : > { %s7136_s29 = sadd.s32 2, %s5340_s15  ;;  %v624_v1 = vld [vmem:[%s623_s14] sm:$0x1]  ;;  %s628_s19 = scalar_lea.vmem %s7115_s3, %s627_s27 }
  0x7e   : > { %s5696_s16 = sld [smem:[#allocation10 + %s7136_s29]]  ;;  %s7137_s30 = sadd.s32 3, %s5340_s15  ;;  %625 = vst.msk [vmem:[#allocation2 + $0x16] sm:$0x1] %vm368_vm0, %v624_v1  ;;  %v629_v3 = vld [vmem:[%s628_s19] sm:$0x1] }
  0x7f   : > { %s5703_s17 = sld [smem:[#allocation10 + %s7137_s30]]  ;;  %s7140_s18 = sadd.s32 3, %s5364_s0  ;;  %630 = vst.msk [vmem:[#allocation2 + $0x1e] sm:$0x1] %vm368_vm0, %v629_v3 }
  0x80   : > { %s5708_s28 = sld [smem:[#allocation10 + %s7139_s25]]  ;;  %s664_s30 = scalar_lea.vmem %s7115_s3, %s663_s8 }
  0x81   : > { %s5712_s14 = sld [smem:[#allocation10 + %s7140_s18]]  ;;  %s7142_s29 = sadd.s32 2, %s7128_s7  ;;  %v665_v4 = vld [vmem:[%s664_s30] sm:$0x1] }
  0x82   : > { %7135 = sst [smem:[#allocation17_spill]] %s5688_s20  ;;  %s669_s2 = scalar_lea.vmem %s7115_s3, %s668_s1  ;;  %666 = vst.msk [vmem:[#allocation2 + $0x17] sm:$0x1] %vm368_vm0, %v665_v4 }
  0x83   : > { %s5720_s5 = sld [smem:[#allocation10 + %s7142_s29]]  ;;  %s7144_s18 = sadd.s32 3, %s7128_s7  ;;  %v670_v5 = vld [vmem:[%s669_s2] sm:$0x1] }
  0x84   : > { %s5727_s9 = sld [smem:[#allocation10 + %s7144_s18]]  ;;  %s7146_s11 = sadd.s32 2, %s7129_s23  ;;  %671 = vst.msk [vmem:[#allocation2 + $0x1f] sm:$0x1] %vm368_vm0, %v670_v5  ;;  %v1151_v5 = vld [vmem:[#allocation4 + $0x8] sm:$0xff] }
  0x85   : > { %7138 = sst [smem:[#allocation19_spill]] %s5703_s17  ;;  %s7148_s27 = sadd.s32 3, %s7129_s23 }
  0x86   : > { %s5732_s8 = sld [smem:[#allocation10 + %s7146_s11]]  ;;  %s7150_s30 = sadd.s32 2, %s7130_s6 }
  0x87   : > { %7141 = sst [smem:[#allocation21_spill]] %s5712_s14  ;;  %s7152_s1 = sadd.s32 3, %s7130_s6 }
  0x88   : > { %s5736_s29 = sld [smem:[#allocation10 + %s7148_s27]]  ;;  %s7154_s25 = sadd.s32 2, %s7131_s13 }
  0x89   : > { %7143 = sst [smem:[#allocation23_spill]] %s5720_s5  ;;  %s7156_s2 = sadd.s32 3, %s7131_s13  ;;  %v822_v6 = vld [vmem:[#allocation2 + $0x10] sm:$0xff] }
  0x8a   : > { %7145 = sst [smem:[#allocation27_spill]] %s5727_s9  ;;  %s7158_s11 = sadd.s32 2, %s7132_s22 }
  0x8b   : > { %s5741_s26 = sld [smem:[#allocation10 + %s7150_s30]]  ;;  %s7160_s27 = sadd.s32 3, %s7132_s22  ;;  %v823_v7 = vld [vmem:[#allocation2 + $0x18] sm:$0xff] }
  0x8c   : > { %7147 = sst [smem:[#allocation28_spill]] %s5732_s8  ;;  %s385_s30 = sadd.s32 4, %s5313_s21  ;;  %v829_v8 = vpack.c.bf16 %v823_v7, %v822_v6 }
  0x8d   : > { %s5745_s19 = sld [smem:[#allocation10 + %s7152_s1]]  ;;  %s390_s9 = sadd.s32 5, %s5313_s21 }
  0x8e   : > { %7149 = sst [smem:[#allocation29_spill]] %s5736_s29  ;;  %s431_s17 = sadd.s32 5, %s5340_s15  ;;  %4430 = vmatmul.mubr.msk.bf16.gmra.mrb[4].mxu0 %vm950_vm1, %v829_v8  ;;  %4434 = vmatmul.mubr.msk.bf16.gmra.mrb[4].mxu1 %vm950_vm1, %v829_v8 }
  0x8f   : > { %s5749_s18 = sld [smem:[#allocation10 + %s7154_s25]]  ;;  %1015 = vmatprep.mubr.bf16.mxu0 %v7099_v2  ;;  %1088 = vmatprep.mubr.bf16.mxu1 %v7099_v2  ;;  %s636_s8 = sadd.s32 5, %s7131_s13 }
  0x90   : > { %s5753_s12 = sld [smem:[#allocation10 + %s7156_s2]]  ;;  %s467_s2 = sadd.s32 4, %s5364_s0 }
  0x91   : > { %7151 = sst [smem:[#allocation30_spill]] %s5741_s26 }
  0x92   : > { %s5757_s10 = sld [smem:[#allocation10 + %s7158_s11]] }
  0x93   : > { %7153 = sst [smem:[#allocation31_spill]] %s5745_s19  ;;  %s426_s19 = sadd.s32 4, %s5340_s15 }
  0x94   : > { %s5761_s29 = sld [smem:[#allocation10 + %s7160_s27]]  ;;  %s513_s27 = sadd.s32 5, %s7128_s7 }
  0x95   : > { %7155 = sst [smem:[#allocation32_spill]] %s5749_s18  ;;  %s508_s18 = sadd.s32 4, %s7128_s7 }
  0x96   : > { %7157 = sst [smem:[#allocation33_spill]] %s5753_s12  ;;  %s472_s12 = sadd.s32 5, %s5364_s0 }
  0x97   : > { %s386_s14 = sld [smem:[#allocation8 + %s385_s30]]  ;;  %s590_s30 = sadd.s32 4, %s7130_s6 }
  0x98   : > { %7159 = sst [smem:[#allocation34_spill]] %s5757_s10 }
  0x99   : > { %s391_s1 = sld [smem:[#allocation8 + %s390_s9]]  ;;  %s441_s9 = sadd.s32 7, %s5340_s15 }
  0x9a   : > { %7161 = sst [smem:[#allocation35_spill]] %s5761_s29 }
  0x9b   : > { %s427_s25 = sld [smem:[#allocation8 + %s426_s19]] }
  0x9c   : > { %s432_s20 = sld [smem:[#allocation8 + %s431_s17]] }
  0x9d   : > { %s468_s11 = sld [smem:[#allocation8 + %s467_s2]]  ;;  %s387_s29 = scalar_lea.vmem %s7115_s3, %s386_s14 }
  0x9e   : > { %s473_s10 = sld [smem:[#allocation8 + %s472_s12]]  ;;  %v388_v9 = vld [vmem:[%s387_s29] sm:$0x1]  ;;  %s549_s29 = sadd.s32 4, %s7129_s23 }
  0x9f   : > { %s392_s26 = scalar_lea.vmem %s7115_s3, %s391_s1  ;;  %s509_s12 = sld [smem:[#allocation8 + %s508_s18]]  ;;  %389 = vst.msk [vmem:[#allocation2 + $0x20] sm:$0x1] %vm368_vm0, %v388_v9 }
  0xa0   : > { %v393_v10 = vld [vmem:[%s392_s26] sm:$0x1]  ;;  %s514_s2 = sld [smem:[#allocation8 + %s513_s27]]  ;;  %s554_s26 = sadd.s32 5, %s7129_s23 }
  0xa1   : > { %394 = vst.msk [vmem:[#allocation2 + $0x28] sm:$0x1] %vm368_vm0, %v393_v10  ;;  %s428_s14 = scalar_lea.vmem %s7115_s3, %s427_s25  ;;  %s555_s5 = sld [smem:[#allocation8 + %s554_s26]]  ;;  %v1152_v10 = vpack.c.bf16 %v1151_v5, %v1151_v5 }
  0xa2   : > { %s433_s1 = scalar_lea.vmem %s7115_s3, %s432_s20  ;;  %v429_v11 = vld [vmem:[%s428_s14] sm:$0x1]  ;;  %s550_s20 = sld [smem:[#allocation8 + %s549_s29]] }
  0xa3   : > { %v434_v12 = vld [vmem:[%s433_s1] sm:$0x1]  ;;  %430 = vst.msk [vmem:[#allocation2 + $0x21] sm:$0x1] %vm368_vm0, %v429_v11  ;;  %s469_s19 = scalar_lea.vmem %s7115_s3, %s468_s11  ;;  %s595_s14 = sadd.s32 5, %s7130_s6 }
  0xa4   : > { %435 = vst.msk [vmem:[#allocation2 + $0x29] sm:$0x1] %vm368_vm0, %v434_v12  ;;  %s474_s17 = scalar_lea.vmem %s7115_s3, %s473_s10  ;;  %v470_v13 = vld [vmem:[%s469_s19] sm:$0x1]  ;;  %s591_s29 = sld [smem:[#allocation8 + %s590_s30]] }
  0xa5   : > { %v475_v14 = vld [vmem:[%s474_s17] sm:$0x1]  ;;  %471 = vst.msk [vmem:[#allocation2 + $0x22] sm:$0x1] %vm368_vm0, %v470_v13  ;;  %s510_s11 = scalar_lea.vmem %s7115_s3, %s509_s12  ;;  %s596_s26 = sld [smem:[#allocation8 + %s595_s14]] }
  0xa6   : > { %476 = vst.msk [vmem:[#allocation2 + $0x2a] sm:$0x1] %vm368_vm0, %v475_v14  ;;  %s515_s10 = scalar_lea.vmem %s7115_s3, %s514_s2  ;;  %v511_v15 = vld [vmem:[%s510_s11] sm:$0x1]  ;;  %s631_s19 = sadd.s32 4, %s7131_s13 }
  0xa7   : > { %v516_v16 = vld [vmem:[%s515_s10] sm:$0x1]  ;;  %512 = vst.msk [vmem:[#allocation2 + $0x23] sm:$0x1] %vm368_vm0, %v511_v15  ;;  %s632_s25 = sld [smem:[#allocation8 + %s631_s19]]  ;;  %s556_s11 = scalar_lea.vmem %s7115_s3, %s555_s5 }
  0xa8   : > { %517 = vst.msk [vmem:[#allocation2 + $0x2b] sm:$0x1] %vm368_vm0, %v516_v16  ;;  %s637_s17 = sld [smem:[#allocation8 + %s636_s8]]  ;;  %s551_s1 = scalar_lea.vmem %s7115_s3, %s550_s20  ;;  %v557_v18 = vld [vmem:[%s556_s11] sm:$0x1] }
  0xa9   : > { %v552_v17 = vld [vmem:[%s551_s1] sm:$0x1]  ;;  %s672_s30 = sadd.s32 4, %s7132_s22  ;;  %s677_s14 = sadd.s32 5, %s7132_s22  ;;  %558 = vst.msk [vmem:[#allocation2 + $0x2c] sm:$0x1] %vm368_vm0, %v557_v18 }
  0xaa   : > { %553 = vst.msk [vmem:[#allocation2 + $0x24] sm:$0x1] %vm368_vm0, %v552_v17  ;;  %s673_s27 = sld [smem:[#allocation8 + %s672_s30]]  ;;  %s592_s12 = scalar_lea.vmem %s7115_s3, %s591_s29 }
  0xab   : > { %s678_s10 = sld [smem:[#allocation8 + %s677_s14]]  ;;  %s597_s2 = scalar_lea.vmem %s7115_s3, %s596_s26  ;;  %v593_v19 = vld [vmem:[%s592_s12] sm:$0x1] }
  0xac   : > { %v598_v20 = vld [vmem:[%s597_s2] sm:$0x1]  ;;  %s395_s5 = sadd.s32 6, %s5313_s21  ;;  %s400_s1 = sadd.s32 7, %s5313_s21  ;;  %594 = vst.msk [vmem:[#allocation2 + $0x25] sm:$0x1] %vm368_vm0, %v593_v19 }
  0xad   : > { %599 = vst.msk [vmem:[#allocation2 + $0x2d] sm:$0x1] %vm368_vm0, %v598_v20  ;;  %s633_s30 = scalar_lea.vmem %s7115_s3, %s632_s25  ;;  %s396_s26 = sld [smem:[#allocation8 + %s395_s5]] }
  0xae   : > { %s638_s19 = scalar_lea.vmem %s7115_s3, %s637_s17  ;;  %v634_v21 = vld [vmem:[%s633_s30] sm:$0x1]  ;;  %s401_s8 = sld [smem:[#allocation8 + %s400_s1]] }
  0xaf   : > { %v639_v23 = vld [vmem:[%s638_s19] sm:$0x1]  ;;  %635 = vst.msk [vmem:[#allocation2 + $0x26] sm:$0x1] %vm368_vm0, %v634_v21  ;;  %s436_s12 = sadd.s32 6, %s5340_s15  ;;  %s442_s1 = sld [smem:[#allocation8 + %s441_s9]] }
  0xb0   : > { %640 = vst.msk [vmem:[#allocation2 + $0x2e] sm:$0x1] %vm368_vm0, %v639_v23  ;;  %s674_s25 = scalar_lea.vmem %s7115_s3, %s673_s27  ;;  %s437_s5 = sld [smem:[#allocation8 + %s436_s12]] }
  0xb1   : > { %s679_s17 = scalar_lea.vmem %s7115_s3, %s678_s10  ;;  %v675_v24 = vld [vmem:[%s674_s25] sm:$0x1]  ;;  %s477_s30 = sadd.s32 6, %s5364_s0 }
  0xb2   : > { %v680_v25 = vld [vmem:[%s679_s17] sm:$0x1]  ;;  %676 = vst.msk [vmem:[#allocation2 + $0x27] sm:$0x1] %vm368_vm0, %v675_v24  ;;  %s482_s14 = sadd.s32 7, %s5364_s0  ;;  %s478_s29 = sld [smem:[#allocation8 + %s477_s30]] }
  0xb3   : > { %681 = vst.msk [vmem:[#allocation2 + $0x2f] sm:$0x1] %vm368_vm0, %v680_v25  ;;  %s483_s19 = sld [smem:[#allocation8 + %s482_s14]]  ;;  %s397_s2 = scalar_lea.vmem %s7115_s3, %s396_s26 }
  0xb4   : > { %s402_s25 = scalar_lea.vmem %s7115_s3, %s401_s8  ;;  %v398_v26 = vld [vmem:[%s397_s2] sm:$0x1]  ;;  %s518_s12 = sadd.s32 6, %s7128_s7 }
  0xb5   : > { %v403_v27 = vld [vmem:[%s402_s25] sm:$0x1]  ;;  %s523_s9 = sadd.s32 7, %s7128_s7  ;;  %399 = vst.msk [vmem:[#allocation2 + $0x30] sm:$0x1] %vm368_vm0, %v398_v26  ;;  %s5863_s11 = sld [smem:[#allocation8 + %s518_s12]] }
  0xb6   : > { %404 = vst.msk [vmem:[#allocation2 + $0x38] sm:$0x1] %vm368_vm0, %v403_v27  ;;  %s5865_s17 = sld [smem:[#allocation8 + %s523_s9]]  ;;  %s438_s26 = scalar_lea.vmem %s7115_s3, %s437_s5 }
  0xb7   : > { %s443_s8 = scalar_lea.vmem %s7115_s3, %s442_s1  ;;  %v439_v28 = vld [vmem:[%s438_s26] sm:$0x1]  ;;  %s559_s2 = sadd.s32 6, %s7129_s23 }
  0xb8   : > { %v444_v29 = vld [vmem:[%s443_s8] sm:$0x1]  ;;  %s564_s10 = sadd.s32 7, %s7129_s23  ;;  %440 = vst.msk [vmem:[#allocation2 + $0x31] sm:$0x1] %vm368_vm0, %v439_v28  ;;  %s479_s25 = scalar_lea.vmem %s7115_s3, %s478_s29 }
  0xb9   : > { %v824_v30 = vld [vmem:[#allocation2 + $0x20] sm:$0xff]  ;;  %445 = vst.msk [vmem:[#allocation2 + $0x39] sm:$0x1] %vm368_vm0, %v444_v29  ;;  %s484_s9 = scalar_lea.vmem %s7115_s3, %s483_s19  ;;  %s560_s30 = sld [smem:[#allocation8 + %s559_s2]] }
  0xba   : > { %v825_v31 = vld [vmem:[#allocation2 + $0x28] sm:$0xff]  ;;  %v480_v33 = vld [vmem:[%s479_s25] sm:$0x1]  ;;  %s565_s14 = sld [smem:[#allocation8 + %s564_s10]]  ;;  %s600_s26 = sadd.s32 6, %s7130_s6 }
  0xbb   : > { %v830_v32 = vpack.c.bf16 %v825_v31, %v824_v30  ;;  %v485_v34 = vld [vmem:[%s484_s9] sm:$0x1]  ;;  %481 = vst.msk [vmem:[#allocation2 + $0x32] sm:$0x1] %vm368_vm0, %v480_v33  ;;  %s605_s27 = sadd.s32 7, %s7130_s6  ;;  %s520_s19 = scalar_lea.vmem %s7115_s3, %s5863_s11 }
  0xbc   : > { %486 = vst.msk [vmem:[#allocation2 + $0x3a] sm:$0x1] %vm368_vm0, %v485_v34  ;;  %s525_s2 = scalar_lea.vmem %s7115_s3, %s5865_s17  ;;  %v521_v35 = vld [vmem:[%s520_s19] sm:$0x1]  ;;  %s601_s10 = sld [smem:[#allocation8 + %s600_s26]] }
  0xbd   : > { %4431 = vmatmul.mubr.msk.bf16.gmra.mrb[8].mxu0 %vm950_vm1, %v830_v32  ;;  %4435 = vmatmul.mubr.msk.bf16.gmra.mrb[8].mxu1 %vm950_vm1, %v830_v32  ;;  %v526_v36 = vld [vmem:[%s525_s2] sm:$0x1]  ;;  %s606_s5 = sld [smem:[#allocation8 + %s605_s27]]  ;;  %522 = vst.msk [vmem:[#allocation2 + $0x33] sm:$0x1] %vm368_vm0, %v521_v35  ;;  %s641_s25 = sadd.s32 6, %s7131_s13 }
  0xbe   : > { %1025 = vmatprep.mubr.bf16.mxu0 %v7099_v2  ;;  %1098 = vmatprep.mubr.bf16.mxu1 %v7099_v2  ;;  %527 = vst.msk [vmem:[#allocation2 + $0x3b] sm:$0x1] %vm368_vm0, %v526_v36  ;;  %s646_s11 = sadd.s32 7, %s7131_s13  ;;  %s642_s12 = sld [smem:[#allocation8 + %s641_s25]] }
  0xbf   : > { %s647_s1 = sld [smem:[#allocation8 + %s646_s11]]  ;;  %s561_s29 = scalar_lea.vmem %s7115_s3, %s560_s30 }
  0xc0   : > { %s566_s19 = scalar_lea.vmem %s7115_s3, %s565_s14  ;;  %v562_v37 = vld [vmem:[%s561_s29] sm:$0x1]  ;;  %s682_s26 = sadd.s32 6, %s7132_s22 }
  0xc1   : > { %v567_v38 = vld [vmem:[%s566_s19] sm:$0x1]  ;;  %s687_s27 = sadd.s32 7, %s7132_s22  ;;  %563 = vst.msk [vmem:[#allocation2 + $0x34] sm:$0x1] %vm368_vm0, %v562_v37  ;;  %s683_s18 = sld [smem:[#allocation8 + %s682_s26]] }
  0xc2   : > { %568 = vst.msk [vmem:[#allocation2 + $0x3c] sm:$0x1] %vm368_vm0, %v567_v38  ;;  %s688_s2 = sld [smem:[#allocation8 + %s687_s27]]  ;;  %s602_s30 = scalar_lea.vmem %s7115_s3, %s601_s10 }
  0xc3   : > { %s607_s14 = scalar_lea.vmem %s7115_s3, %s606_s5  ;;  %v603_v39 = vld [vmem:[%s602_s30] sm:$0x1]  ;;  %s692_s29 = sld [smem:[#allocation10 + %s5313_s21]] }
  0xc4   : > { %v608_v40 = vld [vmem:[%s607_s14] sm:$0x1]  ;;  %s708_s20 = sld [smem:[#allocation10 + %s5340_s15]]  ;;  %604 = vst.msk [vmem:[#allocation2 + $0x35] sm:$0x1] %vm368_vm0, %v603_v39  ;;  %s643_s10 = scalar_lea.vmem %s7115_s3, %s642_s12 }
  0xc5   : > { %609 = vst.msk [vmem:[#allocation2 + $0x3d] sm:$0x1] %vm368_vm0, %v608_v40  ;;  %s648_s25 = scalar_lea.vmem %s7115_s3, %s647_s1  ;;  %v644_v41 = vld [vmem:[%s643_s10] sm:$0x1]  ;;  %s724_s5 = sld [smem:[#allocation10 + %s5364_s0]] }
  0xc6   : > { %v649_v42 = vld [vmem:[%s648_s25] sm:$0x1]  ;;  %s740_s11 = sld [smem:[#allocation10 + %s7128_s7]]  ;;  %645 = vst.msk [vmem:[#allocation2 + $0x36] sm:$0x1] %vm368_vm0, %v644_v41  ;;  %s701_s1 = scalar_lea.vmem %s7046_s4, %s5684_s24 }
  0xc7   : > { %650 = vst.msk [vmem:[#allocation2 + $0x3e] sm:$0x1] %vm368_vm0, %v649_v42  ;;  %s5934_s30 = sld [smem:[#allocation10 + %s7129_s23]]  ;;  %s684_s14 = scalar_lea.vmem %s7115_s3, %s683_s18  ;;  %v702_v47 = vld [vmem:[%s701_s1] sm:$0x1] }
  0xc8   : > { %s5937_s17 = sld [smem:[#allocation10 + %s7130_s6]]  ;;  %s689_s19 = scalar_lea.vmem %s7115_s3, %s688_s2  ;;  %v685_v43 = vld [vmem:[%s684_s14] sm:$0x1]  ;;  %703 = vst.msk [vmem:[#allocation4 + $0x10] sm:$0x1] %vm368_vm0, %v702_v47 }
  0xc9   : > { %v690_v44 = vld [vmem:[%s689_s19] sm:$0x1]  ;;  %s5946_s10 = sld [smem:[#allocation10 + %s7131_s13]]  ;;  %686 = vst.msk [vmem:[#allocation2 + $0x37] sm:$0x1] %vm368_vm0, %v685_v43  ;;  %s693_s18 = scalar_lea.vmem %s7046_s4, %s692_s29 }
  0xca   : > { %s5949_s26 = sld [smem:[#allocation10 + %s7132_s22]]  ;;  %691 = vst.msk [vmem:[#allocation2 + $0x3f] sm:$0x1] %vm368_vm0, %v690_v44  ;;  %s709_s2 = scalar_lea.vmem %s7046_s4, %s708_s20  ;;  %v694_v45 = vld [vmem:[%s693_s18] sm:$0x1] }
  0xcb   : > { %v710_v46 = vld [vmem:[%s709_s2] sm:$0x1]  ;;  %s717_s22 = scalar_lea.vmem %s7046_s4, %s5696_s16  ;;  %695 = vst.msk [vmem:[#allocation4] sm:$0x1] %vm368_vm0, %v694_v45  ;;  %s7162_s25 = sld [smem:[#allocation23_spill]] }
  0xcc   : > { %711 = vst.msk [vmem:[#allocation4 + $0x1] sm:$0x1] %vm368_vm0, %v710_v46  ;;  %s725_s20 = scalar_lea.vmem %s7046_s4, %s724_s5  ;;  %s741_s12 = scalar_lea.vmem %s7046_s4, %s740_s11  ;;  %v718_v48 = vld [vmem:[%s717_s22] sm:$0x1] }
  0xcd   : > { %v726_v49 = vld [vmem:[%s725_s20] sm:$0x1]  ;;  %s757_s16 = scalar_lea.vmem %s7046_s4, %s5934_s30  ;;  %719 = vst.msk [vmem:[#allocation4 + $0x11] sm:$0x1] %vm368_vm0, %v718_v48  ;;  %s7163_s5 = sld [smem:[#allocation28_spill]] }
  0xce   : > { %v742_v50 = vld [vmem:[%s741_s12] sm:$0x1]  ;;  %s773_s8 = scalar_lea.vmem %s7046_s4, %s5937_s17  ;;  %727 = vst.msk [vmem:[#allocation4 + $0x2] sm:$0x1] %vm368_vm0, %v726_v49  ;;  %s7164_s22 = sld [smem:[#allocation30_spill]] }
  0xcf   : > { %743 = vst.msk [vmem:[#allocation4 + $0x3] sm:$0x1] %vm368_vm0, %v742_v50  ;;  %v758_v51 = vld [vmem:[%s757_s16] sm:$0x1]  ;;  %s733_s30 = scalar_lea.vmem %s7046_s4, %s5708_s28  ;;  %s7165_s18 = sld [smem:[#allocation32_spill]] }
  0xd0   : > { %v774_v52 = vld [vmem:[%s773_s8] sm:$0x1]  ;;  %759 = vst.msk [vmem:[#allocation4 + $0x4] sm:$0x1] %vm368_vm0, %v758_v51  ;;  %s789_s9 = scalar_lea.vmem %s7046_s4, %s5946_s10  ;;  %s7166_s24 = sld [smem:[#allocation34_spill]]  ;;  %v826_v57 = vld [vmem:[#allocation2 + $0x30] sm:$0xff] }
  0xd1   : > { %s749_s17 = scalar_lea.vmem %s7046_s4, %s7162_s25  ;;  %775 = vst.msk [vmem:[#allocation4 + $0x5] sm:$0x1] %vm368_vm0, %v774_v52  ;;  %s805_s16 = scalar_lea.vmem %s7046_s4, %s5949_s26  ;;  %v734_v53 = vld [vmem:[%s733_s30] sm:$0x1]  ;;  %v827_v58 = vld [vmem:[#allocation2 + $0x38] sm:$0xff] }
  0xd2   : > { %v750_v54 = vld [vmem:[%s749_s17] sm:$0x1]  ;;  %735 = vst.msk [vmem:[#allocation4 + $0x12] sm:$0x1] %vm368_vm0, %v734_v53  ;;  %s7167_s28 = sld [smem:[#allocation17_spill]]  ;;  %s7168_s14 = sld [smem:[#allocation19_spill]]  ;;  %v831_v60 = vpack.c.bf16 %v827_v58, %v826_v57 }
  0xd3   : > { %v790_v55 = vld [vmem:[%s789_s9] sm:$0x1]  ;;  %751 = vst.msk [vmem:[#allocation4 + $0x13] sm:$0x1] %vm368_vm0, %v750_v54  ;;  %s765_s8 = scalar_lea.vmem %s7046_s4, %s7163_s5  ;;  %s7169_s26 = sld [smem:[#allocation21_spill]] }
  0xd4   : > { %v806_v56 = vld [vmem:[%s805_s16] sm:$0x1]  ;;  %s781_s1 = scalar_lea.vmem %s7046_s4, %s7164_s22  ;;  %791 = vst.msk [vmem:[#allocation4 + $0x6] sm:$0x1] %vm368_vm0, %v790_v55  ;;  %s7170_s29 = sld [smem:[#allocation27_spill]]  ;;  %4432 = vmatmul.mubr.msk.bf16.gmra.mrb[12].mxu0 %vm950_vm1, %v831_v60  ;;  %4436 = vmatmul.mubr.msk.bf16.gmra.mrb[12].mxu1 %vm950_vm1, %v831_v60 }
  0xd5   : > { %807 = vst.msk [vmem:[#allocation4 + $0x7] sm:$0x1] %vm368_vm0, %v806_v56  ;;  %v766_v59 = vld [vmem:[%s765_s8] sm:$0x1]  ;;  %s797_s17 = scalar_lea.vmem %s7046_s4, %s7165_s18  ;;  %s7171_s12 = sld [smem:[#allocation29_spill]]  ;;  %4836 = vmatprep.mubr.msk.bf16.mxu0 %vm5219_vm2, %v7097_v22  ;;  %4848 = vmatprep.mubr.msk.bf16.mxu1 %vm5219_vm2, %v7097_v22 }
  0xd6   : > { %s813_s5 = scalar_lea.vmem %s7046_s4, %s7166_s24  ;;  %767 = vst.msk [vmem:[#allocation4 + $0x14] sm:$0x1] %vm368_vm0, %v766_v59  ;;  %v782_v61 = vld [vmem:[%s781_s1] sm:$0x1]  ;;  %s7172_s2 = sld [smem:[#allocation31_spill]] }
  0xd7   : > { %v798_v62 = vld [vmem:[%s797_s17] sm:$0x1]  ;;  %783 = vst.msk [vmem:[#allocation4 + $0x15] sm:$0x1] %vm368_vm0, %v782_v61  ;;  %s7174_s30 = sld [smem:[#allocation35_spill]]  ;;  %s7199_s11 = sld [smem:[#allocation59_spill]] }
  0xd8   : > { %v814_v63 = vld [vmem:[%s813_s5] sm:$0x1]  ;;  %s705_s3 = scalar_lea.vmem %s7046_s4, %s7167_s28  ;;  %s721_s18 = scalar_lea.vmem %s7046_s4, %s7168_s14  ;;  %799 = vst.msk [vmem:[#allocation4 + $0x16] sm:$0x1] %vm368_vm0, %v798_v62 }
  0xd9   : > { %815 = vst.msk [vmem:[#allocation4 + $0x17] sm:$0x1] %vm368_vm0, %v814_v63  ;;  %v706_v0 = vld [vmem:[%s705_s3] sm:$0x1]  ;;  %s737_s10 = scalar_lea.vmem %s7046_s4, %s7169_s26  ;;  %s7173_s14 = sld [smem:[#allocation33_spill]] }
  0xda   : > { %v722_v1 = vld [vmem:[%s721_s18] sm:$0x1]  ;;  %s753_s28 = scalar_lea.vmem %s7046_s4, %s7170_s29  ;;  %707 = vst.msk [vmem:[#allocation4 + $0x18] sm:$0x1] %vm368_vm0, %v706_v0  ;;  %s7175_s18 = sld [smem:[#allocation62_spill]] }
  0xdb   : > { %723 = vst.msk [vmem:[#allocation4 + $0x19] sm:$0x1] %vm368_vm0, %v722_v1  ;;  %v738_v3 = vld [vmem:[%s737_s10] sm:$0x1]  ;;  %s769_s26 = scalar_lea.vmem %s7046_s4, %s7171_s12  ;;  %s7178_s12 = sld [smem:[#allocation60_spill]] }
  0xdc   : > { %v754_v4 = vld [vmem:[%s753_s28] sm:$0x1]  ;;  %s785_s29 = scalar_lea.vmem %s7046_s4, %s7172_s2  ;;  %739 = vst.msk [vmem:[#allocation4 + $0x1a] sm:$0x1] %vm368_vm0, %v738_v3  ;;  %4837 = vmatmul.mubr.msk.bf16.vlgmr.msra.gmra.mrb[16].mxu0 %vm950_vm1, %v1152_v10  ;;  %s7223_s20 = sld [smem:[#allocation15_spill]] }
  0xdd   : > { %755 = vst.msk [vmem:[#allocation4 + $0x1b] sm:$0x1] %vm368_vm0, %v754_v4  ;;  %v770_v6 = vld [vmem:[%s769_s26] sm:$0x1]  ;;  %s817_s16 = scalar_lea.vmem %s7046_s4, %s7174_s30  ;;  %4860 = vmatprep.mubr.msk.bf16.mxu0 %vm5219_vm2, %v7097_v22  ;;  %s7200_s30 = sld [smem:[#allocation61_spill]] }
  0xde   : > { %v786_v7 = vld [vmem:[%s785_s29] sm:$0x1]  ;;  %771 = vst.msk [vmem:[#allocation4 + $0x1c] sm:$0x1] %vm368_vm0, %v770_v6  ;;  %s7177_s29 = sld [smem:[#allocation13_spill]]  ;;  %s7224_s5 = sld [smem:[#allocation16_spill]] }
  0xdf   : > { %s801_s9 = scalar_lea.vmem %s7046_s4, %s7173_s14  ;;  %787 = vst.msk [vmem:[#allocation4 + $0x1d] sm:$0x1] %vm368_vm0, %v786_v7  ;;  %v818_v9 = vld [vmem:[%s817_s16] sm:$0x1]  ;;  %s7225_s22 = sld [smem:[#allocation18_spill]] }
  0xe0   : > { %v802_v8 = vld [vmem:[%s801_s9] sm:$0x1]  ;;  %819 = vst.msk [vmem:[#allocation4 + $0x1f] sm:$0x1] %vm368_vm0, %v818_v9  ;;  %v4964_v15 = vld [vmem:[%s7175_s18 + $0xc8] sm:$0xff]   ;;  %v4966_v17 = vld [vmem:[%s7175_s18 + $0xd0] sm:$0xff]  }
  0xe1   : > { %803 = vst.msk [vmem:[#allocation4 + $0x1e] sm:$0x1] %vm368_vm0, %v802_v8  ;;  %v1141_v11 = vld [vmem:[#allocation4] sm:$0xff]  ;;  %v4965_v16 = vld [vmem:[%s7175_s18 + $0xe8] sm:$0xff]   ;;  %v4967_v18 = vld [vmem:[%s7175_s18 + $0xf0] sm:$0xff]   ;;  %s7176_s9 = sld [smem:[#allocation58_spill]] }
  0xe2   : > { %v1142_v12 = vpack.c.bf16 %v1141_v11, %v1141_v11  ;;  %v4962_v13 = vld [vmem:[%s7175_s18 + $0xc0] sm:$0xff]   ;;  %v4968_v19 = vld [vmem:[%s7175_s18 + $0xd8] sm:$0xff]   ;;  %v1295_v21 = vld [vmem:[#allocation4 + $0x10] sm:$0xff]  ;;  %s6956_s25 = sld [smem:[#allocation9 + %s7223_s20]] }
  0xe3   : > { %v4963_v14 = vld [vmem:[%s7175_s18 + $0xe0] sm:$0xff]   ;;  %4853 = vmatpush3.bf16.msra.mxu0 %v4962_v13  ;;  %v4969_v20 = vld [vmem:[%s7175_s18 + $0xf8] sm:$0xff]   ;;  %v1296_v26 = vpack.c.bf16 %v1295_v21, %v1295_v21  ;;  %s7228_s2 = sld [smem:[#allocation24_spill]]  ;;  %s7229_s24 = sld [smem:[#allocation26_spill]] }
  0xe4   : > { %4849 = vmatmul.mubr.msk.bf16.vlgmr.msra.gmra.mrb[16].mxu1 %vm950_vm1, %v1142_v12  ;;  %4854 = vmatprep.subr.bf16.mxu0 %v7097_v22  ;;  %p350_p4 = scmp.lt.s32.totalorder %s7177_s29, 1  ;;  %s6959_s8 = sld [smem:[#allocation9 + %s7224_s5]] }
  0xe5   : > { %4865 = vmatpush3.bf16.msra.mxu1 %v4963_v14  ;;  %4872 = vmatprep.mubr.msk.bf16.mxu1 %vm5219_vm2, %v7097_v22  ;;  %s6962_s10 = sld [smem:[#allocation9 + %s7225_s22]] }
  0xe6   : > { %4866 = vmatprep.subr.bf16.mxu1 %v7097_v22  ;;  %s7243_s29 = smov (!%p350_p4, %s7177_s29), 1  ;;  %s7230_s17 = sld [smem:[#allocation25_spill]] }
  0xe7   : > { %4855 = vmatpush3.bf16.msra.mxu0 %v4964_v15  ;;  %v6114_v24 = vld [vmem:[%s7176_s9 + $0x4] ss:$16 sps:$4 sm:$0xff]   ;;  %v6119_v25 = vld [vmem:[%s7176_s9 + $0xc] ss:$16 sps:$4 sm:$0xff]   ;;  %v6124_v28 = vld [vmem:[%s7176_s9] ss:$16 sps:$4 sm:$0xff]  }
  0xe8   : > { %4856 = vmatprep.subr.bf16.mxu0 %v7097_v22  ;;  %v1373_v23 = vld [vmem:[#allocation4 + $0x18] sm:$0xff]  ;;  %v6136_v30 = vld [vmem:[%s7176_s9 + $0x24] ss:$16 sps:$4 sm:$0xff]   ;;  %v6150_v32 = vld [vmem:[%s7176_s9 + $0x20] ss:$16 sps:$4 sm:$0xff]   ;;  %s6269_s28 = sshll.u32 %s7243_s29, 3 }
  0xe9   : > { %4867 = vmatpush3.bf16.msra.mxu1 %v4965_v16  ;;  %v1374_v27 = vpack.c.bf16 %v1373_v23, %v1373_v23  ;;  %v6129_v29 = vld [vmem:[%s7176_s9 + $0x8] ss:$16 sps:$4 sm:$0xff]   ;;  %v6141_v31 = vld [vmem:[%s7176_s9 + $0x2c] ss:$16 sps:$4 sm:$0xff]   ;;  %v6162_v34 = vld [vmem:[%s7176_s9 + $0x44] ss:$16 sps:$4 sm:$0xff]   ;;  %s353_s3 = scalar_lea.vmem %s7178_s12, %s6269_s28  ;;  %s357_s19 = scalar_lea.vmem %s7200_s30, %s6269_s28 }
  0xea   : > { %4868 = vmatprep.subr.bf16.mxu1 %v7097_v22  ;;  %v6155_v33 = vld [vmem:[%s7176_s9 + $0x28] ss:$16 sps:$4 sm:$0xff]   ;;  %v6167_v35 = vld [vmem:[%s7176_s9 + $0x4c] ss:$16 sps:$4 sm:$0xff]   ;;  %v6176_v36 = vld [vmem:[%s7176_s9 + $0x40] ss:$16 sps:$4 sm:$0xff]  }
  0xeb   : > { %4857 = vmatpush3.bf16.msra.mxu0 %v4966_v17  ;;  %v6181_v37 = vld [vmem:[%s7176_s9 + $0x48] ss:$16 sps:$4 sm:$0xff]   ;;  %v6188_v38 = vld [vmem:[%s7176_s9 + $0x64] ss:$16 sps:$4 sm:$0xff]   ;;  %v6193_v39 = vld [vmem:[%s7176_s9 + $0x6c] ss:$16 sps:$4 sm:$0xff]  }
  0xec   : > { %4858 = vmatprep.subr.bf16.mxu0 %v7097_v22  ;;  %v6200_v40 = vld [vmem:[%s7176_s9 + $0x60] ss:$16 sps:$4 sm:$0xff]   ;;  %v6205_v41 = vld [vmem:[%s7176_s9 + $0x68] ss:$16 sps:$4 sm:$0xff]   ;;  %v6212_v42 = vld [vmem:[%s7176_s9 + $0x84] ss:$16 sps:$4 sm:$0xff]  }
  0xed   : > { %4869 = vmatpush3.bf16.msra.mxu1 %v4967_v18  ;;  %v6217_v43 = vld [vmem:[%s7176_s9 + $0x8c] ss:$16 sps:$4 sm:$0xff]   ;;  %v6225_v44 = vld [vmem:[%s7176_s9 + $0x80] ss:$16 sps:$4 sm:$0xff]   ;;  %v6230_v45 = vld [vmem:[%s7176_s9 + $0x88] ss:$16 sps:$4 sm:$0xff]  }
  0xee   : > { %4870 = vmatprep.subr.bf16.mxu1 %v7097_v22  ;;  %v6237_v46 = vld [vmem:[%s7176_s9 + $0xa4] ss:$16 sps:$4 sm:$0xff]   ;;  %v6242_v47 = vld [vmem:[%s7176_s9 + $0xac] ss:$16 sps:$4 sm:$0xff]   ;;  %v6250_v48 = vld [vmem:[%s7176_s9 + $0xa0] ss:$16 sps:$4 sm:$0xff]  }
  0xef   : > { %4859 = vmatpush3.bf16.msra.mxu0 %v4968_v19  ;;  %v6255_v49 = vld [vmem:[%s7176_s9 + $0xa8] ss:$16 sps:$4 sm:$0xff]   ;;  %v6262_v50 = vld [vmem:[%s7176_s9 + $0xc4] ss:$16 sps:$4 sm:$0xff]   ;;  %v6267_v51 = vld [vmem:[%s7176_s9 + $0xcc] ss:$16 sps:$4 sm:$0xff]  }
  0xf0   : > { %1652 = vmatprep.subr.bf16.mxu0 %v6114_v24  ;;  %v6276_v52 = vld [vmem:[%s7176_s9 + $0xc0] ss:$16 sps:$4 sm:$0xff]   ;;  %v6281_v53 = vld [vmem:[%s7176_s9 + $0xc8] ss:$16 sps:$4 sm:$0xff]   ;;  %v6288_v54 = vld [vmem:[%s7176_s9 + $0xe4] ss:$16 sps:$4 sm:$0xff]  }
  0xf1   : > { %4871 = vmatpush3.bf16.msra.mxu1 %v4969_v20  ;;  %v6293_v55 = vld [vmem:[%s7176_s9 + $0xec] ss:$16 sps:$4 sm:$0xff]   ;;  %v6304_v56 = vld [vmem:[%s7176_s9 + $0xe0] ss:$16 sps:$4 sm:$0xff]   ;;  %v6309_v57 = vld [vmem:[%s7176_s9 + $0xe8] ss:$16 sps:$4 sm:$0xff]  }
  0xf2   : > { %1693 = vmatprep.subr.bf16.mxu1 %v6119_v25  ;;  %4861 = vmatmul.mubr.msk.bf16.vlgmr.msra.gmra.mrb[20].mxu0 %vm950_vm1, %v1296_v26  ;;  %v1451_v58 = vld [vmem:[%s353_s3] sm:$0xff]  ;;  %s7226_s12 = sld [smem:[#allocation20_spill]]  ;;  %s7227_s3 = sld [smem:[#allocation22_spill]] }
  0xf3   : > { %1653 = vmatpush1.bf16.msra.mxu0 %v6124_v28  ;;  %1684 = vmatprep.mubr.bf16.mxu0 %v7099_v2  ;;  %v4490_v59 = vpack.c.bf16 %v1451_v58, %v1451_v58  ;;  %s6977_s29 = sld [smem:[#allocation9 + %s7229_s24]] }
  0xf4   : > { %4873 = vmatmul.mubr.msk.bf16.vlgmr.msra.gmra.mrb[20].mxu1 %vm950_vm1, %v1374_v27  ;;  %1654 = vmatprep.subr.bf16.mxu0 %v6136_v30  ;;  %s3881_s20 = sld [smem:[#allocation9 + %s5340_s15]] }
  0xf5   : > { %1694 = vmatpush1.bf16.msra.mxu1 %v6129_v29  ;;  %1725 = vmatprep.mubr.bf16.mxu1 %v7099_v2  ;;  %s6995_s24 = sld [smem:[#allocation9 + %s7130_s6]] }
  0xf6   : > { %1695 = vmatprep.subr.bf16.mxu1 %v6141_v31  ;;  %s6998_s26 = sld [smem:[#allocation9 + %s7131_s13]] }
  0xf7   : > { %1655 = vmatpush1.bf16.msra.mxu0 %v6150_v32 }
  0xf8   : > { %1656 = vmatprep.subr.bf16.mxu0 %v6162_v34  ;;  %s6969_s1 = sld [smem:[#allocation9 + %s7227_s3]] }
  0xf9   : > { %1696 = vmatpush1.bf16.msra.mxu1 %v6155_v33  ;;  %s6989_s3 = sld [smem:[#allocation9 + %s7128_s7]] }
  0xfa   : > { %1697 = vmatprep.subr.bf16.mxu1 %v6167_v35  ;;  %s4721_s22 = sshll.u32 %s3881_s20, 3 }
  0xfb   : > { %1657 = vmatpush1.bf16.msra.mxu0 %v6176_v36  ;;  %s4737_s27 = sshll.u32 %s6995_s24, 3 }
  0xfc   : > { %1658 = vmatprep.subr.bf16.mxu0 %v6188_v38  ;;  %s4741_s13 = sshll.u32 %s6998_s26, 3 }
  0xfd   : > { %1698 = vmatpush1.bf16.msra.mxu1 %v6181_v37 }
  0xfe   : > { %1699 = vmatprep.subr.bf16.mxu1 %v6193_v39 }
  0xff   : > { %1659 = vmatpush1.bf16.msra.mxu0 %v6200_v40  ;;  %s4729_s6 = sshll.u32 %s6989_s3, 3  ;;  %s7232_s3 = sshll.u32 %s6959_s8, 3 }
 0x100   : > { %1660 = vmatprep.subr.bf16.mxu0 %v6212_v42 }
 0x101   : > { %1700 = vmatpush1.bf16.msra.mxu1 %v6205_v41 }
 0x102   : > { %1701 = vmatprep.subr.bf16.mxu1 %v6217_v43 }
 0x103   : > { %1661 = vmatpush1.bf16.msra.mxu0 %v6225_v44 }
 0x104   : > { %1662 = vmatprep.subr.bf16.mxu0 %v6237_v46 }
 0x105   : > { %1702 = vmatpush1.bf16.msra.mxu1 %v6230_v45 }
 0x106   : > { %1703 = vmatprep.subr.bf16.mxu1 %v6242_v47 }
 0x107   : > { %1663 = vmatpush1.bf16.msra.mxu0 %v6250_v48 }
 0x108   : > { %1664 = vmatprep.subr.bf16.mxu0 %v6262_v50 }
 0x109   : > { %1704 = vmatpush1.bf16.msra.mxu1 %v6255_v49 }
 0x10a   : > { %1705 = vmatprep.subr.bf16.mxu1 %v6267_v51 }
 0x10b   : > { %1665 = vmatpush1.bf16.msra.mxu0 %v6276_v52 }
 0x10c   : > { %1666 = vmatprep.subr.bf16.mxu0 %v6288_v54 }
 0x10d   : > { %1706 = vmatpush1.bf16.msra.mxu1 %v6281_v53 }
 0x10e   : > { %1707 = vmatprep.subr.bf16.mxu1 %v6293_v55 }
 0x10f   : > { %1667 = vmatpush1.bf16.msra.mxu0 %v6304_v56 }
 0x110   : > { %1954 = vmatprep.subr.bf16.mxu0 %v6114_v24 }
 0x111   : > { %1708 = vmatpush1.bf16.msra.mxu1 %v6309_v57 }
 0x112   : > { %1995 = vmatprep.subr.bf16.mxu1 %v6119_v25  ;;  %4491 = vmatmul.mubr.msk.bf16.vlgmr.msra.gmra.mrb[24].mxu0 %vm4489_vm3, %v4490_v59 }
 0x113   : > { %1955 = vmatpush1.bf16.msra.mxu0 %v6124_v28  ;;  %1986 = vmatprep.mubr.bf16.mxu0 %v7099_v2 }
 0x114   : > { %4494 = vmatmul.mubr.msk.bf16.vlgmr.msra.gmra.mrb[24].mxu1 %vm4489_vm3, %v4490_v59  ;;  %1956 = vmatprep.subr.bf16.mxu0 %v6136_v30 }
 0x115   : > { %1996 = vmatpush1.bf16.msra.mxu1 %v6129_v29  ;;  %2027 = vmatprep.mubr.bf16.mxu1 %v7099_v2 }
 0x116   : > { %1997 = vmatprep.subr.bf16.mxu1 %v6141_v31 }
 0x117   : > { %1957 = vmatpush1.bf16.msra.mxu0 %v6150_v32 }
 0x118   : > { %1958 = vmatprep.subr.bf16.mxu0 %v6162_v34 }
 0x119   : > { %1998 = vmatpush1.bf16.msra.mxu1 %v6155_v33 }
 0x11a   : > { %1999 = vmatprep.subr.bf16.mxu1 %v6167_v35 }
 0x11b   : > { %1959 = vmatpush1.bf16.msra.mxu0 %v6176_v36 }
 0x11c   : > { %1960 = vmatprep.subr.bf16.mxu0 %v6188_v38 }
 0x11d   : > { %2000 = vmatpush1.bf16.msra.mxu1 %v6181_v37 }
 0x11e   : > { %2001 = vmatprep.subr.bf16.mxu1 %v6193_v39 }
 0x11f   : > { %1961 = vmatpush1.bf16.msra.mxu0 %v6200_v40 }
 0x120   : > { %1962 = vmatprep.subr.bf16.mxu0 %v6212_v42 }
 0x121   : > { %2002 = vmatpush1.bf16.msra.mxu1 %v6205_v41 }
 0x122   : > { %2003 = vmatprep.subr.bf16.mxu1 %v6217_v43 }
 0x123   : > { %1963 = vmatpush1.bf16.msra.mxu0 %v6225_v44 }
 0x124   : > { %1964 = vmatprep.subr.bf16.mxu0 %v6237_v46 }
 0x125   : > { %2004 = vmatpush1.bf16.msra.mxu1 %v6230_v45 }
 0x126   : > { %2005 = vmatprep.subr.bf16.mxu1 %v6242_v47 }
 0x127   : > { %1965 = vmatpush1.bf16.msra.mxu0 %v6250_v48 }
 0x128   : > { %1966 = vmatprep.subr.bf16.mxu0 %v6262_v50 }
 0x129   : > { %2006 = vmatpush1.bf16.msra.mxu1 %v6255_v49 }
 0x12a   : > { %2007 = vmatprep.subr.bf16.mxu1 %v6267_v51 }
 0x12b   : > { %1967 = vmatpush1.bf16.msra.mxu0 %v6276_v52 }
 0x12c   : > { %1968 = vmatprep.subr.bf16.mxu0 %v6288_v54 }
 0x12d   : > { %2008 = vmatpush1.bf16.msra.mxu1 %v6281_v53 }
 0x12e   : > { %2009 = vmatprep.subr.bf16.mxu1 %v6293_v55 }
 0x12f   : > { %1969 = vmatpush1.bf16.msra.mxu0 %v6304_v56 }
 0x130   : > { %2256 = vmatprep.subr.bf16.mxu0 %v6114_v24 }
 0x131   : > { %2010 = vmatpush1.bf16.msra.mxu1 %v6309_v57 }
 0x132   : > { %2297 = vmatprep.subr.bf16.mxu1 %v6119_v25 }
 0x13b   : > { %v997_v60 = vpop.f32.mrb[0].mxu0  ;;  %v1070_v61 = vpop.f32.mrb[0].mxu1 }
 0x13c   : > { %v999_v62 = vpop.f32.mrb[1].mxu0  ;;  %v1072_v63 = vpop.f32.mrb[1].mxu1 }
 0x13d   : > { %v6353_v0 = vpop.f32.mrb[2].mxu0  ;;  %v6355_v1 = vpop.f32.mrb[2].mxu1 }
 0x13e   : > { %v6357_v3 = vpop.f32.mrb[3].mxu0  ;;  %v6359_v4 = vpop.f32.mrb[3].mxu1 }
 0x161   : > { %v6361_v5 = vpop.f32.mrb[4].mxu0  ;;  %v6363_v6 = vpop.f32.mrb[4].mxu1 }
 0x162   : > { %v6365_v7 = vpop.f32.mrb[5].mxu0  ;;  %v6367_v8 = vpop.f32.mrb[5].mxu1 }
 0x163   : > { %v6369_v9 = vpop.f32.mrb[6].mxu0  ;;  %v6371_v10 = vpop.f32.mrb[6].mxu1 }
 0x164   : > { %7179 = vst [vmem:[#allocation36_spill] sm:$0xff] %v6371_v10  ;;  %v6373_v11 = vpop.f32.mrb[7].mxu0  ;;  %v6375_v12 = vpop.f32.mrb[7].mxu1 }
 0x165   : > { %7180 = vst [vmem:[#allocation37_spill] sm:$0xff] %v6373_v11  ;;  %7181 = vst [vmem:[#allocation38_spill] sm:$0xff] %v6375_v12  ;;  %v850_v11 = vlaneseq }
 0x167   : > { %v851_v10 = vshrl.u32 %v850_v11, 7 }
 0x190   : > { %v6377_v13 = vpop.f32.mrb[8].mxu0  ;;  %v6379_v14 = vpop.f32.mrb[8].mxu1 }
 0x191   : > { %7182 = vst [vmem:[#allocation39_spill] sm:$0xff] %v6377_v13  ;;  %7183 = vst [vmem:[#allocation40_spill] sm:$0xff] %v6379_v14  ;;  %v6381_v15 = vpop.f32.mrb[9].mxu0  ;;  %v6383_v16 = vpop.f32.mrb[9].mxu1 }
 0x192   : > { %7184 = vst [vmem:[#allocation41_spill] sm:$0xff] %v6381_v15  ;;  %7185 = vst [vmem:[#allocation42_spill] sm:$0xff] %v6383_v16  ;;  %v6385_v17 = vpop.f32.mrb[10].mxu0  ;;  %v6387_v18 = vpop.f32.mrb[10].mxu1 }
 0x193   : > { %7186 = vst [vmem:[#allocation43_spill] sm:$0xff] %v6385_v17  ;;  %7187 = vst [vmem:[#allocation44_spill] sm:$0xff] %v6387_v18  ;;  %v6389_v19 = vpop.f32.mrb[11].mxu0  ;;  %v6391_v20 = vpop.f32.mrb[11].mxu1 }
 0x194   : > { %7188 = vst [vmem:[#allocation45_spill] sm:$0xff] %v6389_v19  ;;  %7189 = vst [vmem:[#allocation46_spill] sm:$0xff] %v6391_v20 }
 0x1a7   : > { %v6393_v21 = vpop.f32.mrb[12].mxu0  ;;  %v6395_v23 = vpop.f32.mrb[12].mxu1 }
 0x1a8   : > { %7190 = vst [vmem:[#allocation47_spill] sm:$0xff] %v6393_v21  ;;  %7191 = vst [vmem:[#allocation48_spill] sm:$0xff] %v6395_v23  ;;  %v6397_v24 = vpop.f32.mrb[13].mxu0  ;;  %v6399_v25 = vpop.f32.mrb[13].mxu1 }
 0x1a9   : > { %7192 = vst [vmem:[#allocation49_spill] sm:$0xff] %v6397_v24  ;;  %7193 = vst [vmem:[#allocation50_spill] sm:$0xff] %v6399_v25  ;;  %v6401_v26 = vpop.f32.mrb[14].mxu0  ;;  %v6403_v27 = vpop.f32.mrb[14].mxu1 }
 0x1aa   : > { %7194 = vst [vmem:[#allocation51_spill] sm:$0xff] %v6401_v26  ;;  %7195 = vst [vmem:[#allocation52_spill] sm:$0xff] %v6403_v27  ;;  %v6405_v58 = vpop.f32.mrb[15].mxu0  ;;  %v6407_v59 = vpop.f32.mrb[15].mxu1 }
 0x1ab   : > { %7196 = vst [vmem:[#allocation53_spill] sm:$0xff] %v6405_v58  ;;  %7197 = vst [vmem:[#allocation54_spill] sm:$0xff] %v6407_v59 }
 0x1af   : > { %v1222_v22 = vpop.f32.mrb[16].mxu0 }
 0x1b0   : > { %v4838_v20 = vpop.f32.mrb[17].mxu0 }
 0x1b1   : > { %v1225_v21 = vpop.f32.mrb[18].mxu0 }
 0x1b2   : > { %v4839_v23 = vpop.f32.mrb[19].mxu0 }
 0x1b7   : > { %v1289_v2 = vpop.f32.mrb[16].mxu1 }
 0x1b8   : > { %v1290_v19 = vadd.f32 %v1289_v2, %v1222_v22  ;;  %v4850_v18 = vpop.f32.mrb[17].mxu1  ;;  %v852_v2 = vsub.s32 0, %v851_v10  ;;  %v860_v22 = vsub.s32 2, %v851_v10 }
 0x1b9   : > { %v1292_v17 = vpop.f32.mrb[18].mxu1  ;;  %v864_v18 = vsub.s32 3, %v851_v10 }
 0x1ba   : > { %v4851_v16 = vpop.f32.mrb[19].mxu1  ;;  %v848_v17 = vld [vmem:[%s7199_s11] sm:$0xf]  ;;  %s6966_s11 = sld [smem:[#allocation9 + %s7226_s12]] }
 0x1bb   : > { %v856_v16 = vsub.s32 1, %v851_v10  ;;  %v6414_v20 = vrot.slane %v848_v17, %v852_v2  ;;  %s6986_s12 = sld [smem:[#allocation9 + %s5364_s0]]  ;;  %s4325_s0 = scalar_lea.vmem [#allocation5], %s4721_s22 }
 0x1c0   : > { %s7234_s8 = sshll.u32 %s6966_s11, 3 }
 0x1c5   : > { %v1366_v24 = vpop.f32.mrb[20].mxu0 }
 0x1c6   : > { %v1372_v25 = vadd.f32 %v1366_v24, %v1290_v19  ;;  %v4862_v14 = vpop.f32.mrb[21].mxu0  ;;  %v998_v19 = vadd.f32 %v997_v60, %v6414_v20 }
 0x1c7   : > { %v1444_v15 = vpop.f32.mrb[20].mxu1  ;;  %v1369_v13 = vpop.f32.mrb[22].mxu0  ;;  %v6416_v14 = vrot.slane %v848_v17, %v860_v22 }
 0x1c8   : > { %v4874_v26 = vpop.f32.mrb[21].mxu1  ;;  %v6409_v12 = vadd.f32 %v1444_v15, %v1372_v25  ;;  %v4863_v58 = vpop.f32.mrb[23].mxu0  ;;  %v6418_v13 = vrot.slane %v848_v17, %v856_v16  ;;  %v6420_v15 = vrot.slane %v848_v17, %v864_v18 }
 0x1c9   : > { %v1447_v27 = vpop.f32.mrb[22].mxu1  ;;  %v1071_v11 = vadd.f32 %v1070_v61, %v6416_v14 }
 0x1ca   : > { %7198 = vst [vmem:[#allocation55_spill] sm:$0xff] %v6409_v12  ;;  %v4875_v59 = vpop.f32.mrb[23].mxu1  ;;  %v1000_v21 = vadd.f32 %v999_v62, %v6418_v13  ;;  %v1073_v23 = vadd.f32 %v1072_v63, %v6420_v15  ;;  %v1453_v63 = vld [vmem:[%s357_s19] sm:$0xff]  ;;  %s6974_s19 = sld [smem:[#allocation9 + %s7228_s2]] }
 0x1cb   : > { %s6992_s2 = sld [smem:[#allocation9 + %s7129_s23]]  ;;  %s4725_s23 = sshll.u32 %s6986_s12, 3 }
 0x1cc   : > { %s4331_s12 = scalar_lea.vmem [#allocation5], %s4725_s23 }
 0x1d1   : > { %s4733_s5 = sshll.u32 %s6992_s2, 3  ;;  %s4334_s2 = scalar_lea.vmem [#allocation5], %s7232_s3 }
 0x1e5   : > { %v1686_v24 = vpop.f32.mrb[24].mxu0 }
 0x1e6   : > { %v1734_v10 = vadd.f32 %v1686_v24, %v998_v19  ;;  %v1688_v27 = vpop.f32.mrb[25].mxu0  ;;  %v1454_v24 = vsel %vm950_vm1, %v1453_v63, 0.0 }
 0x1e7   : > { %v1727_v25 = vpop.f32.mrb[24].mxu1  ;;  %v1735_v59 = vadd.f32 %v1688_v27, %v1000_v21  ;;  %v1690_v22 = vpop.f32.mrb[26].mxu0 }
 0x1e8   : > { %v1736_v26 = vadd.f32 %v1727_v25, %v1071_v11  ;;  %v1729_v58 = vpop.f32.mrb[25].mxu1  ;;  %v1738_v16 = vmul.f32 0.5, %v1734_v10  ;;  %v1691_v18 = vpop.f32.mrb[27].mxu0 }
 0x1e9   : > { %v1737_v2 = vadd.f32 %v1729_v58, %v1073_v23  ;;  %v1731_v17 = vpop.f32.mrb[26].mxu1  ;;  %v1742_v12 = vmul.f32 0.5, %v1735_v59  ;;  %v7201_v18 = vmov 0  }
 0x1ea   : > { %v1732_v60 = vpop.f32.mrb[27].mxu1  ;;  %5088 = vtanh.f32 %v1738_v16 }
 0x1eb   : > { %5090 = vtanh.f32 %v1742_v12  ;;  %v1747_v61 = vmul.f32 0.5, %v1737_v2  ;;  %v1004_v60 = vadd.f32 %v6357_v3, %v6418_v13 }
 0x1ec   : > { %5092 = vtanh.f32 %v1736_v26 }
 0x1ed   : > { %5094 = vtanh.f32 %v1747_v61  ;;  %v1077_v61 = vadd.f32 %v6359_v4, %v6420_v15 }
 0x1f4   : > { %v5089_v62 = vpop.eup %5088 }
 0x1f5   : > { %v5091_v19 = vpop.eup %5090  ;;  %v1740_v11 = vmul.f32 0.5, %v5089_v62 }
 0x1f6   : > { %v1744_v21 = vmul.f32 0.5, %v5091_v19  ;;  %v5093_v25 = vpop.eup %5092 }
 0x1f7   : > { %v1741_v23 = vadd.f32 0.5, %v1740_v11  ;;  %v5095_v26 = vpop.eup %5094 }
 0x1f8   : > { %v1745_v10 = vadd.f32 0.5, %v1744_v21  ;;  %v1749_v59 = vmul.f32 0.5, %v5095_v26 }
 0x1f9   : > { %v1752_v27 = vmul.f32 %v5093_v25, %v1741_v23 }
 0x1fa   : > { %v1751_v58 = vmul.f32 %v1745_v10, %v1454_v24  ;;  %v1750_v2 = vadd.f32 0.5, %v1749_v59 }
 0x1fc   : > { %v6431_v12 = vadd.f32 %v1752_v27, %v1751_v58 }
 0x1fe   : > { %5096 = vtanh.f32 %v6431_v12 }
 0x208   : > { %v5097_v22 = vpop.eup %5096 }
 0x209   : > { %v1755_v17 = vmul.f32 %v5097_v22, %v1750_v2 }
 0x20b   : > { %1756 = vst [vmem:[#allocation5] sm:$0xff] %v1755_v17  ;;  %v1761_v16 = vpack.c.bf16 %v1755_v17, %v1755_v17 }
 0x20d   : > { %1987 = vmatmul.mubr.bf16.vlgmr.msra.gmra.mrb[28].mxu0 %v1761_v16  ;;  %2028 = vmatmul.mubr.bf16.vlgmr.msra.gmra.mrb[28].mxu1 %v1761_v16 }
 0x20e   : > { %2257 = vmatpush1.bf16.msra.mxu0 %v6124_v28  ;;  %2298 = vmatpush1.bf16.msra.mxu1 %v6129_v29  ;;  %v1002_v28 = vadd.f32 %v6353_v0, %v6414_v20  ;;  %v1075_v29 = vadd.f32 %v6355_v1, %v6416_v14 }
 0x20f   : > { %2258 = vmatprep.subr.bf16.mxu0 %v6136_v30  ;;  %2299 = vmatprep.subr.bf16.mxu1 %v6141_v31 }
 0x210   : > { %2288 = vmatprep.mubr.bf16.mxu0 %v7201_v18  ;;  %2329 = vmatprep.mubr.bf16.mxu1 %v7201_v18 }
 0x212   : > { %2259 = vmatpush1.bf16.msra.mxu0 %v6150_v32  ;;  %2300 = vmatpush1.bf16.msra.mxu1 %v6155_v33 }
 0x213   : > { %2260 = vmatprep.subr.bf16.mxu0 %v6162_v34  ;;  %2301 = vmatprep.subr.bf16.mxu1 %v6167_v35 }
 0x216   : > { %2261 = vmatpush1.bf16.msra.mxu0 %v6176_v36  ;;  %2302 = vmatpush1.bf16.msra.mxu1 %v6181_v37 }
 0x217   : > { %2262 = vmatprep.subr.bf16.mxu0 %v6188_v38  ;;  %2303 = vmatprep.subr.bf16.mxu1 %v6193_v39 }
 0x21a   : > { %2263 = vmatpush1.bf16.msra.mxu0 %v6200_v40  ;;  %2304 = vmatpush1.bf16.msra.mxu1 %v6205_v41 }
 0x21b   : > { %2264 = vmatprep.subr.bf16.mxu0 %v6212_v42  ;;  %2305 = vmatprep.subr.bf16.mxu1 %v6217_v43 }
 0x21e   : > { %2265 = vmatpush1.bf16.msra.mxu0 %v6225_v44  ;;  %2306 = vmatpush1.bf16.msra.mxu1 %v6230_v45 }
 0x21f   : > { %2266 = vmatprep.subr.bf16.mxu0 %v6237_v46  ;;  %2307 = vmatprep.subr.bf16.mxu1 %v6242_v47 }
 0x222   : > { %2267 = vmatpush1.bf16.msra.mxu0 %v6250_v48  ;;  %2308 = vmatpush1.bf16.msra.mxu1 %v6255_v49 }
 0x223   : > { %2268 = vmatprep.subr.bf16.mxu0 %v6262_v50  ;;  %2309 = vmatprep.subr.bf16.mxu1 %v6267_v51 }
 0x226   : > { %2269 = vmatpush1.bf16.msra.mxu0 %v6276_v52  ;;  %2310 = vmatpush1.bf16.msra.mxu1 %v6281_v53 }
 0x227   : > { %2270 = vmatprep.subr.bf16.mxu0 %v6288_v54  ;;  %2311 = vmatprep.subr.bf16.mxu1 %v6293_v55 }
 0x22a   : > { %2271 = vmatpush1.bf16.msra.mxu0 %v6304_v56  ;;  %2312 = vmatpush1.bf16.msra.mxu1 %v6309_v57 }
 0x2e0   : > { %v1988_v62 = vpop.f32.mrb[28].mxu0  ;;  %v2029_v63 = vpop.f32.mrb[28].mxu1 }
 0x2e1   : > { %v2036_v19 = vadd.f32 %v1988_v62, %v1002_v28  ;;  %v2038_v11 = vadd.f32 %v2029_v63, %v1075_v29  ;;  %v1990_v21 = vpop.f32.mrb[29].mxu0  ;;  %v2031_v23 = vpop.f32.mrb[29].mxu1 }
 0x2e2   : > { %v2037_v24 = vadd.f32 %v1990_v21, %v1004_v60  ;;  %v2039_v25 = vadd.f32 %v2031_v23, %v1077_v61  ;;  %v1992_v10 = vpop.f32.mrb[30].mxu0  ;;  %v2033_v27 = vpop.f32.mrb[30].mxu1 }
 0x2e3   : > { %v2040_v0 = vmul.f32 0.5, %v2036_v19  ;;  %v1993_v58 = vpop.f32.mrb[31].mxu0  ;;  %v2034_v26 = vpop.f32.mrb[31].mxu1  ;;  %v6498_v10 = vld [vmem:[%s7176_s9 + $0x8] ss:$16 sps:$4 sm:$0xff]  }
 0x2e4   : > { %v2044_v1 = vmul.f32 0.5, %v2037_v24  ;;  %v2049_v3 = vmul.f32 0.5, %v2039_v25  ;;  %v6488_v24 = vld [vmem:[%s7176_s9 + $0xc] ss:$16 sps:$4 sm:$0xff]   ;;  %v6493_v25 = vld [vmem:[%s7176_s9] ss:$16 sps:$4 sm:$0xff]  }
 0x2e5   : > { %5098 = vtanh.f32 %v2040_v0  ;;  %2599 = vmatprep.subr.bf16.mxu1 %v6488_v24  ;;  %v6553_v26 = vld [vmem:[%s7176_s9 + $0x24] ss:$16 sps:$4 sm:$0xff]  }
 0x2e6   : > { %5100 = vtanh.f32 %v2044_v1  ;;  %v6558_v1 = vld [vmem:[%s7176_s9 + $0x2c] ss:$16 sps:$4 sm:$0xff]  }
 0x2e7   : > { %5102 = vtanh.f32 %v2038_v11 }
 0x2e8   : > { %5104 = vtanh.f32 %v2049_v3  ;;  %v6563_v3 = vld [vmem:[%s7176_s9 + $0x20] ss:$16 sps:$4 sm:$0xff]  }
 0x2ef   : > { %v5099_v59 = vpop.eup %5098 }
 0x2f0   : > { %v5101_v4 = vpop.eup %5100  ;;  %v2042_v2 = vmul.f32 0.5, %v5099_v59  ;;  %v6568_v59 = vld [vmem:[%s7176_s9 + $0x28] ss:$16 sps:$4 sm:$0xff]  }
 0x2f1   : > { %v2046_v22 = vmul.f32 0.5, %v5101_v4  ;;  %v5103_v16 = vpop.eup %5102  ;;  %v6577_v4 = vld [vmem:[%s7176_s9 + $0x44] ss:$16 sps:$4 sm:$0xff]  }
 0x2f2   : > { %v2043_v17 = vadd.f32 0.5, %v2042_v2  ;;  %v5105_v62 = vpop.eup %5104  ;;  %v6582_v2 = vld [vmem:[%s7176_s9 + $0x4c] ss:$16 sps:$4 sm:$0xff]  }
 0x2f3   : > { %v2047_v28 = vadd.f32 0.5, %v2046_v22  ;;  %v2051_v63 = vmul.f32 0.5, %v5105_v62  ;;  %v6587_v22 = vld [vmem:[%s7176_s9 + $0x40] ss:$16 sps:$4 sm:$0xff]   ;;  %v6630_v62 = vld [vmem:[%s7176_s9 + $0x8c] ss:$16 sps:$4 sm:$0xff]  }
 0x2f4   : > { %v2054_v29 = vmul.f32 %v5103_v16, %v2043_v17  ;;  %v6592_v17 = vld [vmem:[%s7176_s9 + $0x48] ss:$16 sps:$4 sm:$0xff]   ;;  %v6601_v16 = vld [vmem:[%s7176_s9 + $0x64] ss:$16 sps:$4 sm:$0xff]  }
 0x2f5   : > { %v2053_v60 = vmul.f32 %v2047_v28, %v6431_v12  ;;  %v2052_v19 = vadd.f32 0.5, %v2051_v63  ;;  %v6483_v12 = vld [vmem:[%s7176_s9 + $0x4] ss:$16 sps:$4 sm:$0xff]   ;;  %v6606_v28 = vld [vmem:[%s7176_s9 + $0x6c] ss:$16 sps:$4 sm:$0xff]  }
 0x2f6   : > { %2558 = vmatprep.subr.bf16.mxu0 %v6483_v12  ;;  %v6635_v63 = vld [vmem:[%s7176_s9 + $0x80] ss:$16 sps:$4 sm:$0xff]  }
 0x2f7   : > { %v6475_v61 = vadd.f32 %v2054_v29, %v2053_v60  ;;  %v6611_v29 = vld [vmem:[%s7176_s9 + $0x60] ss:$16 sps:$4 sm:$0xff]   ;;  %v6616_v60 = vld [vmem:[%s7176_s9 + $0x68] ss:$16 sps:$4 sm:$0xff]  }
 0x2f9   : > { %5106 = vtanh.f32 %v6475_v61 }
 0x303   : > { %v5107_v11 = vpop.eup %5106 }
 0x304   : > { %v2057_v21 = vmul.f32 %v5107_v11, %v2052_v19  ;;  %v6640_v19 = vld [vmem:[%s7176_s9 + $0x88] ss:$16 sps:$4 sm:$0xff]   ;;  %v6649_v11 = vld [vmem:[%s7176_s9 + $0xa4] ss:$16 sps:$4 sm:$0xff]  }
 0x306   : > { %2058 = vst [vmem:[#allocation5 + $0x8] sm:$0xff] %v2057_v21  ;;  %v2063_v23 = vpack.c.bf16 %v2057_v21, %v2057_v21  ;;  %v6654_v21 = vld [vmem:[%s7176_s9 + $0xac] ss:$16 sps:$4 sm:$0xff]  }
 0x308   : > { %2289 = vmatmul.mubr.bf16.vlgmr.msra.gmra.mrb[32].mxu0 %v2063_v23  ;;  %2330 = vmatmul.mubr.bf16.vlgmr.msra.gmra.mrb[32].mxu1 %v2063_v23  ;;  %v6659_v23 = vld [vmem:[%s7176_s9 + $0xa0] ss:$16 sps:$4 sm:$0xff]  }
 0x309   : > { %2590 = vmatprep.mubr.bf16.mxu0 %v7201_v18  ;;  %2631 = vmatprep.mubr.bf16.mxu1 %v7201_v18 }
 0x30a   : > { %2559 = vmatpush1.bf16.msra.mxu0 %v6493_v25  ;;  %2600 = vmatpush1.bf16.msra.mxu1 %v6498_v10 }
 0x30b   : > { %2560 = vmatprep.subr.bf16.mxu0 %v6136_v30  ;;  %2601 = vmatprep.subr.bf16.mxu1 %v6141_v31  ;;  %v1008_v30 = vadd.f32 %v6361_v5, %v6414_v20  ;;  %v1081_v31 = vadd.f32 %v6363_v6, %v6416_v14 }
 0x30e   : > { %2561 = vmatpush1.bf16.msra.mxu0 %v6150_v32  ;;  %2602 = vmatpush1.bf16.msra.mxu1 %v6155_v33  ;;  %v1010_v32 = vadd.f32 %v6365_v7, %v6418_v13  ;;  %v1083_v33 = vadd.f32 %v6367_v8, %v6420_v15 }
 0x30f   : > { %2562 = vmatprep.subr.bf16.mxu0 %v6162_v34  ;;  %2603 = vmatprep.subr.bf16.mxu1 %v6167_v35 }
 0x312   : > { %2563 = vmatpush1.bf16.msra.mxu0 %v6176_v36  ;;  %2604 = vmatpush1.bf16.msra.mxu1 %v6181_v37 }
 0x313   : > { %2564 = vmatprep.subr.bf16.mxu0 %v6188_v38  ;;  %2605 = vmatprep.subr.bf16.mxu1 %v6193_v39 }
 0x316   : > { %2565 = vmatpush1.bf16.msra.mxu0 %v6200_v40  ;;  %2606 = vmatpush1.bf16.msra.mxu1 %v6205_v41 }
 0x317   : > { %2566 = vmatprep.subr.bf16.mxu0 %v6212_v42  ;;  %2607 = vmatprep.subr.bf16.mxu1 %v6217_v43 }
 0x31a   : > { %2567 = vmatpush1.bf16.msra.mxu0 %v6225_v44  ;;  %2608 = vmatpush1.bf16.msra.mxu1 %v6230_v45 }
 0x31b   : > { %2568 = vmatprep.subr.bf16.mxu0 %v6237_v46  ;;  %2609 = vmatprep.subr.bf16.mxu1 %v6242_v47 }
 0x31e   : > { %2569 = vmatpush1.bf16.msra.mxu0 %v6250_v48  ;;  %2610 = vmatpush1.bf16.msra.mxu1 %v6255_v49 }
 0x31f   : > { %2570 = vmatprep.subr.bf16.mxu0 %v6262_v50  ;;  %2611 = vmatprep.subr.bf16.mxu1 %v6267_v51 }
 0x322   : > { %2571 = vmatpush1.bf16.msra.mxu0 %v6276_v52  ;;  %2612 = vmatpush1.bf16.msra.mxu1 %v6281_v53 }
 0x323   : > { %2572 = vmatprep.subr.bf16.mxu0 %v6288_v54  ;;  %2613 = vmatprep.subr.bf16.mxu1 %v6293_v55 }
 0x326   : > { %2573 = vmatpush1.bf16.msra.mxu0 %v6304_v56  ;;  %2614 = vmatpush1.bf16.msra.mxu1 %v6309_v57 }
 0x327   : > { %2860 = vmatprep.subr.bf16.mxu0 %v6483_v12  ;;  %2901 = vmatprep.subr.bf16.mxu1 %v6488_v24 }
 0x3db   : > { %v2290_v34 = vpop.f32.mrb[32].mxu0  ;;  %v2331_v35 = vpop.f32.mrb[32].mxu1 }
 0x3dc   : > { %v2338_v36 = vadd.f32 %v2290_v34, %v1008_v30  ;;  %v2340_v37 = vadd.f32 %v2331_v35, %v1081_v31  ;;  %v2292_v38 = vpop.f32.mrb[33].mxu0  ;;  %v2333_v39 = vpop.f32.mrb[33].mxu1  ;;  %v6664_v30 = vld [vmem:[%s7176_s9 + $0xa8] ss:$16 sps:$4 sm:$0xff]   ;;  %v6673_v31 = vld [vmem:[%s7176_s9 + $0xc4] ss:$16 sps:$4 sm:$0xff]  }
 0x3dd   : > { %v2339_v40 = vadd.f32 %v2292_v38, %v1010_v32  ;;  %v2341_v41 = vadd.f32 %v2333_v39, %v1083_v33  ;;  %v2294_v42 = vpop.f32.mrb[34].mxu0  ;;  %v2335_v43 = vpop.f32.mrb[34].mxu1  ;;  %v6678_v32 = vld [vmem:[%s7176_s9 + $0xcc] ss:$16 sps:$4 sm:$0xff]   ;;  %v6683_v33 = vld [vmem:[%s7176_s9 + $0xc0] ss:$16 sps:$4 sm:$0xff]   ;;  %v1012_v39 = vadd.f32 %v6369_v9, %v6414_v20 }
 0x3de   : > { %v2342_v44 = vmul.f32 0.5, %v2338_v36  ;;  %v2295_v45 = vpop.f32.mrb[35].mxu0  ;;  %v2336_v46 = vpop.f32.mrb[35].mxu1  ;;  %v6688_v34 = vld [vmem:[%s7176_s9 + $0xc8] ss:$16 sps:$4 sm:$0xff]  }
 0x3df   : > { %v2346_v47 = vmul.f32 0.5, %v2339_v40  ;;  %v2351_v48 = vmul.f32 0.5, %v2341_v41  ;;  %v6697_v35 = vld [vmem:[%s7176_s9 + $0xe4] ss:$16 sps:$4 sm:$0xff]   ;;  %v6702_v36 = vld [vmem:[%s7176_s9 + $0xec] ss:$16 sps:$4 sm:$0xff]  }
 0x3e0   : > { %5108 = vtanh.f32 %v2342_v44  ;;  %v6712_v38 = vld [vmem:[%s7176_s9 + $0xe8] ss:$16 sps:$4 sm:$0xff]   ;;  %v7202_v40 = vld [vmem:[#allocation36_spill] sm:$0xff]  ;;  %v7204_v44 = vld [vmem:[#allocation38_spill] sm:$0xff] }
 0x3e1   : > { %5110 = vtanh.f32 %v2346_v47  ;;  %v1085_v41 = vadd.f32 %v7202_v40, %v6416_v14  ;;  %v7203_v42 = vld [vmem:[#allocation37_spill] sm:$0xff]  ;;  %v1087_v45 = vadd.f32 %v7204_v44, %v6420_v15 }
 0x3e2   : > { %5112 = vtanh.f32 %v2340_v37  ;;  %v6707_v37 = vld [vmem:[%s7176_s9 + $0xe0] ss:$16 sps:$4 sm:$0xff]   ;;  %v1014_v43 = vadd.f32 %v7203_v42, %v6418_v13 }
 0x3e3   : > { %5114 = vtanh.f32 %v2351_v48 }
 0x3ea   : > { %v5109_v49 = vpop.eup %5108 }
 0x3eb   : > { %v5111_v50 = vpop.eup %5110  ;;  %v2344_v51 = vmul.f32 0.5, %v5109_v49 }
 0x3ec   : > { %v2348_v52 = vmul.f32 0.5, %v5111_v50  ;;  %v5113_v54 = vpop.eup %5112 }
 0x3ed   : > { %v2345_v53 = vadd.f32 0.5, %v2344_v51  ;;  %v5115_v6 = vpop.eup %5114 }
 0x3ee   : > { %v2349_v55 = vadd.f32 0.5, %v2348_v52  ;;  %v2353_v7 = vmul.f32 0.5, %v5115_v6 }
 0x3ef   : > { %v2356_v56 = vmul.f32 %v5113_v54, %v2345_v53 }
 0x3f0   : > { %v2355_v57 = vmul.f32 %v2349_v55, %v6475_v61  ;;  %v2354_v8 = vadd.f32 0.5, %v2353_v7  ;;  %v6625_v61 = vld [vmem:[%s7176_s9 + $0x84] ss:$16 sps:$4 sm:$0xff]  }
 0x3f2   : > { %v6543_v5 = vadd.f32 %v2356_v56, %v2355_v57 }
 0x3f4   : > { %5116 = vtanh.f32 %v6543_v5 }
 0x3fe   : > { %v5117_v27 = vpop.eup %5116 }
 0x3ff   : > { %v2359_v0 = vmul.f32 %v5117_v27, %v2354_v8 }
 0x401   : > { %2360 = vst [vmem:[#allocation5 + $0x10] sm:$0xff] %v2359_v0  ;;  %v2365_v58 = vpack.c.bf16 %v2359_v0, %v2359_v0 }
 0x403   : > { %2591 = vmatmul.mubr.bf16.vlgmr.msra.gmra.mrb[36].mxu0 %v2365_v58  ;;  %2632 = vmatmul.mubr.bf16.vlgmr.msra.gmra.mrb[36].mxu1 %v2365_v58 }
 0x404   : > { %2861 = vmatpush1.bf16.msra.mxu0 %v6493_v25  ;;  %2902 = vmatpush1.bf16.msra.mxu1 %v6498_v10 }
 0x405   : > { %2892 = vmatprep.mubr.bf16.mxu0 %v7201_v18  ;;  %2933 = vmatprep.mubr.bf16.mxu1 %v7201_v18 }
 0x406   : > { %2862 = vmatprep.subr.bf16.mxu0 %v6553_v26  ;;  %2903 = vmatprep.subr.bf16.mxu1 %v6558_v1 }
 0x408   : > { %2863 = vmatpush1.bf16.msra.mxu0 %v6563_v3  ;;  %2904 = vmatpush1.bf16.msra.mxu1 %v6568_v59 }
 0x409   : > { %2864 = vmatprep.subr.bf16.mxu0 %v6577_v4  ;;  %2905 = vmatprep.subr.bf16.mxu1 %v6582_v2 }
 0x40c   : > { %2865 = vmatpush1.bf16.msra.mxu0 %v6587_v22  ;;  %2906 = vmatpush1.bf16.msra.mxu1 %v6592_v17 }
 0x40d   : > { %2866 = vmatprep.subr.bf16.mxu0 %v6601_v16  ;;  %2907 = vmatprep.subr.bf16.mxu1 %v6606_v28 }
 0x410   : > { %2867 = vmatpush1.bf16.msra.mxu0 %v6611_v29  ;;  %2908 = vmatpush1.bf16.msra.mxu1 %v6616_v60 }
 0x411   : > { %2868 = vmatprep.subr.bf16.mxu0 %v6625_v61  ;;  %2909 = vmatprep.subr.bf16.mxu1 %v6630_v62 }
 0x414   : > { %2869 = vmatpush1.bf16.msra.mxu0 %v6635_v63  ;;  %2910 = vmatpush1.bf16.msra.mxu1 %v6640_v19 }
 0x415   : > { %2870 = vmatprep.subr.bf16.mxu0 %v6649_v11  ;;  %2911 = vmatprep.subr.bf16.mxu1 %v6654_v21 }
 0x418   : > { %2871 = vmatpush1.bf16.msra.mxu0 %v6659_v23  ;;  %2912 = vmatpush1.bf16.msra.mxu1 %v6664_v30 }
 0x419   : > { %2872 = vmatprep.subr.bf16.mxu0 %v6673_v31  ;;  %2913 = vmatprep.subr.bf16.mxu1 %v6678_v32 }
 0x41c   : > { %2873 = vmatpush1.bf16.msra.mxu0 %v6683_v33  ;;  %2914 = vmatpush1.bf16.msra.mxu1 %v6688_v34 }
 0x41d   : > { %2874 = vmatprep.subr.bf16.mxu0 %v6697_v35  ;;  %2915 = vmatprep.subr.bf16.mxu1 %v6702_v36 }
 0x420   : > { %2875 = vmatpush1.bf16.msra.mxu0 %v6707_v37  ;;  %2916 = vmatpush1.bf16.msra.mxu1 %v6712_v38 }
 0x421   : > { %3162 = vmatprep.subr.bf16.mxu0 %v6483_v12  ;;  %3203 = vmatprep.subr.bf16.mxu1 %v6488_v24 }
 0x4d6   : > { %v2592_v46 = vpop.f32.mrb[36].mxu0  ;;  %v2633_v47 = vpop.f32.mrb[36].mxu1 }
 0x4d7   : > { %v2640_v48 = vadd.f32 %v2592_v46, %v1012_v39  ;;  %v2642_v49 = vadd.f32 %v2633_v47, %v1085_v41  ;;  %v2594_v50 = vpop.f32.mrb[37].mxu0  ;;  %v2635_v51 = vpop.f32.mrb[37].mxu1 }
 0x4d8   : > { %v2641_v52 = vadd.f32 %v2594_v50, %v1014_v43  ;;  %v2643_v53 = vadd.f32 %v2635_v51, %v1087_v45  ;;  %v2596_v54 = vpop.f32.mrb[38].mxu0  ;;  %v2637_v55 = vpop.f32.mrb[38].mxu1 }
 0x4d9   : > { %v2644_v9 = vmul.f32 0.5, %v2640_v48  ;;  %v2597_v56 = vpop.f32.mrb[39].mxu0  ;;  %v2638_v57 = vpop.f32.mrb[39].mxu1  ;;  %v7207_v54 = vld [vmem:[#allocation41_spill] sm:$0xff] }
 0x4da   : > { %v2648_v6 = vmul.f32 0.5, %v2641_v52  ;;  %v2653_v7 = vmul.f32 0.5, %v2643_v53  ;;  %v7206_v52 = vld [vmem:[#allocation40_spill] sm:$0xff]  ;;  %v1020_v55 = vadd.f32 %v7207_v54, %v6418_v13 }
 0x4db   : > { %5118 = vtanh.f32 %v2644_v9  ;;  %v1091_v53 = vadd.f32 %v7206_v52, %v6416_v14  ;;  %v7208_v9 = vld [vmem:[#allocation42_spill] sm:$0xff] }
 0x4dc   : > { %5120 = vtanh.f32 %v2648_v6  ;;  %v1093_v56 = vadd.f32 %v7208_v9, %v6420_v15 }
 0x4dd   : > { %5122 = vtanh.f32 %v2642_v49 }
 0x4de   : > { %5124 = vtanh.f32 %v2653_v7 }
 0x4e5   : > { %v5119_v8 = vpop.eup %5118 }
 0x4e6   : > { %v5121_v27 = vpop.eup %5120  ;;  %v2646_v0 = vmul.f32 0.5, %v5119_v8 }
 0x4e7   : > { %v2650_v58 = vmul.f32 0.5, %v5121_v27  ;;  %v5123_v40 = vpop.eup %5122 }
 0x4e8   : > { %v2647_v39 = vadd.f32 0.5, %v2646_v0  ;;  %v5125_v45 = vpop.eup %5124 }
 0x4e9   : > { %v2651_v41 = vadd.f32 0.5, %v2650_v58  ;;  %v2655_v46 = vmul.f32 0.5, %v5125_v45 }
 0x4ea   : > { %v2658_v42 = vmul.f32 %v5123_v40, %v2647_v39 }
 0x4eb   : > { %v2657_v43 = vmul.f32 %v2651_v41, %v6543_v5  ;;  %v2656_v47 = vadd.f32 0.5, %v2655_v46  ;;  %v7205_v5 = vld [vmem:[#allocation39_spill] sm:$0xff] }
 0x4ec   : > { %v1018_v51 = vadd.f32 %v7205_v5, %v6414_v20 }
 0x4ed   : > { %v6729_v44 = vadd.f32 %v2658_v42, %v2657_v43 }
 0x4ef   : > { %5126 = vtanh.f32 %v6729_v44 }
 0x4f9   : > { %v5127_v48 = vpop.eup %5126 }
 0x4fa   : > { %v2661_v49 = vmul.f32 %v5127_v48, %v2656_v47 }
 0x4fc   : > { %2662 = vst [vmem:[#allocation5 + $0x18] sm:$0xff] %v2661_v49  ;;  %v2667_v50 = vpack.c.bf16 %v2661_v49, %v2661_v49 }
 0x4fe   : > { %2893 = vmatmul.mubr.bf16.vlgmr.msra.gmra.mrb[40].mxu0 %v2667_v50  ;;  %2934 = vmatmul.mubr.bf16.vlgmr.msra.gmra.mrb[40].mxu1 %v2667_v50 }
 0x4ff   : > { %3163 = vmatpush1.bf16.msra.mxu0 %v6493_v25  ;;  %3204 = vmatpush1.bf16.msra.mxu1 %v6498_v10 }
 0x500   : > { %3164 = vmatprep.subr.bf16.mxu0 %v6553_v26  ;;  %3205 = vmatprep.subr.bf16.mxu1 %v6558_v1 }
 0x501   : > { %3194 = vmatprep.mubr.bf16.mxu0 %v7201_v18  ;;  %3235 = vmatprep.mubr.bf16.mxu1 %v7201_v18 }
 0x503   : > { %3165 = vmatpush1.bf16.msra.mxu0 %v6563_v3  ;;  %3206 = vmatpush1.bf16.msra.mxu1 %v6568_v59 }
 0x504   : > { %3166 = vmatprep.subr.bf16.mxu0 %v6577_v4  ;;  %3207 = vmatprep.subr.bf16.mxu1 %v6582_v2 }
 0x507   : > { %3167 = vmatpush1.bf16.msra.mxu0 %v6587_v22  ;;  %3208 = vmatpush1.bf16.msra.mxu1 %v6592_v17 }
 0x508   : > { %3168 = vmatprep.subr.bf16.mxu0 %v6601_v16  ;;  %3209 = vmatprep.subr.bf16.mxu1 %v6606_v28 }
 0x50b   : > { %3169 = vmatpush1.bf16.msra.mxu0 %v6611_v29  ;;  %3210 = vmatpush1.bf16.msra.mxu1 %v6616_v60 }
 0x50c   : > { %3170 = vmatprep.subr.bf16.mxu0 %v6625_v61  ;;  %3211 = vmatprep.subr.bf16.mxu1 %v6630_v62 }
 0x50f   : > { %3171 = vmatpush1.bf16.msra.mxu0 %v6635_v63  ;;  %3212 = vmatpush1.bf16.msra.mxu1 %v6640_v19 }
 0x510   : > { %3172 = vmatprep.subr.bf16.mxu0 %v6649_v11  ;;  %3213 = vmatprep.subr.bf16.mxu1 %v6654_v21 }
 0x513   : > { %3173 = vmatpush1.bf16.msra.mxu0 %v6659_v23  ;;  %3214 = vmatpush1.bf16.msra.mxu1 %v6664_v30 }
 0x514   : > { %3174 = vmatprep.subr.bf16.mxu0 %v6673_v31  ;;  %3215 = vmatprep.subr.bf16.mxu1 %v6678_v32 }
 0x517   : > { %3175 = vmatpush1.bf16.msra.mxu0 %v6683_v33  ;;  %3216 = vmatpush1.bf16.msra.mxu1 %v6688_v34 }
 0x518   : > { %3176 = vmatprep.subr.bf16.mxu0 %v6697_v35  ;;  %3217 = vmatprep.subr.bf16.mxu1 %v6702_v36 }
 0x51b   : > { %3177 = vmatpush1.bf16.msra.mxu0 %v6707_v37  ;;  %3218 = vmatpush1.bf16.msra.mxu1 %v6712_v38 }
 0x51c   : > { %3464 = vmatprep.subr.bf16.mxu0 %v6483_v12  ;;  %3505 = vmatprep.subr.bf16.mxu1 %v6488_v24 }
 0x5d1   : > { %v2894_v57 = vpop.f32.mrb[40].mxu0  ;;  %v2935_v6 = vpop.f32.mrb[40].mxu1 }
 0x5d2   : > { %v2942_v7 = vadd.f32 %v2894_v57, %v1018_v51  ;;  %v2944_v8 = vadd.f32 %v2935_v6, %v1091_v53  ;;  %v2896_v27 = vpop.f32.mrb[41].mxu0  ;;  %v2937_v12 = vpop.f32.mrb[41].mxu1 }
 0x5d3   : > { %v2943_v0 = vadd.f32 %v2896_v27, %v1020_v55  ;;  %v2945_v24 = vadd.f32 %v2937_v12, %v1093_v56  ;;  %v2898_v58 = vpop.f32.mrb[42].mxu0  ;;  %v2939_v39 = vpop.f32.mrb[42].mxu1  ;;  %v7211_v27 = vld [vmem:[#allocation45_spill] sm:$0xff] }
 0x5d4   : > { %v2946_v40 = vmul.f32 0.5, %v2942_v7  ;;  %v2899_v41 = vpop.f32.mrb[43].mxu0  ;;  %v2940_v42 = vpop.f32.mrb[43].mxu1  ;;  %v1024_v12 = vadd.f32 %v7211_v27, %v6418_v13 }
 0x5d5   : > { %v2950_v43 = vmul.f32 0.5, %v2943_v0  ;;  %v2955_v45 = vmul.f32 0.5, %v2945_v24  ;;  %v7212_v0 = vld [vmem:[#allocation46_spill] sm:$0xff] }
 0x5d6   : > { %5128 = vtanh.f32 %v2946_v40  ;;  %v1097_v24 = vadd.f32 %v7212_v0, %v6420_v15 }
 0x5d7   : > { %5130 = vtanh.f32 %v2950_v43 }
 0x5d8   : > { %5132 = vtanh.f32 %v2944_v8 }
 0x5d9   : > { %5134 = vtanh.f32 %v2955_v45 }
 0x5e0   : > { %v5129_v46 = vpop.eup %5128 }
 0x5e1   : > { %v5131_v47 = vpop.eup %5130  ;;  %v2948_v48 = vmul.f32 0.5, %v5129_v46 }
 0x5e2   : > { %v2952_v49 = vmul.f32 0.5, %v5131_v47  ;;  %v5133_v5 = vpop.eup %5132 }
 0x5e3   : > { %v2949_v50 = vadd.f32 0.5, %v2948_v48  ;;  %v5135_v55 = vpop.eup %5134 }
 0x5e4   : > { %v2953_v51 = vadd.f32 0.5, %v2952_v49  ;;  %v2957_v9 = vmul.f32 0.5, %v5135_v55 }
 0x5e5   : > { %v2960_v52 = vmul.f32 %v5133_v5, %v2949_v50 }
 0x5e6   : > { %v2959_v53 = vmul.f32 %v2953_v51, %v6729_v44  ;;  %v2958_v56 = vadd.f32 0.5, %v2957_v9  ;;  %v7210_v44 = vld [vmem:[#allocation44_spill] sm:$0xff] }
 0x5e7   : > { %v1095_v8 = vadd.f32 %v7210_v44, %v6416_v14 }
 0x5e8   : > { %v6775_v54 = vadd.f32 %v2960_v52, %v2959_v53 }
 0x5ea   : > { %5136 = vtanh.f32 %v6775_v54 }
 0x5f4   : > { %v5137_v57 = vpop.eup %5136 }
 0x5f5   : > { %v2963_v6 = vmul.f32 %v5137_v57, %v2958_v56 }
 0x5f7   : > { %2964 = vst [vmem:[#allocation5 + $0x20] sm:$0xff] %v2963_v6  ;;  %v2969_v7 = vpack.c.bf16 %v2963_v6, %v2963_v6 }
 0x5f9   : > { %3195 = vmatmul.mubr.bf16.vlgmr.msra.gmra.mrb[44].mxu0 %v2969_v7  ;;  %3236 = vmatmul.mubr.bf16.vlgmr.msra.gmra.mrb[44].mxu1 %v2969_v7 }
 0x5fa   : > { %3465 = vmatpush1.bf16.msra.mxu0 %v6493_v25  ;;  %3506 = vmatpush1.bf16.msra.mxu1 %v6498_v10  ;;  %v7209_v25 = vld [vmem:[#allocation43_spill] sm:$0xff] }
 0x5fb   : > { %3466 = vmatprep.subr.bf16.mxu0 %v6553_v26  ;;  %3507 = vmatprep.subr.bf16.mxu1 %v6558_v1  ;;  %v1022_v10 = vadd.f32 %v7209_v25, %v6414_v20 }
 0x5fc   : > { %3496 = vmatprep.mubr.bf16.mxu0 %v7201_v18  ;;  %3537 = vmatprep.mubr.bf16.mxu1 %v7201_v18 }
 0x5fe   : > { %3467 = vmatpush1.bf16.msra.mxu0 %v6563_v3  ;;  %3508 = vmatpush1.bf16.msra.mxu1 %v6568_v59 }
 0x5ff   : > { %3468 = vmatprep.subr.bf16.mxu0 %v6577_v4  ;;  %3509 = vmatprep.subr.bf16.mxu1 %v6582_v2 }
 0x602   : > { %3469 = vmatpush1.bf16.msra.mxu0 %v6587_v22  ;;  %3510 = vmatpush1.bf16.msra.mxu1 %v6592_v17 }
 0x603   : > { %3470 = vmatprep.subr.bf16.mxu0 %v6601_v16  ;;  %3511 = vmatprep.subr.bf16.mxu1 %v6606_v28 }
 0x606   : > { %3471 = vmatpush1.bf16.msra.mxu0 %v6611_v29  ;;  %3512 = vmatpush1.bf16.msra.mxu1 %v6616_v60 }
 0x607   : > { %3472 = vmatprep.subr.bf16.mxu0 %v6625_v61  ;;  %3513 = vmatprep.subr.bf16.mxu1 %v6630_v62 }
 0x60a   : > { %3473 = vmatpush1.bf16.msra.mxu0 %v6635_v63  ;;  %3514 = vmatpush1.bf16.msra.mxu1 %v6640_v19 }
 0x60b   : > { %3474 = vmatprep.subr.bf16.mxu0 %v6649_v11  ;;  %3515 = vmatprep.subr.bf16.mxu1 %v6654_v21 }
 0x60e   : > { %3475 = vmatpush1.bf16.msra.mxu0 %v6659_v23  ;;  %3516 = vmatpush1.bf16.msra.mxu1 %v6664_v30 }
 0x60f   : > { %3476 = vmatprep.subr.bf16.mxu0 %v6673_v31  ;;  %3517 = vmatprep.subr.bf16.mxu1 %v6678_v32 }
 0x612   : > { %3477 = vmatpush1.bf16.msra.mxu0 %v6683_v33  ;;  %3518 = vmatpush1.bf16.msra.mxu1 %v6688_v34 }
 0x613   : > { %3478 = vmatprep.subr.bf16.mxu0 %v6697_v35  ;;  %3519 = vmatprep.subr.bf16.mxu1 %v6702_v36 }
 0x616   : > { %3479 = vmatpush1.bf16.msra.mxu0 %v6707_v37  ;;  %3520 = vmatpush1.bf16.msra.mxu1 %v6712_v38 }
 0x6cc   : > { %v3196_v58 = vpop.f32.mrb[44].mxu0  ;;  %v3237_v39 = vpop.f32.mrb[44].mxu1 }
 0x6cd   : > { %v3244_v40 = vadd.f32 %v3196_v58, %v1022_v10  ;;  %v3246_v41 = vadd.f32 %v3237_v39, %v1095_v8  ;;  %v3198_v42 = vpop.f32.mrb[45].mxu0  ;;  %v3239_v43 = vpop.f32.mrb[45].mxu1  ;;  %v5071_v39 = vld [vmem:[%s7176_s9 + $0xc] ss:$16 sps:$4 sm:$0xff]  }
 0x6ce   : > { %v3245_v45 = vadd.f32 %v3198_v42, %v1024_v12  ;;  %v3247_v46 = vadd.f32 %v3239_v43, %v1097_v24  ;;  %v3200_v47 = vpop.f32.mrb[46].mxu0  ;;  %v3241_v48 = vpop.f32.mrb[46].mxu1  ;;  %3807 = vmatprep.subr.bf16.mxu1 %v5071_v39 }
 0x6cf   : > { %v3248_v49 = vmul.f32 0.5, %v3244_v40  ;;  %v3201_v50 = vpop.f32.mrb[47].mxu0  ;;  %v3242_v5 = vpop.f32.mrb[47].mxu1  ;;  %v5066_v40 = vld [vmem:[%s7176_s9] ss:$16 sps:$4 sm:$0xff]  }
 0x6d0   : > { %v3252_v51 = vmul.f32 0.5, %v3245_v45  ;;  %v3257_v52 = vmul.f32 0.5, %v3247_v46 }
 0x6d1   : > { %5138 = vtanh.f32 %v3248_v49 }
 0x6d2   : > { %5140 = vtanh.f32 %v3252_v51 }
 0x6d3   : > { %5142 = vtanh.f32 %v3246_v41  ;;  %v5069_v41 = vld [vmem:[%s7176_s9 + $0x8] ss:$16 sps:$4 sm:$0xff]  }
 0x6d4   : > { %5144 = vtanh.f32 %v3257_v52 }
 0x6db   : > { %v5139_v53 = vpop.eup %5138 }
 0x6dc   : > { %v5141_v55 = vpop.eup %5140  ;;  %v3250_v9 = vmul.f32 0.5, %v5139_v53  ;;  %v5072_v53 = vld [vmem:[%s7175_s18] sm:$0xff]  }
 0x6dd   : > { %v3254_v56 = vmul.f32 0.5, %v5141_v55  ;;  %v5143_v6 = vpop.eup %5142  ;;  %v5073_v55 = vld [vmem:[%s7175_s18 + $0x40] sm:$0xff]  }
 0x6de   : > { %v3251_v57 = vadd.f32 0.5, %v3250_v9  ;;  %v5145_v8 = vpop.eup %5144  ;;  %v5074_v9 = vld [vmem:[%s7175_s18 + $0x8] sm:$0xff]  }
 0x6df   : > { %v3255_v7 = vadd.f32 0.5, %v3254_v56  ;;  %v3259_v27 = vmul.f32 0.5, %v5145_v8  ;;  %v5075_v56 = vld [vmem:[%s7175_s18 + $0x48] sm:$0xff]  }
 0x6e0   : > { %v3262_v25 = vmul.f32 %v5143_v6, %v3251_v57  ;;  %v5076_v57 = vld [vmem:[%s7175_s18 + $0x10] sm:$0xff]   ;;  %v5082_v8 = vld [vmem:[%s7175_s18 + $0x28] sm:$0xff]  }
 0x6e1   : > { %v3261_v10 = vmul.f32 %v3255_v7, %v6775_v54  ;;  %v3260_v12 = vadd.f32 0.5, %v3259_v27  ;;  %v5068_v54 = vld [vmem:[%s7176_s9 + $0x4] ss:$16 sps:$4 sm:$0xff]   ;;  %v5078_v7 = vld [vmem:[%s7175_s18 + $0x18] sm:$0xff]   ;;  %v5083_v27 = vld [vmem:[%s7175_s18 + $0x68] sm:$0xff]  }
 0x6e2   : > { %3766 = vmatprep.subr.bf16.mxu0 %v5068_v54  ;;  %v5077_v6 = vld [vmem:[%s7175_s18 + $0x50] sm:$0xff]   ;;  %v7218_v54 = vld [vmem:[#allocation51_spill] sm:$0xff] }
 0x6e3   : > { %v6819_v44 = vadd.f32 %v3262_v25, %v3261_v10  ;;  %v5079_v25 = vld [vmem:[%s7175_s18 + $0x58] sm:$0xff]   ;;  %v5080_v10 = vld [vmem:[%s7175_s18 + $0x20] sm:$0xff]   ;;  %v1032_v39 = vadd.f32 %v7218_v54, %v6414_v20 }
 0x6e5   : > { %5146 = vtanh.f32 %v6819_v44 }
 0x6ef   : > { %v5147_v0 = vpop.eup %5146 }
 0x6f0   : > { %v3265_v24 = vmul.f32 %v5147_v0, %v3260_v12  ;;  %v5084_v12 = vld [vmem:[%s7175_s18 + $0x30] sm:$0xff]  }
 0x6f1   : > { %v5085_v0 = vld [vmem:[%s7175_s18 + $0x70] sm:$0xff]  }
 0x6f2   : > { %3266 = vst [vmem:[#allocation5 + $0x28] sm:$0xff] %v3265_v24  ;;  %v3271_v58 = vpack.c.bf16 %v3265_v24, %v3265_v24  ;;  %v5086_v24 = vld [vmem:[%s7175_s18 + $0x38] sm:$0xff]  }
 0x6f4   : > { %3497 = vmatmul.mubr.bf16.vlgmr.msra.gmra.mrb[48].mxu0 %v3271_v58  ;;  %3538 = vmatmul.mubr.bf16.vlgmr.msra.gmra.mrb[48].mxu1 %v3271_v58  ;;  %v5087_v58 = vld [vmem:[%s7175_s18 + $0x78] sm:$0xff]  }
 0x6f5   : > { %3798 = vmatprep.mubr.bf16.mxu0 %v7201_v18  ;;  %3839 = vmatprep.mubr.bf16.mxu1 %v7201_v18  ;;  %v7213_v18 = vmov 0.0  }
 0x6f6   : > { %3767 = vmatpush1.bf16.msra.mxu0 %v5066_v40  ;;  %3808 = vmatpush1.bf16.msra.mxu1 %v5069_v41  ;;  %v7219_v40 = vld [vmem:[#allocation52_spill] sm:$0xff] }
 0x6f7   : > { %3768 = vmatprep.subr.bf16.mxu0 %v6553_v26  ;;  %3809 = vmatprep.subr.bf16.mxu1 %v6558_v1  ;;  %v7214_v26 = vld [vmem:[#allocation47_spill] sm:$0xff]  ;;  %v1105_v41 = vadd.f32 %v7219_v40, %v6416_v14 }
 0x6f8   : > { %v1028_v1 = vadd.f32 %v7214_v26, %v6414_v20  ;;  %v7220_v26 = vld [vmem:[#allocation53_spill] sm:$0xff] }
 0x6fa   : > { %3769 = vmatpush1.bf16.msra.mxu0 %v6563_v3  ;;  %3810 = vmatpush1.bf16.msra.mxu1 %v6568_v59  ;;  %v7215_v3 = vld [vmem:[#allocation48_spill] sm:$0xff] }
 0x6fb   : > { %3770 = vmatprep.subr.bf16.mxu0 %v6577_v4  ;;  %3811 = vmatprep.subr.bf16.mxu1 %v6582_v2  ;;  %v1101_v59 = vadd.f32 %v7215_v3, %v6416_v14  ;;  %v7216_v4 = vld [vmem:[#allocation49_spill] sm:$0xff]  ;;  %v7221_v3 = vld [vmem:[#allocation54_spill] sm:$0xff] }
 0x6fc   : > { %v1030_v2 = vadd.f32 %v7216_v4, %v6418_v13 }
 0x6fe   : > { %3771 = vmatpush1.bf16.msra.mxu0 %v6587_v22  ;;  %3812 = vmatpush1.bf16.msra.mxu1 %v6592_v17  ;;  %v7217_v22 = vld [vmem:[#allocation50_spill] sm:$0xff] }
 0x6ff   : > { %3772 = vmatprep.subr.bf16.mxu0 %v6601_v16  ;;  %3813 = vmatprep.subr.bf16.mxu1 %v6606_v28  ;;  %v1103_v17 = vadd.f32 %v7217_v22, %v6420_v15 }
 0x702   : > { %3773 = vmatpush1.bf16.msra.mxu0 %v6611_v29  ;;  %3814 = vmatpush1.bf16.msra.mxu1 %v6616_v60 }
 0x703   : > { %3774 = vmatprep.subr.bf16.mxu0 %v6625_v61  ;;  %3815 = vmatprep.subr.bf16.mxu1 %v6630_v62 }
 0x706   : > { %3775 = vmatpush1.bf16.msra.mxu0 %v6635_v63  ;;  %3816 = vmatpush1.bf16.msra.mxu1 %v6640_v19 }
 0x707   : > { %3776 = vmatprep.subr.bf16.mxu0 %v6649_v11  ;;  %3817 = vmatprep.subr.bf16.mxu1 %v6654_v21 }
 0x70a   : > { %3777 = vmatpush1.bf16.msra.mxu0 %v6659_v23  ;;  %3818 = vmatpush1.bf16.msra.mxu1 %v6664_v30 }
 0x70b   : > { %3778 = vmatprep.subr.bf16.mxu0 %v6673_v31  ;;  %3819 = vmatprep.subr.bf16.mxu1 %v6678_v32 }
 0x70e   : > { %3779 = vmatpush1.bf16.msra.mxu0 %v6683_v33  ;;  %3820 = vmatpush1.bf16.msra.mxu1 %v6688_v34 }
 0x70f   : > { %3780 = vmatprep.subr.bf16.mxu0 %v6697_v35  ;;  %3821 = vmatprep.subr.bf16.mxu1 %v6702_v36 }
 0x712   : > { %3781 = vmatpush1.bf16.msra.mxu0 %v6707_v37  ;;  %3822 = vmatpush1.bf16.msra.mxu1 %v6712_v38 }
 0x713   : > { %4876 = vmatprep.subr.bf16.mxu0 %v7213_v18  ;;  %4896 = vmatprep.subr.bf16.mxu1 %v7213_v18 }
 0x7c7   : > { %v3498_v16 = vpop.f32.mrb[48].mxu0  ;;  %v3539_v28 = vpop.f32.mrb[48].mxu1 }
 0x7c8   : > { %v3546_v29 = vadd.f32 %v3498_v16, %v1028_v1  ;;  %v3548_v60 = vadd.f32 %v3539_v28, %v1101_v59  ;;  %v3500_v61 = vpop.f32.mrb[49].mxu0  ;;  %v3541_v62 = vpop.f32.mrb[49].mxu1  ;;  %v1034_v1 = vadd.f32 %v7220_v26, %v6418_v13  ;;  %v1107_v59 = vadd.f32 %v7221_v3, %v6420_v15 }
 0x7c9   : > { %v3547_v63 = vadd.f32 %v3500_v61, %v1030_v2  ;;  %v3549_v19 = vadd.f32 %v3541_v62, %v1103_v17  ;;  %v3502_v11 = vpop.f32.mrb[50].mxu0  ;;  %v3543_v21 = vpop.f32.mrb[50].mxu1 }
 0x7ca   : > { %v3550_v23 = vmul.f32 0.5, %v3546_v29  ;;  %v3503_v30 = vpop.f32.mrb[51].mxu0  ;;  %v3544_v31 = vpop.f32.mrb[51].mxu1 }
 0x7cb   : > { %v3554_v32 = vmul.f32 0.5, %v3547_v63  ;;  %v3559_v33 = vmul.f32 0.5, %v3549_v19 }
 0x7cc   : > { %5148 = vtanh.f32 %v3550_v23 }
 0x7cd   : > { %5150 = vtanh.f32 %v3554_v32 }
 0x7ce   : > { %5152 = vtanh.f32 %v3548_v60 }
 0x7cf   : > { %5154 = vtanh.f32 %v3559_v33 }
 0x7d6   : > { %v5149_v34 = vpop.eup %5148 }
 0x7d7   : > { %v5151_v35 = vpop.eup %5150  ;;  %v3552_v36 = vmul.f32 0.5, %v5149_v34 }
 0x7d8   : > { %v3556_v37 = vmul.f32 0.5, %v5151_v35  ;;  %v5153_v42 = vpop.eup %5152 }
 0x7d9   : > { %v3553_v38 = vadd.f32 0.5, %v3552_v36  ;;  %v5155_v48 = vpop.eup %5154 }
 0x7da   : > { %v3557_v43 = vadd.f32 0.5, %v3556_v37  ;;  %v3561_v49 = vmul.f32 0.5, %v5155_v48 }
 0x7db   : > { %v3564_v45 = vmul.f32 %v5153_v42, %v3553_v38 }
 0x7dc   : > { %v3563_v46 = vmul.f32 %v3557_v43, %v6819_v44  ;;  %v3562_v50 = vadd.f32 0.5, %v3561_v49  ;;  %v5081_v44 = vld [vmem:[%s7175_s18 + $0x60] sm:$0xff]   ;;  %s7222_s18 = sld [smem:[#allocation14_spill]] }
 0x7de   : > { %v6875_v47 = vadd.f32 %v3564_v45, %v3563_v46 }
 0x7e0   : > { %5156 = vtanh.f32 %v6875_v47 }
 0x7e2   : > { %s6953_s16 = sld [smem:[#allocation9 + %s7222_s18]] }
 0x7e3   : > { %s3871_s18 = sld [smem:[#allocation9 + %s5313_s21]] }
 0x7e4   : > { %s7001_s21 = sld [smem:[#allocation9 + %s7230_s17]] }
 0x7e8   : > { %s4720_s14 = sshll.u32 %s6953_s16, 3  ;;  %s4337_s16 = scalar_lea.vmem [#allocation5], %s4729_s6 }
 0x7e9   : > { %s4719_s7 = sshll.u32 %s3871_s18, 3  ;;  %s3878_s15 = scalar_lea.vmem [#allocation5], %s4720_s14 }
 0x7ea   : > { %v5157_v5 = vpop.eup %5156  ;;  %s4745_s30 = sshll.u32 %s7001_s21, 3  ;;  %s3874_s17 = scalar_lea.vmem [#allocation5], %s4719_s7 }
 0x7eb   : > { %v3567_v51 = vmul.f32 %v5157_v5, %v3562_v50  ;;  %s7231_s18 = sshll.u32 %s6956_s25, 3  ;;  %s7233_s14 = sshll.u32 %s6962_s10, 3 }
 0x7ec   : > { %s4328_s20 = scalar_lea.vmem [#allocation5], %s7231_s18  ;;  %s4340_s22 = scalar_lea.vmem [#allocation5], %s7233_s14 }
 0x7ed   : > { %3568 = vst [vmem:[#allocation5 + $0x30] sm:$0xff] %v3567_v51  ;;  %v3573_v52 = vpack.c.bf16 %v3567_v51, %v3567_v51  ;;  %s4343_s25 = scalar_lea.vmem [#allocation5], %s4733_s5  ;;  %s7235_s7 = sshll.u32 %s6969_s1, 3 }
 0x7ee   : > { %s4352_s23 = scalar_lea.vmem [#allocation5], %s7235_s7  ;;  %s4355_s10 = scalar_lea.vmem [#allocation5], %s4741_s13 }
 0x7ef   : > { %3799 = vmatmul.mubr.bf16.vlgmr.msra.gmra.mrb[52].mxu0 %v3573_v52  ;;  %3840 = vmatmul.mubr.bf16.vlgmr.msra.gmra.mrb[52].mxu1 %v3573_v52  ;;  %s7236_s5 = sshll.u32 %s6974_s19, 3  ;;  %s4361_s11 = scalar_lea.vmem [#allocation5], %s4745_s30 }
 0x7f0   : > { %4892 = vmatprep.mubr.msk.bf16.mxu0 %vm5219_vm2, %v7213_v18  ;;  %4912 = vmatprep.mubr.msk.bf16.mxu1 %vm5219_vm2, %v7213_v18  ;;  %s4358_s6 = scalar_lea.vmem [#allocation5], %s7236_s5  ;;  %s7239_s19 = sld [smem:[#allocation63_spill]] }
 0x7f1   : > { %4877 = vmatpush3.bf16.msra.mxu0 %v5072_v53  ;;  %4897 = vmatpush3.bf16.msra.mxu1 %v5073_v55  ;;  %s7240_s21 = sld [smem:[#allocation64_spill]] }
 0x7f2   : > { %4878 = vmatprep.subr.bf16.mxu0 %v7213_v18  ;;  %4898 = vmatprep.subr.bf16.mxu1 %v7213_v18 }
 0x7f5   : > { %4879 = vmatpush3.bf16.msra.mxu0 %v5074_v9  ;;  %4899 = vmatpush3.bf16.msra.mxu1 %v5075_v56 }
 0x7f6   : > { %4880 = vmatprep.subr.bf16.mxu0 %v7213_v18  ;;  %4900 = vmatprep.subr.bf16.mxu1 %v7213_v18 }
 0x7f7   : > { %s361_s13 = scalar_lea.vmem %s7240_s21, %s6269_s28 }
 0x7f9   : > { %4881 = vmatpush3.bf16.msra.mxu0 %v5076_v57  ;;  %4901 = vmatpush3.bf16.msra.mxu1 %v5077_v6 }
 0x7fa   : > { %4882 = vmatprep.subr.bf16.mxu0 %v7213_v18  ;;  %4902 = vmatprep.subr.bf16.mxu1 %v7213_v18 }
 0x7fd   : > { %4883 = vmatpush3.bf16.msra.mxu0 %v5078_v7  ;;  %4903 = vmatpush3.bf16.msra.mxu1 %v5079_v25 }
 0x7fe   : > { %4884 = vmatprep.subr.bf16.mxu0 %v7213_v18  ;;  %4904 = vmatprep.subr.bf16.mxu1 %v7213_v18 }
 0x801   : > { %4885 = vmatpush3.bf16.msra.mxu0 %v5080_v10  ;;  %4905 = vmatpush3.bf16.msra.mxu1 %v5081_v44 }
 0x802   : > { %4886 = vmatprep.subr.bf16.mxu0 %v7213_v18  ;;  %4906 = vmatprep.subr.bf16.mxu1 %v7213_v18 }
 0x805   : > { %4887 = vmatpush3.bf16.msra.mxu0 %v5082_v8  ;;  %4907 = vmatpush3.bf16.msra.mxu1 %v5083_v27  ;;  %v7238_v27 = vld [vmem:[#allocation55_spill] sm:$0xff] }
 0x806   : > { %4888 = vmatprep.subr.bf16.mxu0 %v7213_v18  ;;  %4908 = vmatprep.subr.bf16.mxu1 %v7213_v18 }
 0x809   : > { %4889 = vmatpush3.bf16.msra.mxu0 %v5084_v12  ;;  %4909 = vmatpush3.bf16.msra.mxu1 %v5085_v0 }
 0x80a   : > { %4890 = vmatprep.subr.bf16.mxu0 %v7213_v18  ;;  %4910 = vmatprep.subr.bf16.mxu1 %v7213_v18 }
 0x80d   : > { %4891 = vmatpush3.bf16.msra.mxu0 %v5086_v24  ;;  %4911 = vmatpush3.bf16.msra.mxu1 %v5087_v58  ;;  %v4765_v58 = vld [vmem:[%s7239_s19] ss:$0 sm:$0xff] }
 0x8c2   : > { %v3800_v4 = vpop.f32.mrb[52].mxu0  ;;  %v3841_v2 = vpop.f32.mrb[52].mxu1 }
 0x8c3   : > { %v3848_v22 = vadd.f32 %v3800_v4, %v1032_v39  ;;  %v3850_v17 = vadd.f32 %v3841_v2, %v1105_v41  ;;  %v3802_v16 = vpop.f32.mrb[53].mxu0  ;;  %v3843_v18 = vpop.f32.mrb[53].mxu1 }
 0x8c4   : > { %v3849_v28 = vadd.f32 %v3802_v16, %v1034_v1  ;;  %v3851_v29 = vadd.f32 %v3843_v18, %v1107_v59  ;;  %v3804_v20 = vpop.f32.mrb[54].mxu0  ;;  %v3845_v60 = vpop.f32.mrb[54].mxu1 }
 0x8c5   : > { %v3852_v14 = vmul.f32 0.5, %v3848_v22  ;;  %v3805_v61 = vpop.f32.mrb[55].mxu0  ;;  %v3846_v13 = vpop.f32.mrb[55].mxu1 }
 0x8c6   : > { %v3856_v62 = vmul.f32 0.5, %v3849_v28  ;;  %v3861_v15 = vmul.f32 0.5, %v3851_v29 }
 0x8c7   : > { %5158 = vtanh.f32 %v3852_v14 }
 0x8c8   : > { %5160 = vtanh.f32 %v3856_v62 }
 0x8c9   : > { %5162 = vtanh.f32 %v3850_v17 }
 0x8ca   : > { %5164 = vtanh.f32 %v3861_v15 }
 0x8d1   : > { %v5159_v63 = vpop.eup %5158 }
 0x8d2   : > { %v5161_v19 = vpop.eup %5160  ;;  %v3854_v11 = vmul.f32 0.5, %v5159_v63 }
 0x8d3   : > { %v3858_v21 = vmul.f32 0.5, %v5161_v19  ;;  %v5163_v30 = vpop.eup %5162 }
 0x8d4   : > { %v3855_v23 = vadd.f32 0.5, %v3854_v11  ;;  %v5165_v35 = vpop.eup %5164 }
 0x8d5   : > { %v3859_v31 = vadd.f32 0.5, %v3858_v21  ;;  %v3863_v36 = vmul.f32 0.5, %v5165_v35 }
 0x8d6   : > { %v3866_v32 = vmul.f32 %v5163_v30, %v3855_v23 }
 0x8d7   : > { %v3865_v33 = vmul.f32 %v3859_v31, %v6875_v47  ;;  %v3864_v37 = vadd.f32 0.5, %v3863_v36 }
 0x8d9   : > { %v3867_v34 = vadd.f32 %v3866_v32, %v3865_v33 }
 0x8db   : > { %5166 = vtanh.f32 %v3867_v34 }
 0x8e5   : > { %v5167_v38 = vpop.eup %5166 }
 0x8e6   : > { %v3869_v42 = vmul.f32 %v5167_v38, %v3864_v37 }
 0x8e8   : > { %3870 = vst [vmem:[#allocation5 + $0x38] sm:$0xff] %v3869_v42 }
 0x8ef   : > { %v3875_v43 = vld [vmem:[%s3874_s17] sm:$0x1]  ;;  %v4722_v46 = vld [vmem:[%s4325_s0 + $0x1] sm:$0x1]  ;;  %v4726_v48 = vld [vmem:[%s4331_s12 + $0x2] sm:$0x1] }
 0x8f0   : > { %v3879_v45 = vld [vmem:[%s3878_s15] sm:$0x1]  ;;  %3876 = vst [vmem:[#allocation6] sm:$0x1] %v3875_v43  ;;  %3887 = vst [vmem:[#allocation6 + $0x1] sm:$0x1] %v4722_v46 }
 0x8f1   : > { %3880 = vst [vmem:[#allocation6 + $0x8] sm:$0x1] %v3879_v45  ;;  %v4724_v47 = vld [vmem:[%s4328_s20 + $0x1] sm:$0x1]  ;;  %v4728_v49 = vld [vmem:[%s4334_s2 + $0x2] sm:$0x1] }
 0x8f2   : > { %3892 = vst [vmem:[#allocation6 + $0x9] sm:$0x1] %v4724_v47  ;;  %3899 = vst [vmem:[#allocation6 + $0x2] sm:$0x1] %v4726_v48  ;;  %v4730_v50 = vld [vmem:[%s4337_s16 + $0x3] sm:$0x1] }
 0x8f3   : > { %3904 = vst [vmem:[#allocation6 + $0xa] sm:$0x1] %v4728_v49  ;;  %v4732_v5 = vld [vmem:[%s4340_s22 + $0x3] sm:$0x1]  ;;  %v4734_v51 = vld [vmem:[%s4343_s25 + $0x4] sm:$0x1] }
 0x8f4   : > { %3911 = vst [vmem:[#allocation6 + $0x3] sm:$0x1] %v4730_v50  ;;  %3916 = vst [vmem:[#allocation6 + $0xb] sm:$0x1] %v4732_v5  ;;  %s4346_s15 = scalar_lea.vmem [#allocation5], %s7234_s8  ;;  %s4349_s0 = scalar_lea.vmem [#allocation5], %s4737_s27 }
 0x8f5   : > { %3923 = vst [vmem:[#allocation6 + $0x4] sm:$0x1] %v4734_v51  ;;  %v4736_v52 = vld [vmem:[%s4346_s15 + $0x4] sm:$0x1]  ;;  %v4738_v53 = vld [vmem:[%s4349_s0 + $0x5] sm:$0x1] }
 0x8f6   : > { %v4740_v55 = vld [vmem:[%s4352_s23 + $0x5] sm:$0x1]  ;;  %3928 = vst [vmem:[#allocation6 + $0xc] sm:$0x1] %v4736_v52  ;;  %3935 = vst [vmem:[#allocation6 + $0x5] sm:$0x1] %v4738_v53 }
 0x8f7   : > { %3940 = vst [vmem:[#allocation6 + $0xd] sm:$0x1] %v4740_v55  ;;  %v4742_v9 = vld [vmem:[%s4355_s10 + $0x6] sm:$0x1]  ;;  %v4746_v57 = vld [vmem:[%s4361_s11 + $0x7] sm:$0x1] }
 0x8f8   : > { %v4744_v56 = vld [vmem:[%s4358_s6 + $0x6] sm:$0x1]  ;;  %3947 = vst [vmem:[#allocation6 + $0x6] sm:$0x1] %v4742_v9  ;;  %3959 = vst [vmem:[#allocation6 + $0x7] sm:$0x1] %v4746_v57 }
 0x8f9   : > { %3952 = vst [vmem:[#allocation6 + $0xe] sm:$0x1] %v4744_v56  ;;  %s7237_s27 = sshll.u32 %s6977_s29, 3 }
 0x8fa   : > { %s4364_s24 = scalar_lea.vmem [#allocation5], %s7237_s27 }
 0x8fb   : > { %v4748_v6 = vld [vmem:[%s4364_s24 + $0x7] sm:$0x1] }
 0x8fc   : > { %3964 = vst [vmem:[#allocation6 + $0xf] sm:$0x1] %v4748_v6 }
 0x8ff   : > { %v3965_v7 = vld [vmem:[#allocation6] sm:$0xff] }
 0x900   : > { %v3966_v25 = vpack.c.bf16 %v3965_v7, %v3965_v7 }
 0x902   : > { %4893 = vmatmul.mubr.bf16.vlgmr.msra.gmra.mrb[56].mxu0 %v3966_v25 }
 0x903   : > { %v4072_v10 = vld [vmem:[#allocation6 + $0x8] sm:$0xff] }
 0x904   : > { %v4073_v44 = vpack.c.bf16 %v4072_v10, %v4072_v10 }
 0x906   : > { %4913 = vmatmul.mubr.bf16.vlgmr.msra.gmra.mrb[56].mxu1 %v4073_v44 }
 0x9d5   : > { %v4065_v8 = vpop.f32.mrb[56].mxu0 }
 0x9d6   : > { %v4071_v12 = vadd.f32 %v4065_v8, %v7238_v27  ;;  %v4894_v24 = vpop.f32.mrb[57].mxu0 }
 0x9d7   : > { %v4068_v39 = vpop.f32.mrb[58].mxu0 }
 0x9d8   : > { %v4895_v26 = vpop.f32.mrb[59].mxu0 }
 0x9d9   : > { %v4172_v0 = vpop.f32.mrb[56].mxu1 }
 0x9da   : > { %v4914_v54 = vpop.f32.mrb[57].mxu1  ;;  %v4178_v40 = vadd.f32 %v4172_v0, %v4071_v12 }
 0x9db   : > { %v4175_v41 = vpop.f32.mrb[58].mxu1 }
 0x9dc   : > { %v4915_v1 = vpop.f32.mrb[59].mxu1  ;;  %v4186_v3 = vadd.f32 %v4765_v58, %v4178_v40 }
 0x9de   : > { %v4187_v59 = vmax.f32 %v4186_v3, 0.0 }
 0x9e0   : > { %4188 = vst [vmem:[%s361_s13] sm:$0xff] %v4187_v59 }
 0x9e1 PF: > { %s7241_s17 = sld [smem:[#allocation12_spill]] }
 0x9e7   : > { %s36_s16 = sadd.s32 1, %s7241_s17  }
 0x9e8   : > { %p33_p5 = scmp.ge.s32.totalorder %s36_s16, 4  }
 0x9ea   :  { %35 = sbr.rel (!%p33_p5) target bundleno = 39 (0x27), region = 201 }

</bundles_post_ra>
